<compile_context>
chip_gen: v7x
topology: tpu7x:2x2x1
jax: 0.10.0
libtpu: 0.0.40
codegen_flags: <defaults>
</compile_context>

<pallas_src>
import functools
import math

import jax
import jax.numpy as jnp
from jax import lax
from jax.experimental import pallas as pl
from jax.experimental.pallas import tpu as pltpu


# ----------------------------------------------------------------------------
# Helpers shared by the Pallas path and the pure-JAX reference.
# ----------------------------------------------------------------------------

def bn_scale_shift(bn, eps=1e-5):
    """Fold inference-mode BatchNorm1d into per-channel scale/shift."""
    scale = bn["gamma"] / jnp.sqrt(bn["var"] + eps)
    shift = bn["beta"] - bn["mean"] * scale
    return scale, shift


def same_pad_amount(L, K, S):
    L_out = (L + S - 1) // S
    p = max(0, (L_out - 1) * S + K - L)
    return L_out, p // 2, p - p // 2


def maxpool1d_same(x, k):
    """MyMaxPool1dPadSame: zero-pad (SAME w.r.t. stride 1), then MaxPool1d(k) (stride k)."""
    if k <= 1:
        return x
    B, C, L = x.shape
    p = k - 1
    pad_left = p // 2
    pad_right = p - pad_left
    xp = jnp.pad(x, ((0, 0), (0, 0), (pad_left, pad_right)))
    L_out = (L + p - k) // k + 1
    xp = xp[..., : L_out * k]
    return jnp.max(xp.reshape(B, C, L_out, k), axis=-1)


# ----------------------------------------------------------------------------
# In-kernel SAME-padded stride-1 Conv1d: K shifted MXU matmuls, f32 accumulation.
# ----------------------------------------------------------------------------

def _conv1d_same_s1(h, w_ref, b_ref, pad_ref, *, K, L):
    """h: [C_in, L] f32 value.  w_ref: [K, C_out, C_in].  b_ref: [C_out, 1].
    pad_ref: VMEM scratch with >= C_in rows and exactly L + K - 1 columns."""
    C_in = h.shape[0]
    C_out = w_ref.shape[1]
    Lp = L + K - 1
    pad_left = (K - 1) // 2
    pad_ref[0:C_in, 0:Lp] = jnp.zeros((C_in, Lp), jnp.float32)
    pad_ref[0:C_in, pad_left:pad_left + L] = h
    acc = jnp.zeros((C_out, L), jnp.float32)
    for k in range(K):  # K is small & static -> unrolled
        acc = acc + jnp.dot(w_ref[k], pad_ref[0:C_in, k:k + L],
                            preferred_element_type=jnp.float32)
    return acc + b_ref[...]


# ----------------------------------------------------------------------------
# Kernels.
# ----------------------------------------------------------------------------

def _first_conv_kernel(x_ref, w_ref, b_ref, bns_ref, bnb_ref, o_ref, pad_ref,
                       *, K, L, use_bn):
    y = _conv1d_same_s1(x_ref[...].astype(jnp.float32), w_ref, b_ref, pad_ref, K=K, L=L)
    if use_bn:
        y = y * bns_ref[...] + bnb_ref[...]
    o_ref[...] = jnp.maximum(y, 0.0)


def _block_kernel_s1(x_ref, bn1s_ref, bn1b_ref, w1_ref, b1_ref,
                     bn2s_ref, bn2b_ref, w2_ref, b2_ref,
                     o_ref, pad1_ref, pad2_ref,
                     *, K, L, C_in, C_out, is_first, use_bn):
    """Fused BasicBlock, stride == 1 (no downsample)."""
    x = x_ref[...].astype(jnp.float32)
    h = x
    if not is_first:
        if use_bn:
            h = h * bn1s_ref[...] + bn1b_ref[...]
        h = jnp.maximum(h, 0.0)
        # do1: Dropout(p=0.5) -> eval-mode identity.
    h = _conv1d_same_s1(h, w1_ref, b1_ref, pad1_ref, K=K, L=L)
    if use_bn:
        h = h * bn2s_ref[...] + bn2b_ref[...]
    h = jnp.maximum(h, 0.0)
    # do2: Dropout(p=0.5) -> eval-mode identity.
    h = _conv1d_same_s1(h, w2_ref, b2_ref, pad2_ref, K=K, L=L)
    if C_out == C_in:
        o_ref[...] = h + x
    else:
        ch1 = (C_out - C_in) // 2            # zero-pad identity channels
        o_ref[...] = h
        o_ref[ch1:ch1 + C_in, :] = h[ch1:ch1 + C_in, :] + x


def _block_kernel_strided(xc_ref, id_ref, w1_ref, b1_ref,
                          bn2s_ref, bn2b_ref, w2_ref, b2_ref,
                          o_ref, pad_ref,
                          *, K, L_out, C_in, C_out, use_bn):
    """Fused BasicBlock with strided conv1 (downsample).  conv1 input arrives as an
    im2col stack [K, C_in, L_out]; identity arrives already SAME-max-pooled."""
    acc = jnp.zeros((C_out, L_out), jnp.float32)
    for k in range(K):
        acc = acc + jnp.dot(w1_ref[k], xc_ref[k].astype(jnp.float32),
                            preferred_element_type=jnp.float32)
    h = acc + b1_ref[...]
    if use_bn:
        h = h * bn2s_ref[...] + bn2b_ref[...]
    h = jnp.maximum(h, 0.0)
    # do2: Dropout(p=0.5) -> eval-mode identity.
    h = _conv1d_same_s1(h, w2_ref, b2_ref, pad_ref, K=K, L=L_out)
    identity = id_ref[...].astype(jnp.float32)
    if C_out == C_in:
        o_ref[...] = h + identity
    else:
        ch1 = (C_out - C_in) // 2
        o_ref[...] = h
        o_ref[ch1:ch1 + C_in, :] = h[ch1:ch1 + C_in, :] + identity


def _final_kernel(x_ref, bns_ref, bnb_ref, o_ref, llm_ref, *, use_bn):
    x = x_ref[...].astype(jnp.float32)
    if use_bn:
        x = x * bns_ref[...] + bnb_ref[...]
    x = jnp.maximum(x, 0.0)
    o_ref[...] = x
    llm_ref[...] = jnp.mean(x, axis=-1, keepdims=True)


# ----------------------------------------------------------------------------
# BlockSpec helpers and pallas_call wrappers.
# ----------------------------------------------------------------------------

def _param_spec(shape):
    shape = tuple(shape)
    nd = len(shape)

    def idx(b):
        return (0,) * nd

    return pl.BlockSpec(shape, idx)


def _batched_spec(tail):
    tail = tuple(tail)
    nd = len(tail)

    def idx(b):
        return (b,) + (0,) * nd

    return pl.BlockSpec((None,) + tail, idx)


_PARALLEL = pltpu.CompilerParams(dimension_semantics=("parallel",))


def _first_conv_call(x, w, b, bns, bnb, *, K, use_bn):
    B, C_in, L = x.shape
    C_out = w.shape[1]
    kern = functools.partial(_first_conv_kernel, K=K, L=L, use_bn=use_bn)
    cost = pl.CostEstimate(
        flops=2 * B * K * C_out * C_in * L, transcendentals=0,
        bytes_accessed=4 * (x.size + w.size + b.size + bns.size + bnb.size + B * C_out * L))
    return pl.pallas_call(
        kern,
        out_shape=jax.ShapeDtypeStruct((B, C_out, L), jnp.float32),
        grid=(B,),
        in_specs=[_batched_spec((C_in, L)), _param_spec(w.shape), _param_spec(b.shape),
                  _param_spec(bns.shape), _param_spec(bnb.shape)],
        out_specs=_batched_spec((C_out, L)),
        scratch_shapes=[pltpu.VMEM((max(8, C_in), L + K - 1), jnp.float32)],
        compiler_params=_PARALLEL,
        cost_estimate=cost,
    )(x, w, b, bns, bnb)


def _block_s1_call(x, p, cfg, *, K, use_bn):
    B, C_in, L = x.shape
    C_out = cfg["out_ch"]
    kern = functools.partial(_block_kernel_s1, K=K, L=L, C_in=C_in, C_out=C_out,
                             is_first=cfg["is_first"], use_bn=use_bn)
    cost = pl.CostEstimate(
        flops=2 * B * K * L * (C_out * C_in + C_out * C_out), transcendentals=0,
        bytes_accessed=4 * (x.size + B * C_out * L + p["w1"].size + p["w2"].size))
    return pl.pallas_call(
        kern,
        out_shape=jax.ShapeDtypeStruct((B, C_out, L), jnp.float32),
        grid=(B,),
        in_specs=[_batched_spec((C_in, L)),
                  _param_spec(p["bn1_scale"].shape), _param_spec(p["bn1_shift"].shape),
                  _param_spec(p["w1"].shape), _param_spec(p["b1"].shape),
                  _param_spec(p["bn2_scale"].shape), _param_spec(p["bn2_shift"].shape),
                  _param_spec(p["w2"].shape), _param_spec(p["b2"].shape)],
        out_specs=_batched_spec((C_out, L)),
        scratch_shapes=[pltpu.VMEM((max(8, C_in), L + K - 1), jnp.float32),
                        pltpu.VMEM((max(8, C_out), L + K - 1), jnp.float32)],
        compiler_params=_PARALLEL,
        cost_estimate=cost,
    )(x, p["bn1_scale"], p["bn1_shift"], p["w1"], p["b1"],
      p["bn2_scale"], p["bn2_shift"], p["w2"], p["b2"])


def _block_strided_call(x, p, cfg, *, K, use_bn):
    B, C_in, L = x.shape
    C_out = cfg["out_ch"]
    S = cfg["stride"]
    L_out, pad_l, pad_r = same_pad_amount(L, K, S)

    # Pre-activation (bn1 + relu) must happen BEFORE the SAME zero-padding, so for the
    # strided block it is applied here on the HBM-level input (plain XLA elementwise).
    h = x
    if not cfg["is_first"]:
        if use_bn:
            h = h * p["bn1_scale"][None] + p["bn1_shift"][None]
        h = jnp.maximum(h, 0.0)
    # SAME-pad + im2col over the stride: x_cols[b, k, c, t] = h_pad[b, c, t*S + k].
    hp = jnp.pad(h, ((0, 0), (0, 0), (pad_l, pad_r)))
    x_cols = jnp.stack(
        [hp[:, :, k:k + (L_out - 1) * S + 1:S] for k in range(K)], axis=1)
    # Identity path: SAME max-pool of the RAW block input.
    identity = maxpool1d_same(x, S) if cfg["downsample"] else x

    kern = functools.partial(_block_kernel_strided, K=K, L_out=L_out,
                             C_in=C_in, C_out=C_out, use_bn=use_bn)
    cost = pl.CostEstimate(
        flops=2 * B * K * L_out * (C_out * C_in + C_out * C_out), transcendentals=0,
        bytes_accessed=4 * (x_cols.size + identity.size + B * C_out * L_out
                            + p["w1"].size + p["w2"].size))
    return pl.pallas_call(
        kern,
        out_shape=jax.ShapeDtypeStruct((B, C_out, L_out), jnp.float32),
        grid=(B,),
        in_specs=[_batched_spec((K, C_in, L_out)), _batched_spec((C_in, L_out)),
                  _param_spec(p["w1"].shape), _param_spec(p["b1"].shape),
                  _param_spec(p["bn2_scale"].shape), _param_spec(p["bn2_shift"].shape),
                  _param_spec(p["w2"].shape), _param_spec(p["b2"].shape)],
        out_specs=_batched_spec((C_out, L_out)),
        scratch_shapes=[pltpu.VMEM((max(8, C_out), L_out + K - 1), jnp.float32)],
        compiler_params=_PARALLEL,
        cost_estimate=cost,
    )(x_cols, identity, p["w1"], p["b1"], p["bn2_scale"], p["bn2_shift"], p["w2"], p["b2"])


def _final_call(x, bns, bnb, *, use_bn):
    B, C, L = x.shape
    out, llm = pl.pallas_call(
        functools.partial(_final_kernel, use_bn=use_bn),
        out_shape=(jax.ShapeDtypeStruct((B, C, L), jnp.float32),
                   jax.ShapeDtypeStruct((B, C, 1), jnp.float32)),
        grid=(B,),
        in_specs=[_batched_spec((C, L)), _param_spec(bns.shape), _param_spec(bnb.shape)],
        out_specs=(_batched_spec((C, L)), _batched_spec((C, 1))),
        compiler_params=_PARALLEL,
    )(x, bns, bnb)
    return out, llm[..., 0]


# ----------------------------------------------------------------------------
# Model wiring (mirrors the PyTorch constructor / forward).
# ----------------------------------------------------------------------------

def _prep_conv(w, b):
    # PyTorch Conv1d weight [C_out, C_in, K] -> [K, C_out, C_in]; bias -> [C_out, 1].
    return jnp.transpose(w, (2, 0, 1)), b[:, None]


def _prep_bn(bn, eps):
    s, t = bn_scale_shift(bn, eps)
    return s[:, None], t[:, None]


def build_block_cfgs(base_filters, n_block, downsample_gap, increasefilter_gap, stride):
    cfgs = []
    for i_block in range(n_block):
        is_first = i_block == 0
        downsample = (i_block % downsample_gap) == 1
        if is_first:
            in_ch = base_filters
            out_ch = in_ch
        else:
            in_ch = int(base_filters * 2 ** ((i_block - 1) // increasefilter_gap))
            if i_block % increasefilter_gap == 0 and i_block != 0:
                out_ch = in_ch * 2
            else:
                out_ch = in_ch
        cfgs.append(dict(in_ch=in_ch, out_ch=out_ch,
                         stride=stride if downsample else 1,
                         is_first=is_first, downsample=downsample))
    return cfgs


def make_forward(cfgs, kernel_size, use_bn=True, bn_eps=1e-5):
    K = kernel_size

    @jax.jit
    def forward(x, params):
        pf = params["first"]
        w0, b0 = _prep_conv(pf["w"], pf["b"])
        s0, t0 = _prep_bn(pf["bn"], bn_eps)
        out = _first_conv_call(x, w0, b0, s0, t0, K=K, use_bn=use_bn)
        for cfg, bp in zip(cfgs, params["blocks"]):
            pp = {}
            pp["w1"], pp["b1"] = _prep_conv(bp["w1"], bp["b1"])
            pp["w2"], pp["b2"] = _prep_conv(bp["w2"], bp["b2"])
            pp["bn1_scale"], pp["bn1_shift"] = _prep_bn(bp["bn1"], bn_eps)
            pp["bn2_scale"], pp["bn2_shift"] = _prep_bn(bp["bn2"], bn_eps)
            if cfg["stride"] > 1:
                out = _block_strided_call(out, pp, cfg, K=K, use_bn=use_bn)
            else:
                out = _block_s1_call(out, pp, cfg, K=K, use_bn=use_bn)
        sf, tf_ = _prep_bn(params["final"]["bn"], bn_eps)
        return _final_call(out, sf, tf_, use_bn=use_bn)

    return forward


def init_params(key, in_channels, base_filters, kernel_size, cfgs):
    K = kernel_size
    keys = jax.random.split(key, 4 + 4 * len(cfgs))
    it = iter(keys)

    def conv_init(k, c_out, c_in):
        kw, kb = jax.random.split(k)
        bound = 1.0 / math.sqrt(c_in * K)
        w = jax.random.uniform(kw, (c_out, c_in, K), jnp.float32, -bound, bound)
        b = jax.random.uniform(kb, (c_out,), jnp.float32, -bound, bound)
        return w, b

    def bn_init(k, c):
        k1, k2, k3, k4 = jax.random.split(k, 4)
        return dict(gamma=1.0 + 0.1 * jax.random.normal(k1, (c,), jnp.float32),
                    beta=0.1 * jax.random.normal(k2, (c,), jnp.float32),
                    mean=0.1 * jax.random.normal(k3, (c,), jnp.float32),
                    var=jax.random.uniform(k4, (c,), jnp.float32, 0.5, 1.5))

    w, b = conv_init(next(it), base_filters, in_channels)
    first = dict(w=w, b=b, bn=bn_init(next(it), base_filters))
    blocks = []
    for cfg in cfgs:
        w1, b1 = conv_init(next(it), cfg["out_ch"], cfg["in_ch"])
        w2, b2 = conv_init(next(it), cfg["out_ch"], cfg["out_ch"])
        blocks.append(dict(w1=w1, b1=b1, bn1=bn_init(next(it), cfg["in_ch"]),
                           w2=w2, b2=b2, bn2=bn_init(next(it), cfg["out_ch"])))
    final = dict(bn=bn_init(next(it), cfgs[-1]["out_ch"]))
    return dict(first=first, blocks=blocks, final=final)


# ----------------------------------------------------------------------------
# Pure-JAX reference (same eval-mode semantics as the kernels).
# ----------------------------------------------------------------------------

def ref_conv1d_same(x, w, b, stride):
    B, C_in, L = x.shape
    K = w.shape[-1]
    _, pad_left, pad_right = same_pad_amount(L, K, stride)
    xp = jnp.pad(x, ((0, 0), (0, 0), (pad_left, pad_right)))
    y = lax.conv_general_dilated(xp, w, window_strides=(stride,), padding="VALID",
                                 dimension_numbers=("NCH", "OIH", "NCH"))
    return y + b[None, :, None]


def ref_forward(x, params, cfgs, K, use_bn=True, eps=1e-5):
    pf = params["first"]
    out = ref_conv1d_same(x, pf["w"], pf["b"], 1)
    if use_bn:
        s, t = bn_scale_shift(pf["bn"], eps)
        out = out * s[None, :, None] + t[None, :, None]
    out = jnp.maximum(out, 0.0)
    for cfg, bp in zip(cfgs, params["blocks"]):
        identity = out
        h = out
        if not cfg["is_first"]:
            if use_bn:
                s1, t1 = bn_scale_shift(bp["bn1"], eps)
                h = h * s1[None, :, None] + t1[None, :, None]
            h = jnp.maximum(h, 0.0)
        h = ref_conv1d_same(h, bp["w1"], bp["b1"], cfg["stride"])
        if use_bn:
            s2, t2 = bn_scale_shift(bp["bn2"], eps)
            h = h * s2[None, :, None] + t2[None, :, None]
        h = jnp.maximum(h, 0.0)
        h = ref_conv1d_same(h, bp["w2"], bp["b2"], 1)
        if cfg["downsample"]:
            identity = maxpool1d_same(identity, cfg["stride"])
        if cfg["out_ch"] != cfg["in_ch"]:
            ch1 = (cfg["out_ch"] - cfg["in_ch"]) // 2
            ch2 = cfg["out_ch"] - cfg["in_ch"] - ch1
            identity = jnp.pad(identity, ((0, 0), (ch1, ch2), (0, 0)))
        out = h + identity
    if use_bn:
        sf, tf_ = bn_scale_shift(params["final"]["bn"], eps)
        out = out * sf[None, :, None] + tf_[None, :, None]
    out = jnp.maximum(out, 0.0)
    return out, out.mean(-1)


if __name__ == "__main__":
    # Small ResNet1D config, shapes consistent with the module's forward.
    B, in_channels, L = 4, 4, 128
    base_filters, kernel_size, stride, groups = 32, 7, 2, 1
    n_block, downsample_gap, increasefilter_gap = 3, 2, 2
    use_bn = True

    assert groups == 1  # TODO(synk): grouped conv (groups > 1) not implemented.

    cfgs = build_block_cfgs(base_filters, n_block, downsample_gap, increasefilter_gap, stride)
    key = jax.random.PRNGKey(0)
    kx, kp = jax.random.split(key)
    x = jax.random.normal(kx, (B, in_channels, L), jnp.float32)
    params = init_params(kp, in_channels, base_filters, kernel_size, cfgs)

    forward = make_forward(cfgs, kernel_size, use_bn=use_bn)
    out, out_llm = forward(x, params)
    jax.block_until_ready((out, out_llm))

    # Reference forward (pure JAX / XLA) with identical eval-mode semantics.
    r_out, r_llm = ref_forward(x, params, cfgs, kernel_size, use_bn=use_bn)

    assert out.shape == r_out.shape, (out.shape, r_out.shape)
    assert out_llm.shape == r_llm.shape, (out_llm.shape, r_llm.shape)
    assert jnp.allclose(out, r_out, atol=2e-3, rtol=2e-3), \
        float(jnp.max(jnp.abs(out - r_out)))
    assert jnp.allclose(out_llm, r_llm, atol=2e-3, rtol=2e-3), \
        float(jnp.max(jnp.abs(out_llm - r_llm)))

    print("KERNEL_OK")
</pallas_src>

<mosaic_0001>
module attributes {stable_mosaic.version = 11 : i64} {
  func.func @_first_conv_kernel(%arg0: i32, %arg1: memref<1x4x128xf32, #tpu.memory_space<vmem>>, %arg2: memref<7x32x4xf32, #tpu.memory_space<vmem>>, %arg3: memref<32x1xf32, #tpu.memory_space<vmem>>, %arg4: memref<32x1xf32, #tpu.memory_space<vmem>>, %arg5: memref<32x1xf32, #tpu.memory_space<vmem>>, %arg6: memref<1x32x128xf32, #tpu.memory_space<vmem>>, %arg7: memref<8x134xf32, #tpu.memory_space<vmem>>) attributes {dimension_semantics = [#tpu.dimension_semantics<parallel>], iteration_bounds = array<i64: 4>, scalar_prefetch = 0 : i64, scratch_operands = 1 : i64, tpu.core_type = #tpu.core_type<tc>, window_params = [{transform_indices = @transform_0, window_bounds = array<i64: 1, 4, 128>}, {pipeline_mode = #tpu.pipeline_mode<synchronous>, transform_indices = @transform_1, window_bounds = array<i64: 7, 32, 4>}, {pipeline_mode = #tpu.pipeline_mode<synchronous>, transform_indices = @transform_2, window_bounds = array<i64: 32, 1>}, {pipeline_mode = #tpu.pipeline_mode<synchronous>, transform_indices = @transform_3, window_bounds = array<i64: 32, 1>}, {pipeline_mode = #tpu.pipeline_mode<synchronous>, transform_indices = @transform_4, window_bounds = array<i64: 32, 1>}, {transform_indices = @transform_5, window_bounds = array<i64: 1, 32, 128>}]} {
    %c0 = arith.constant 0 : index
    %c0_0 = arith.constant 0 : index
    %c0_1 = arith.constant 0 : index
    %0 = vector.load %arg1[%c0, %c0_0, %c0_1] : memref<1x4x128xf32, #tpu.memory_space<vmem>>, vector<1x4x128xf32>
    %1 = vector.shape_cast %0 : vector<1x4x128xf32> to vector<4x128xf32>
    %cst = arith.constant 0.000000e+00 : f32
    %2 = vector.broadcast %cst : f32 to vector<4x134xf32>
    %c0_2 = arith.constant 0 : index
    %c0_3 = arith.constant 0 : index
    %3 = vector.load %arg7[%c0_2, %c0_3] : memref<8x134xf32, #tpu.memory_space<vmem>>, vector<4x134xf32>
    tpu.vector_store %arg7[%c0_2, %c0_3], %2 {strides = array<i32>} : memref<8x134xf32, #tpu.memory_space<vmem>>, vector<4x134xf32>,
    %c0_4 = arith.constant 0 : index
    %c3 = arith.constant 3 : index
    %4 = vector.load %arg7[%c0_4, %c3] : memref<8x134xf32, #tpu.memory_space<vmem>>, vector<4x128xf32>
    tpu.vector_store %arg7[%c0_4, %c3], %1 {strides = array<i32>} : memref<8x134xf32, #tpu.memory_space<vmem>>, vector<4x128xf32>,
    %cst_5 = arith.constant 0.000000e+00 : f32
    %5 = vector.broadcast %cst_5 : f32 to vector<32x128xf32>
    %c0_6 = arith.constant 0 : index
    %c0_7 = arith.constant 0 : index
    %c0_8 = arith.constant 0 : index
    %6 = vector.load %arg2[%c0_6, %c0_7, %c0_8] : memref<7x32x4xf32, #tpu.memory_space<vmem>>, vector<1x32x4xf32>
    %7 = vector.shape_cast %6 : vector<1x32x4xf32> to vector<32x4xf32>
    %c0_9 = arith.constant 0 : index
    %c0_10 = arith.constant 0 : index
    %8 = vector.load %arg7[%c0_9, %c0_10] : memref<8x134xf32, #tpu.memory_space<vmem>>, vector<4x128xf32>
    %cst_11 = arith.constant dense<0.000000e+00> : vector<32x128xf32>
    %9 = tpu.matmul %7, %8, %cst_11 {dimension_numbers = #tpu.dot_dimension_numbers<[1], [0], [0], [1], [0, 0, 1, 1], [], []>} : vector<32x4xf32>, vector<4x128xf32>, vector<32x128xf32> -> vector<32x128xf32>
    %10 = arith.addf %5, %9 : vector<32x128xf32>
    %c1 = arith.constant 1 : index
    %c0_12 = arith.constant 0 : index
    %c0_13 = arith.constant 0 : index
    %11 = vector.load %arg2[%c1, %c0_12, %c0_13] : memref<7x32x4xf32, #tpu.memory_space<vmem>>, vector<1x32x4xf32>
    %12 = vector.shape_cast %11 : vector<1x32x4xf32> to vector<32x4xf32>
    %c0_14 = arith.constant 0 : index
    %c1_15 = arith.constant 1 : index
    %13 = vector.load %arg7[%c0_14, %c1_15] : memref<8x134xf32, #tpu.memory_space<vmem>>, vector<4x128xf32>
    %cst_16 = arith.constant dense<0.000000e+00> : vector<32x128xf32>
    %14 = tpu.matmul %12, %13, %cst_16 {dimension_numbers = #tpu.dot_dimension_numbers<[1], [0], [0], [1], [0, 0, 1, 1], [], []>} : vector<32x4xf32>, vector<4x128xf32>, vector<32x128xf32> -> vector<32x128xf32>
    %15 = arith.addf %10, %14 : vector<32x128xf32>
    %c2 = arith.constant 2 : index
    %c0_17 = arith.constant 0 : index
    %c0_18 = arith.constant 0 : index
    %16 = vector.load %arg2[%c2, %c0_17, %c0_18] : memref<7x32x4xf32, #tpu.memory_space<vmem>>, vector<1x32x4xf32>
    %17 = vector.shape_cast %16 : vector<1x32x4xf32> to vector<32x4xf32>
    %c0_19 = arith.constant 0 : index
    %c2_20 = arith.constant 2 : index
    %18 = vector.load %arg7[%c0_19, %c2_20] : memref<8x134xf32, #tpu.memory_space<vmem>>, vector<4x128xf32>
    %cst_21 = arith.constant dense<0.000000e+00> : vector<32x128xf32>
    %19 = tpu.matmul %17, %18, %cst_21 {dimension_numbers = #tpu.dot_dimension_numbers<[1], [0], [0], [1], [0, 0, 1, 1], [], []>} : vector<32x4xf32>, vector<4x128xf32>, vector<32x128xf32> -> vector<32x128xf32>
    %20 = arith.addf %15, %19 : vector<32x128xf32>
    %c3_22 = arith.constant 3 : index
    %c0_23 = arith.constant 0 : index
    %c0_24 = arith.constant 0 : index
    %21 = vector.load %arg2[%c3_22, %c0_23, %c0_24] : memref<7x32x4xf32, #tpu.memory_space<vmem>>, vector<1x32x4xf32>
    %22 = vector.shape_cast %21 : vector<1x32x4xf32> to vector<32x4xf32>
    %c0_25 = arith.constant 0 : index
    %c3_26 = arith.constant 3 : index
    %23 = vector.load %arg7[%c0_25, %c3_26] : memref<8x134xf32, #tpu.memory_space<vmem>>, vector<4x128xf32>
    %cst_27 = arith.constant dense<0.000000e+00> : vector<32x128xf32>
    %24 = tpu.matmul %22, %23, %cst_27 {dimension_numbers = #tpu.dot_dimension_numbers<[1], [0], [0], [1], [0, 0, 1, 1], [], []>} : vector<32x4xf32>, vector<4x128xf32>, vector<32x128xf32> -> vector<32x128xf32>
    %25 = arith.addf %20, %24 : vector<32x128xf32>
    %c4 = arith.constant 4 : index
    %c0_28 = arith.constant 0 : index
    %c0_29 = arith.constant 0 : index
    %26 = vector.load %arg2[%c4, %c0_28, %c0_29] : memref<7x32x4xf32, #tpu.memory_space<vmem>>, vector<1x32x4xf32>
    %27 = vector.shape_cast %26 : vector<1x32x4xf32> to vector<32x4xf32>
    %c0_30 = arith.constant 0 : index
    %c4_31 = arith.constant 4 : index
    %28 = vector.load %arg7[%c0_30, %c4_31] : memref<8x134xf32, #tpu.memory_space<vmem>>, vector<4x128xf32>
    %cst_32 = arith.constant dense<0.000000e+00> : vector<32x128xf32>
    %29 = tpu.matmul %27, %28, %cst_32 {dimension_numbers = #tpu.dot_dimension_numbers<[1], [0], [0], [1], [0, 0, 1, 1], [], []>} : vector<32x4xf32>, vector<4x128xf32>, vector<32x128xf32> -> vector<32x128xf32>
    %30 = arith.addf %25, %29 : vector<32x128xf32>
    %c5 = arith.constant 5 : index
    %c0_33 = arith.constant 0 : index
    %c0_34 = arith.constant 0 : index
    %31 = vector.load %arg2[%c5, %c0_33, %c0_34] : memref<7x32x4xf32, #tpu.memory_space<vmem>>, vector<1x32x4xf32>
    %32 = vector.shape_cast %31 : vector<1x32x4xf32> to vector<32x4xf32>
    %c0_35 = arith.constant 0 : index
    %c5_36 = arith.constant 5 : index
    %33 = vector.load %arg7[%c0_35, %c5_36] : memref<8x134xf32, #tpu.memory_space<vmem>>, vector<4x128xf32>
    %cst_37 = arith.constant dense<0.000000e+00> : vector<32x128xf32>
    %34 = tpu.matmul %32, %33, %cst_37 {dimension_numbers = #tpu.dot_dimension_numbers<[1], [0], [0], [1], [0, 0, 1, 1], [], []>} : vector<32x4xf32>, vector<4x128xf32>, vector<32x128xf32> -> vector<32x128xf32>
    %35 = arith.addf %30, %34 : vector<32x128xf32>
    %c6 = arith.constant 6 : index
    %c0_38 = arith.constant 0 : index
    %c0_39 = arith.constant 0 : index
    %36 = vector.load %arg2[%c6, %c0_38, %c0_39] : memref<7x32x4xf32, #tpu.memory_space<vmem>>, vector<1x32x4xf32>
    %37 = vector.shape_cast %36 : vector<1x32x4xf32> to vector<32x4xf32>
    %c0_40 = arith.constant 0 : index
    %c6_41 = arith.constant 6 : index
    %38 = vector.load %arg7[%c0_40, %c6_41] : memref<8x134xf32, #tpu.memory_space<vmem>>, vector<4x128xf32>
    %cst_42 = arith.constant dense<0.000000e+00> : vector<32x128xf32>
    %39 = tpu.matmul %37, %38, %cst_42 {dimension_numbers = #tpu.dot_dimension_numbers<[1], [0], [0], [1], [0, 0, 1, 1], [], []>} : vector<32x4xf32>, vector<4x128xf32>, vector<32x128xf32> -> vector<32x128xf32>
    %40 = arith.addf %35, %39 : vector<32x128xf32>
    %c0_43 = arith.constant 0 : index
    %c0_44 = arith.constant 0 : index
    %41 = vector.load %arg3[%c0_43, %c0_44] : memref<32x1xf32, #tpu.memory_space<vmem>>, vector<32x1xf32>
    %42 = vector.broadcast %41 : vector<32x1xf32> to vector<32x128xf32>
    %43 = arith.addf %40, %42 : vector<32x128xf32>
    %c0_45 = arith.constant 0 : index
    %c0_46 = arith.constant 0 : index
    %44 = vector.load %arg4[%c0_45, %c0_46] : memref<32x1xf32, #tpu.memory_space<vmem>>, vector<32x1xf32>
    %45 = vector.broadcast %44 : vector<32x1xf32> to vector<32x128xf32>
    %46 = arith.mulf %43, %45 : vector<32x128xf32>
    %c0_47 = arith.constant 0 : index
    %c0_48 = arith.constant 0 : index
    %47 = vector.load %arg5[%c0_47, %c0_48] : memref<32x1xf32, #tpu.memory_space<vmem>>, vector<32x1xf32>
    %48 = vector.broadcast %47 : vector<32x1xf32> to vector<32x128xf32>
    %49 = arith.addf %46, %48 : vector<32x128xf32>
    %cst_49 = arith.constant 0.000000e+00 : f32
    %50 = vector.broadcast %cst_49 : f32 to vector<32x128xf32>
    %51 = arith.maximumf %49, %50 : vector<32x128xf32>
    %c0_50 = arith.constant 0 : index
    %c0_51 = arith.constant 0 : index
    %c0_52 = arith.constant 0 : index
    %52 = vector.load %arg6[%c0_50, %c0_51, %c0_52] : memref<1x32x128xf32, #tpu.memory_space<vmem>>, vector<1x32x128xf32>
    %53 = vector.shape_cast %52 : vector<1x32x128xf32> to vector<32x128xf32>
    %54 = vector.shape_cast %51 : vector<32x128xf32> to vector<1x32x128xf32>
    tpu.vector_store %arg6[%c0_50, %c0_51, %c0_52], %54 {strides = array<i32>} : memref<1x32x128xf32, #tpu.memory_space<vmem>>, vector<1x32x128xf32>,
    return
  }
  func.func @transform_0(%arg0: i32) -> (i32, i32, i32) {
    %c0_i32 = arith.constant 0 : i32
    %c0_i32_0 = arith.constant 0 : i32
    %c0_i32_1 = arith.constant 0 : i32
    return %arg0, %c0_i32, %c0_i32_0 : i32, i32, i32
  }
  func.func @transform_1(%arg0: i32) -> (i32, i32, i32) {
    %c0_i32 = arith.constant 0 : i32
    %c0_i32_0 = arith.constant 0 : i32
    %c0_i32_1 = arith.constant 0 : i32
    %c0_i32_2 = arith.constant 0 : i32
    return %c0_i32, %c0_i32_0, %c0_i32_1 : i32, i32, i32
  }
  func.func @transform_2(%arg0: i32) -> (i32, i32) {
    %c0_i32 = arith.constant 0 : i32
    %c0_i32_0 = arith.constant 0 : i32
    %c0_i32_1 = arith.constant 0 : i32
    return %c0_i32, %c0_i32_0 : i32, i32
  }
  func.func @transform_3(%arg0: i32) -> (i32, i32) {
    %c0_i32 = arith.constant 0 : i32
    %c0_i32_0 = arith.constant 0 : i32
    %c0_i32_1 = arith.constant 0 : i32
    return %c0_i32, %c0_i32_0 : i32, i32
  }
  func.func @transform_4(%arg0: i32) -> (i32, i32) {
    %c0_i32 = arith.constant 0 : i32
    %c0_i32_0 = arith.constant 0 : i32
    %c0_i32_1 = arith.constant 0 : i32
    return %c0_i32, %c0_i32_0 : i32, i32
  }
  func.func @transform_5(%arg0: i32) -> (i32, i32, i32) {
    %c0_i32 = arith.constant 0 : i32
    %c0_i32_0 = arith.constant 0 : i32
    %c0_i32_1 = arith.constant 0 : i32
    return %arg0, %c0_i32, %c0_i32_0 : i32, i32, i32
  }
}

module attributes {stable_mosaic.version = 11 : i64} {
  func.func @_block_kernel_s1(%arg0: i32, %arg1: memref<1x32x128xf32, #tpu.memory_space<vmem>>, %arg2: memref<32x1xf32, #tpu.memory_space<vmem>>, %arg3: memref<32x1xf32, #tpu.memory_space<vmem>>, %arg4: memref<7x32x32xf32, #tpu.memory_space<vmem>>, %arg5: memref<32x1xf32, #tpu.memory_space<vmem>>, %arg6: memref<32x1xf32, #tpu.memory_space<vmem>>, %arg7: memref<32x1xf32, #tpu.memory_space<vmem>>, %arg8: memref<7x32x32xf32, #tpu.memory_space<vmem>>, %arg9: memref<32x1xf32, #tpu.memory_space<vmem>>, %arg10: memref<1x32x128xf32, #tpu.memory_space<vmem>>, %arg11: memref<32x134xf32, #tpu.memory_space<vmem>>, %arg12: memref<32x134xf32, #tpu.memory_space<vmem>>) attributes {dimension_semantics = [#tpu.dimension_semantics<parallel>], iteration_bounds = array<i64: 4>, scalar_prefetch = 0 : i64, scratch_operands = 2 : i64, tpu.core_type = #tpu.core_type<tc>, window_params = [{transform_indices = @transform_0, window_bounds = array<i64: 1, 32, 128>}, {pipeline_mode = #tpu.pipeline_mode<synchronous>, transform_indices = @transform_1, window_bounds = array<i64: 32, 1>}, {pipeline_mode = #tpu.pipeline_mode<synchronous>, transform_indices = @transform_2, window_bounds = array<i64: 32, 1>}, {pipeline_mode = #tpu.pipeline_mode<synchronous>, transform_indices = @transform_3, window_bounds = array<i64: 7, 32, 32>}, {pipeline_mode = #tpu.pipeline_mode<synchronous>, transform_indices = @transform_4, window_bounds = array<i64: 32, 1>}, {pipeline_mode = #tpu.pipeline_mode<synchronous>, transform_indices = @transform_5, window_bounds = array<i64: 32, 1>}, {pipeline_mode = #tpu.pipeline_mode<synchronous>, transform_indices = @transform_6, window_bounds = array<i64: 32, 1>}, {pipeline_mode = #tpu.pipeline_mode<synchronous>, transform_indices = @transform_7, window_bounds = array<i64: 7, 32, 32>}, {pipeline_mode = #tpu.pipeline_mode<synchronous>, transform_indices = @transform_8, window_bounds = array<i64: 32, 1>}, {transform_indices = @transform_9, window_bounds = array<i64: 1, 32, 128>}]} {
    %c0 = arith.constant 0 : index
    %c0_0 = arith.constant 0 : index
    %c0_1 = arith.constant 0 : index
    %0 = vector.load %arg1[%c0, %c0_0, %c0_1] : memref<1x32x128xf32, #tpu.memory_space<vmem>>, vector<1x32x128xf32>
    %1 = vector.shape_cast %0 : vector<1x32x128xf32> to vector<32x128xf32>
    %cst = arith.constant 0.000000e+00 : f32
    %2 = vector.broadcast %cst : f32 to vector<32x134xf32>
    %c0_2 = arith.constant 0 : index
    %c0_3 = arith.constant 0 : index
    %3 = vector.load %arg11[%c0_2, %c0_3] : memref<32x134xf32, #tpu.memory_space<vmem>>, vector<32x134xf32>
    tpu.vector_store %arg11[%c0_2, %c0_3], %2 {strides = array<i32>} : memref<32x134xf32, #tpu.memory_space<vmem>>, vector<32x134xf32>,
    %c0_4 = arith.constant 0 : index
    %c3 = arith.constant 3 : index
    %4 = vector.load %arg11[%c0_4, %c3] : memref<32x134xf32, #tpu.memory_space<vmem>>, vector<32x128xf32>
    tpu.vector_store %arg11[%c0_4, %c3], %1 {strides = array<i32>} : memref<32x134xf32, #tpu.memory_space<vmem>>, vector<32x128xf32>,
    %cst_5 = arith.constant 0.000000e+00 : f32
    %5 = vector.broadcast %cst_5 : f32 to vector<32x128xf32>
    %c0_6 = arith.constant 0 : index
    %c0_7 = arith.constant 0 : index
    %c0_8 = arith.constant 0 : index
    %6 = vector.load %arg4[%c0_6, %c0_7, %c0_8] : memref<7x32x32xf32, #tpu.memory_space<vmem>>, vector<1x32x32xf32>
    %7 = vector.shape_cast %6 : vector<1x32x32xf32> to vector<32x32xf32>
    %c0_9 = arith.constant 0 : index
    %c0_10 = arith.constant 0 : index
    %8 = vector.load %arg11[%c0_9, %c0_10] : memref<32x134xf32, #tpu.memory_space<vmem>>, vector<32x128xf32>
    %cst_11 = arith.constant dense<0.000000e+00> : vector<32x128xf32>
    %9 = tpu.matmul %7, %8, %cst_11 {dimension_numbers = #tpu.dot_dimension_numbers<[1], [0], [0], [1], [0, 0, 1, 1], [], []>} : vector<32x32xf32>, vector<32x128xf32>, vector<32x128xf32> -> vector<32x128xf32>
    %10 = arith.addf %5, %9 : vector<32x128xf32>
    %c1 = arith.constant 1 : index
    %c0_12 = arith.constant 0 : index
    %c0_13 = arith.constant 0 : index
    %11 = vector.load %arg4[%c1, %c0_12, %c0_13] : memref<7x32x32xf32, #tpu.memory_space<vmem>>, vector<1x32x32xf32>
    %12 = vector.shape_cast %11 : vector<1x32x32xf32> to vector<32x32xf32>
    %c0_14 = arith.constant 0 : index
    %c1_15 = arith.constant 1 : index
    %13 = vector.load %arg11[%c0_14, %c1_15] : memref<32x134xf32, #tpu.memory_space<vmem>>, vector<32x128xf32>
    %cst_16 = arith.constant dense<0.000000e+00> : vector<32x128xf32>
    %14 = tpu.matmul %12, %13, %cst_16 {dimension_numbers = #tpu.dot_dimension_numbers<[1], [0], [0], [1], [0, 0, 1, 1], [], []>} : vector<32x32xf32>, vector<32x128xf32>, vector<32x128xf32> -> vector<32x128xf32>
    %15 = arith.addf %10, %14 : vector<32x128xf32>
    %c2 = arith.constant 2 : index
    %c0_17 = arith.constant 0 : index
    %c0_18 = arith.constant 0 : index
    %16 = vector.load %arg4[%c2, %c0_17, %c0_18] : memref<7x32x32xf32, #tpu.memory_space<vmem>>, vector<1x32x32xf32>
    %17 = vector.shape_cast %16 : vector<1x32x32xf32> to vector<32x32xf32>
    %c0_19 = arith.constant 0 : index
    %c2_20 = arith.constant 2 : index
    %18 = vector.load %arg11[%c0_19, %c2_20] : memref<32x134xf32, #tpu.memory_space<vmem>>, vector<32x128xf32>
    %cst_21 = arith.constant dense<0.000000e+00> : vector<32x128xf32>
    %19 = tpu.matmul %17, %18, %cst_21 {dimension_numbers = #tpu.dot_dimension_numbers<[1], [0], [0], [1], [0, 0, 1, 1], [], []>} : vector<32x32xf32>, vector<32x128xf32>, vector<32x128xf32> -> vector<32x128xf32>
    %20 = arith.addf %15, %19 : vector<32x128xf32>
    %c3_22 = arith.constant 3 : index
    %c0_23 = arith.constant 0 : index
    %c0_24 = arith.constant 0 : index
    %21 = vector.load %arg4[%c3_22, %c0_23, %c0_24] : memref<7x32x32xf32, #tpu.memory_space<vmem>>, vector<1x32x32xf32>
    %22 = vector.shape_cast %21 : vector<1x32x32xf32> to vector<32x32xf32>
    %c0_25 = arith.constant 0 : index
    %c3_26 = arith.constant 3 : index
    %23 = vector.load %arg11[%c0_25, %c3_26] : memref<32x134xf32, #tpu.memory_space<vmem>>, vector<32x128xf32>
    %cst_27 = arith.constant dense<0.000000e+00> : vector<32x128xf32>
    %24 = tpu.matmul %22, %23, %cst_27 {dimension_numbers = #tpu.dot_dimension_numbers<[1], [0], [0], [1], [0, 0, 1, 1], [], []>} : vector<32x32xf32>, vector<32x128xf32>, vector<32x128xf32> -> vector<32x128xf32>
    %25 = arith.addf %20, %24 : vector<32x128xf32>
    %c4 = arith.constant 4 : index
    %c0_28 = arith.constant 0 : index
    %c0_29 = arith.constant 0 : index
    %26 = vector.load %arg4[%c4, %c0_28, %c0_29] : memref<7x32x32xf32, #tpu.memory_space<vmem>>, vector<1x32x32xf32>
    %27 = vector.shape_cast %26 : vector<1x32x32xf32> to vector<32x32xf32>
    %c0_30 = arith.constant 0 : index
    %c4_31 = arith.constant 4 : index
    %28 = vector.load %arg11[%c0_30, %c4_31] : memref<32x134xf32, #tpu.memory_space<vmem>>, vector<32x128xf32>
    %cst_32 = arith.constant dense<0.000000e+00> : vector<32x128xf32>
    %29 = tpu.matmul %27, %28, %cst_32 {dimension_numbers = #tpu.dot_dimension_numbers<[1], [0], [0], [1], [0, 0, 1, 1], [], []>} : vector<32x32xf32>, vector<32x128xf32>, vector<32x128xf32> -> vector<32x128xf32>
    %30 = arith.addf %25, %29 : vector<32x128xf32>
    %c5 = arith.constant 5 : index
    %c0_33 = arith.constant 0 : index
    %c0_34 = arith.constant 0 : index
    %31 = vector.load %arg4[%c5, %c0_33, %c0_34] : memref<7x32x32xf32, #tpu.memory_space<vmem>>, vector<1x32x32xf32>
    %32 = vector.shape_cast %31 : vector<1x32x32xf32> to vector<32x32xf32>
    %c0_35 = arith.constant 0 : index
    %c5_36 = arith.constant 5 : index
    %33 = vector.load %arg11[%c0_35, %c5_36] : memref<32x134xf32, #tpu.memory_space<vmem>>, vector<32x128xf32>
    %cst_37 = arith.constant dense<0.000000e+00> : vector<32x128xf32>
    %34 = tpu.matmul %32, %33, %cst_37 {dimension_numbers = #tpu.dot_dimension_numbers<[1], [0], [0], [1], [0, 0, 1, 1], [], []>} : vector<32x32xf32>, vector<32x128xf32>, vector<32x128xf32> -> vector<32x128xf32>
    %35 = arith.addf %30, %34 : vector<32x128xf32>
    %c6 = arith.constant 6 : index
    %c0_38 = arith.constant 0 : index
    %c0_39 = arith.constant 0 : index
    %36 = vector.load %arg4[%c6, %c0_38, %c0_39] : memref<7x32x32xf32, #tpu.memory_space<vmem>>, vector<1x32x32xf32>
    %37 = vector.shape_cast %36 : vector<1x32x32xf32> to vector<32x32xf32>
    %c0_40 = arith.constant 0 : index
    %c6_41 = arith.constant 6 : index
    %38 = vector.load %arg11[%c0_40, %c6_41] : memref<32x134xf32, #tpu.memory_space<vmem>>, vector<32x128xf32>
    %cst_42 = arith.constant dense<0.000000e+00> : vector<32x128xf32>
    %39 = tpu.matmul %37, %38, %cst_42 {dimension_numbers = #tpu.dot_dimension_numbers<[1], [0], [0], [1], [0, 0, 1, 1], [], []>} : vector<32x32xf32>, vector<32x128xf32>, vector<32x128xf32> -> vector<32x128xf32>
    %40 = arith.addf %35, %39 : vector<32x128xf32>
    %c0_43 = arith.constant 0 : index
    %c0_44 = arith.constant 0 : index
    %41 = vector.load %arg5[%c0_43, %c0_44] : memref<32x1xf32, #tpu.memory_space<vmem>>, vector<32x1xf32>
    %42 = vector.broadcast %41 : vector<32x1xf32> to vector<32x128xf32>
    %43 = arith.addf %40, %42 : vector<32x128xf32>
    %c0_45 = arith.constant 0 : index
    %c0_46 = arith.constant 0 : index
    %44 = vector.load %arg6[%c0_45, %c0_46] : memref<32x1xf32, #tpu.memory_space<vmem>>, vector<32x1xf32>
    %45 = vector.broadcast %44 : vector<32x1xf32> to vector<32x128xf32>
    %46 = arith.mulf %43, %45 : vector<32x128xf32>
    %c0_47 = arith.constant 0 : index
    %c0_48 = arith.constant 0 : index
    %47 = vector.load %arg7[%c0_47, %c0_48] : memref<32x1xf32, #tpu.memory_space<vmem>>, vector<32x1xf32>
    %48 = vector.broadcast %47 : vector<32x1xf32> to vector<32x128xf32>
    %49 = arith.addf %46, %48 : vector<32x128xf32>
    %cst_49 = arith.constant 0.000000e+00 : f32
    %50 = vector.broadcast %cst_49 : f32 to vector<32x128xf32>
    %51 = arith.maximumf %49, %50 : vector<32x128xf32>
    %cst_50 = arith.constant 0.000000e+00 : f32
    %52 = vector.broadcast %cst_50 : f32 to vector<32x134xf32>
    %c0_51 = arith.constant 0 : index
    %c0_52 = arith.constant 0 : index
    %53 = vector.load %arg12[%c0_51, %c0_52] : memref<32x134xf32, #tpu.memory_space<vmem>>, vector<32x134xf32>
    tpu.vector_store %arg12[%c0_51, %c0_52], %52 {strides = array<i32>} : memref<32x134xf32, #tpu.memory_space<vmem>>, vector<32x134xf32>,
    %c0_53 = arith.constant 0 : index
    %c3_54 = arith.constant 3 : index
    %54 = vector.load %arg12[%c0_53, %c3_54] : memref<32x134xf32, #tpu.memory_space<vmem>>, vector<32x128xf32>
    tpu.vector_store %arg12[%c0_53, %c3_54], %51 {strides = array<i32>} : memref<32x134xf32, #tpu.memory_space<vmem>>, vector<32x128xf32>,
    %cst_55 = arith.constant 0.000000e+00 : f32
    %55 = vector.broadcast %cst_55 : f32 to vector<32x128xf32>
    %c0_56 = arith.constant 0 : index
    %c0_57 = arith.constant 0 : index
    %c0_58 = arith.constant 0 : index
    %56 = vector.load %arg8[%c0_56, %c0_57, %c0_58] : memref<7x32x32xf32, #tpu.memory_space<vmem>>, vector<1x32x32xf32>
    %57 = vector.shape_cast %56 : vector<1x32x32xf32> to vector<32x32xf32>
    %c0_59 = arith.constant 0 : index
    %c0_60 = arith.constant 0 : index
    %58 = vector.load %arg12[%c0_59, %c0_60] : memref<32x134xf32, #tpu.memory_space<vmem>>, vector<32x128xf32>
    %cst_61 = arith.constant dense<0.000000e+00> : vector<32x128xf32>
    %59 = tpu.matmul %57, %58, %cst_61 {dimension_numbers = #tpu.dot_dimension_numbers<[1], [0], [0], [1], [0, 0, 1, 1], [], []>} : vector<32x32xf32>, vector<32x128xf32>, vector<32x128xf32> -> vector<32x128xf32>
    %60 = arith.addf %55, %59 : vector<32x128xf32>
    %c1_62 = arith.constant 1 : index
    %c0_63 = arith.constant 0 : index
    %c0_64 = arith.constant 0 : index
    %61 = vector.load %arg8[%c1_62, %c0_63, %c0_64] : memref<7x32x32xf32, #tpu.memory_space<vmem>>, vector<1x32x32xf32>
    %62 = vector.shape_cast %61 : vector<1x32x32xf32> to vector<32x32xf32>
    %c0_65 = arith.constant 0 : index
    %c1_66 = arith.constant 1 : index
    %63 = vector.load %arg12[%c0_65, %c1_66] : memref<32x134xf32, #tpu.memory_space<vmem>>, vector<32x128xf32>
    %cst_67 = arith.constant dense<0.000000e+00> : vector<32x128xf32>
    %64 = tpu.matmul %62, %63, %cst_67 {dimension_numbers = #tpu.dot_dimension_numbers<[1], [0], [0], [1], [0, 0, 1, 1], [], []>} : vector<32x32xf32>, vector<32x128xf32>, vector<32x128xf32> -> vector<32x128xf32>
    %65 = arith.addf %60, %64 : vector<32x128xf32>
    %c2_68 = arith.constant 2 : index
    %c0_69 = arith.constant 0 : index
    %c0_70 = arith.constant 0 : index
    %66 = vector.load %arg8[%c2_68, %c0_69, %c0_70] : memref<7x32x32xf32, #tpu.memory_space<vmem>>, vector<1x32x32xf32>
    %67 = vector.shape_cast %66 : vector<1x32x32xf32> to vector<32x32xf32>
    %c0_71 = arith.constant 0 : index
    %c2_72 = arith.constant 2 : index
    %68 = vector.load %arg12[%c0_71, %c2_72] : memref<32x134xf32, #tpu.memory_space<vmem>>, vector<32x128xf32>
    %cst_73 = arith.constant dense<0.000000e+00> : vector<32x128xf32>
    %69 = tpu.matmul %67, %68, %cst_73 {dimension_numbers = #tpu.dot_dimension_numbers<[1], [0], [0], [1], [0, 0, 1, 1], [], []>} : vector<32x32xf32>, vector<32x128xf32>, vector<32x128xf32> -> vector<32x128xf32>
    %70 = arith.addf %65, %69 : vector<32x128xf32>
    %c3_74 = arith.constant 3 : index
    %c0_75 = arith.constant 0 : index
    %c0_76 = arith.constant 0 : index
    %71 = vector.load %arg8[%c3_74, %c0_75, %c0_76] : memref<7x32x32xf32, #tpu.memory_space<vmem>>, vector<1x32x32xf32>
    %72 = vector.shape_cast %71 : vector<1x32x32xf32> to vector<32x32xf32>
    %c0_77 = arith.constant 0 : index
    %c3_78 = arith.constant 3 : index
    %73 = vector.load %arg12[%c0_77, %c3_78] : memref<32x134xf32, #tpu.memory_space<vmem>>, vector<32x128xf32>
    %cst_79 = arith.constant dense<0.000000e+00> : vector<32x128xf32>
    %74 = tpu.matmul %72, %73, %cst_79 {dimension_numbers = #tpu.dot_dimension_numbers<[1], [0], [0], [1], [0, 0, 1, 1], [], []>} : vector<32x32xf32>, vector<32x128xf32>, vector<32x128xf32> -> vector<32x128xf32>
    %75 = arith.addf %70, %74 : vector<32x128xf32>
    %c4_80 = arith.constant 4 : index
    %c0_81 = arith.constant 0 : index
    %c0_82 = arith.constant 0 : index
    %76 = vector.load %arg8[%c4_80, %c0_81, %c0_82] : memref<7x32x32xf32, #tpu.memory_space<vmem>>, vector<1x32x32xf32>
    %77 = vector.shape_cast %76 : vector<1x32x32xf32> to vector<32x32xf32>
    %c0_83 = arith.constant 0 : index
    %c4_84 = arith.constant 4 : index
    %78 = vector.load %arg12[%c0_83, %c4_84] : memref<32x134xf32, #tpu.memory_space<vmem>>, vector<32x128xf32>
    %cst_85 = arith.constant dense<0.000000e+00> : vector<32x128xf32>
    %79 = tpu.matmul %77, %78, %cst_85 {dimension_numbers = #tpu.dot_dimension_numbers<[1], [0], [0], [1], [0, 0, 1, 1], [], []>} : vector<32x32xf32>, vector<32x128xf32>, vector<32x128xf32> -> vector<32x128xf32>
    %80 = arith.addf %75, %79 : vector<32x128xf32>
    %c5_86 = arith.constant 5 : index
    %c0_87 = arith.constant 0 : index
    %c0_88 = arith.constant 0 : index
    %81 = vector.load %arg8[%c5_86, %c0_87, %c0_88] : memref<7x32x32xf32, #tpu.memory_space<vmem>>, vector<1x32x32xf32>
    %82 = vector.shape_cast %81 : vector<1x32x32xf32> to vector<32x32xf32>
    %c0_89 = arith.constant 0 : index
    %c5_90 = arith.constant 5 : index
    %83 = vector.load %arg12[%c0_89, %c5_90] : memref<32x134xf32, #tpu.memory_space<vmem>>, vector<32x128xf32>
    %cst_91 = arith.constant dense<0.000000e+00> : vector<32x128xf32>
    %84 = tpu.matmul %82, %83, %cst_91 {dimension_numbers = #tpu.dot_dimension_numbers<[1], [0], [0], [1], [0, 0, 1, 1], [], []>} : vector<32x32xf32>, vector<32x128xf32>, vector<32x128xf32> -> vector<32x128xf32>
    %85 = arith.addf %80, %84 : vector<32x128xf32>
    %c6_92 = arith.constant 6 : index
    %c0_93 = arith.constant 0 : index
    %c0_94 = arith.constant 0 : index
    %86 = vector.load %arg8[%c6_92, %c0_93, %c0_94] : memref<7x32x32xf32, #tpu.memory_space<vmem>>, vector<1x32x32xf32>
    %87 = vector.shape_cast %86 : vector<1x32x32xf32> to vector<32x32xf32>
    %c0_95 = arith.constant 0 : index
    %c6_96 = arith.constant 6 : index
    %88 = vector.load %arg12[%c0_95, %c6_96] : memref<32x134xf32, #tpu.memory_space<vmem>>, vector<32x128xf32>
    %cst_97 = arith.constant dense<0.000000e+00> : vector<32x128xf32>
    %89 = tpu.matmul %87, %88, %cst_97 {dimension_numbers = #tpu.dot_dimension_numbers<[1], [0], [0], [1], [0, 0, 1, 1], [], []>} : vector<32x32xf32>, vector<32x128xf32>, vector<32x128xf32> -> vector<32x128xf32>
    %90 = arith.addf %85, %89 : vector<32x128xf32>
    %c0_98 = arith.constant 0 : index
    %c0_99 = arith.constant 0 : index
    %91 = vector.load %arg9[%c0_98, %c0_99] : memref<32x1xf32, #tpu.memory_space<vmem>>, vector<32x1xf32>
    %92 = vector.broadcast %91 : vector<32x1xf32> to vector<32x128xf32>
    %93 = arith.addf %90, %92 : vector<32x128xf32>
    %94 = arith.addf %93, %1 : vector<32x128xf32>
    %c0_100 = arith.constant 0 : index
    %c0_101 = arith.constant 0 : index
    %c0_102 = arith.constant 0 : index
    %95 = vector.load %arg10[%c0_100, %c0_101, %c0_102] : memref<1x32x128xf32, #tpu.memory_space<vmem>>, vector<1x32x128xf32>
    %96 = vector.shape_cast %95 : vector<1x32x128xf32> to vector<32x128xf32>
    %97 = vector.shape_cast %94 : vector<32x128xf32> to vector<1x32x128xf32>
    tpu.vector_store %arg10[%c0_100, %c0_101, %c0_102], %97 {strides = array<i32>} : memref<1x32x128xf32, #tpu.memory_space<vmem>>, vector<1x32x128xf32>,
    return
  }
  func.func @transform_0(%arg0: i32) -> (i32, i32, i32) {
    %c0_i32 = arith.constant 0 : i32
    %c0_i32_0 = arith.constant 0 : i32
    %c0_i32_1 = arith.constant 0 : i32
    return %arg0, %c0_i32, %c0_i32_0 : i32, i32, i32
  }
  func.func @transform_1(%arg0: i32) -> (i32, i32) {
    %c0_i32 = arith.constant 0 : i32
    %c0_i32_0 = arith.constant 0 : i32
    %c0_i32_1 = arith.constant 0 : i32
    return %c0_i32, %c0_i32_0 : i32, i32
  }
  func.func @transform_2(%arg0: i32) -> (i32, i32) {
    %c0_i32 = arith.constant 0 : i32
    %c0_i32_0 = arith.constant 0 : i32
    %c0_i32_1 = arith.constant 0 : i32
    return %c0_i32, %c0_i32_0 : i32, i32
  }
  func.func @transform_3(%arg0: i32) -> (i32, i32, i32) {
    %c0_i32 = arith.constant 0 : i32
    %c0_i32_0 = arith.constant 0 : i32
    %c0_i32_1 = arith.constant 0 : i32
    %c0_i32_2 = arith.constant 0 : i32
    return %c0_i32, %c0_i32_0, %c0_i32_1 : i32, i32, i32
  }
  func.func @transform_4(%arg0: i32) -> (i32, i32) {
    %c0_i32 = arith.constant 0 : i32
    %c0_i32_0 = arith.constant 0 : i32
    %c0_i32_1 = arith.constant 0 : i32
    return %c0_i32, %c0_i32_0 : i32, i32
  }
  func.func @transform_5(%arg0: i32) -> (i32, i32) {
    %c0_i32 = arith.constant 0 : i32
    %c0_i32_0 = arith.constant 0 : i32
    %c0_i32_1 = arith.constant 0 : i32
    return %c0_i32, %c0_i32_0 : i32, i32
  }
  func.func @transform_6(%arg0: i32) -> (i32, i32) {
    %c0_i32 = arith.constant 0 : i32
    %c0_i32_0 = arith.constant 0 : i32
    %c0_i32_1 = arith.constant 0 : i32
    return %c0_i32, %c0_i32_0 : i32, i32
  }
  func.func @transform_7(%arg0: i32) -> (i32, i32, i32) {
    %c0_i32 = arith.constant 0 : i32
    %c0_i32_0 = arith.constant 0 : i32
    %c0_i32_1 = arith.constant 0 : i32
    %c0_i32_2 = arith.constant 0 : i32
    return %c0_i32, %c0_i32_0, %c0_i32_1 : i32, i32, i32
  }
  func.func @transform_8(%arg0: i32) -> (i32, i32) {
    %c0_i32 = arith.constant 0 : i32
    %c0_i32_0 = arith.constant 0 : i32
    %c0_i32_1 = arith.constant 0 : i32
    return %c0_i32, %c0_i32_0 : i32, i32
  }
  func.func @transform_9(%arg0: i32) -> (i32, i32, i32) {
    %c0_i32 = arith.constant 0 : i32
    %c0_i32_0 = arith.constant 0 : i32
    %c0_i32_1 = arith.constant 0 : i32
    return %arg0, %c0_i32, %c0_i32_0 : i32, i32, i32
  }
}

module attributes {stable_mosaic.version = 11 : i64} {
  func.func @_block_kernel_strided(%arg0: i32, %arg1: memref<1x7x32x64xf32, #tpu.memory_space<vmem>>, %arg2: memref<1x32x64xf32, #tpu.memory_space<vmem>>, %arg3: memref<7x32x32xf32, #tpu.memory_space<vmem>>, %arg4: memref<32x1xf32, #tpu.memory_space<vmem>>, %arg5: memref<32x1xf32, #tpu.memory_space<vmem>>, %arg6: memref<32x1xf32, #tpu.memory_space<vmem>>, %arg7: memref<7x32x32xf32, #tpu.memory_space<vmem>>, %arg8: memref<32x1xf32, #tpu.memory_space<vmem>>, %arg9: memref<1x32x64xf32, #tpu.memory_space<vmem>>, %arg10: memref<32x70xf32, #tpu.memory_space<vmem>>) attributes {dimension_semantics = [#tpu.dimension_semantics<parallel>], iteration_bounds = array<i64: 4>, scalar_prefetch = 0 : i64, scratch_operands = 1 : i64, tpu.core_type = #tpu.core_type<tc>, window_params = [{transform_indices = @transform_0, window_bounds = array<i64: 1, 7, 32, 64>}, {transform_indices = @transform_1, window_bounds = array<i64: 1, 32, 64>}, {pipeline_mode = #tpu.pipeline_mode<synchronous>, transform_indices = @transform_2, window_bounds = array<i64: 7, 32, 32>}, {pipeline_mode = #tpu.pipeline_mode<synchronous>, transform_indices = @transform_3, window_bounds = array<i64: 32, 1>}, {pipeline_mode = #tpu.pipeline_mode<synchronous>, transform_indices = @transform_4, window_bounds = array<i64: 32, 1>}, {pipeline_mode = #tpu.pipeline_mode<synchronous>, transform_indices = @transform_5, window_bounds = array<i64: 32, 1>}, {pipeline_mode = #tpu.pipeline_mode<synchronous>, transform_indices = @transform_6, window_bounds = array<i64: 7, 32, 32>}, {pipeline_mode = #tpu.pipeline_mode<synchronous>, transform_indices = @transform_7, window_bounds = array<i64: 32, 1>}, {transform_indices = @transform_8, window_bounds = array<i64: 1, 32, 64>}]} {
    %cst = arith.constant 0.000000e+00 : f32
    %0 = vector.broadcast %cst : f32 to vector<32x64xf32>
    %c0 = arith.constant 0 : index
    %c0_0 = arith.constant 0 : index
    %c0_1 = arith.constant 0 : index
    %1 = vector.load %arg3[%c0, %c0_0, %c0_1] : memref<7x32x32xf32, #tpu.memory_space<vmem>>, vector<1x32x32xf32>
    %2 = vector.shape_cast %1 : vector<1x32x32xf32> to vector<32x32xf32>
    %c0_2 = arith.constant 0 : index
    %c0_3 = arith.constant 0 : index
    %c0_4 = arith.constant 0 : index
    %c0_5 = arith.constant 0 : index
    %3 = vector.load %arg1[%c0_2, %c0_3, %c0_4, %c0_5] : memref<1x7x32x64xf32, #tpu.memory_space<vmem>>, vector<1x1x32x64xf32>
    %4 = vector.shape_cast %3 : vector<1x1x32x64xf32> to vector<32x64xf32>
    %cst_6 = arith.constant dense<0.000000e+00> : vector<32x64xf32>
    %5 = tpu.matmul %2, %4, %cst_6 {dimension_numbers = #tpu.dot_dimension_numbers<[1], [0], [0], [1], [0, 0, 1, 1], [], []>} : vector<32x32xf32>, vector<32x64xf32>, vector<32x64xf32> -> vector<32x64xf32>
    %6 = arith.addf %0, %5 : vector<32x64xf32>
    %c1 = arith.constant 1 : index
    %c0_7 = arith.constant 0 : index
    %c0_8 = arith.constant 0 : index
    %7 = vector.load %arg3[%c1, %c0_7, %c0_8] : memref<7x32x32xf32, #tpu.memory_space<vmem>>, vector<1x32x32xf32>
    %8 = vector.shape_cast %7 : vector<1x32x32xf32> to vector<32x32xf32>
    %c0_9 = arith.constant 0 : index
    %c1_10 = arith.constant 1 : index
    %c0_11 = arith.constant 0 : index
    %c0_12 = arith.constant 0 : index
    %9 = vector.load %arg1[%c0_9, %c1_10, %c0_11, %c0_12] : memref<1x7x32x64xf32, #tpu.memory_space<vmem>>, vector<1x1x32x64xf32>
    %10 = vector.shape_cast %9 : vector<1x1x32x64xf32> to vector<32x64xf32>
    %cst_13 = arith.constant dense<0.000000e+00> : vector<32x64xf32>
    %11 = tpu.matmul %8, %10, %cst_13 {dimension_numbers = #tpu.dot_dimension_numbers<[1], [0], [0], [1], [0, 0, 1, 1], [], []>} : vector<32x32xf32>, vector<32x64xf32>, vector<32x64xf32> -> vector<32x64xf32>
    %12 = arith.addf %6, %11 : vector<32x64xf32>
    %c2 = arith.constant 2 : index
    %c0_14 = arith.constant 0 : index
    %c0_15 = arith.constant 0 : index
    %13 = vector.load %arg3[%c2, %c0_14, %c0_15] : memref<7x32x32xf32, #tpu.memory_space<vmem>>, vector<1x32x32xf32>
    %14 = vector.shape_cast %13 : vector<1x32x32xf32> to vector<32x32xf32>
    %c0_16 = arith.constant 0 : index
    %c2_17 = arith.constant 2 : index
    %c0_18 = arith.constant 0 : index
    %c0_19 = arith.constant 0 : index
    %15 = vector.load %arg1[%c0_16, %c2_17, %c0_18, %c0_19] : memref<1x7x32x64xf32, #tpu.memory_space<vmem>>, vector<1x1x32x64xf32>
    %16 = vector.shape_cast %15 : vector<1x1x32x64xf32> to vector<32x64xf32>
    %cst_20 = arith.constant dense<0.000000e+00> : vector<32x64xf32>
    %17 = tpu.matmul %14, %16, %cst_20 {dimension_numbers = #tpu.dot_dimension_numbers<[1], [0], [0], [1], [0, 0, 1, 1], [], []>} : vector<32x32xf32>, vector<32x64xf32>, vector<32x64xf32> -> vector<32x64xf32>
    %18 = arith.addf %12, %17 : vector<32x64xf32>
    %c3 = arith.constant 3 : index
    %c0_21 = arith.constant 0 : index
    %c0_22 = arith.constant 0 : index
    %19 = vector.load %arg3[%c3, %c0_21, %c0_22] : memref<7x32x32xf32, #tpu.memory_space<vmem>>, vector<1x32x32xf32>
    %20 = vector.shape_cast %19 : vector<1x32x32xf32> to vector<32x32xf32>
    %c0_23 = arith.constant 0 : index
    %c3_24 = arith.constant 3 : index
    %c0_25 = arith.constant 0 : index
    %c0_26 = arith.constant 0 : index
    %21 = vector.load %arg1[%c0_23, %c3_24, %c0_25, %c0_26] : memref<1x7x32x64xf32, #tpu.memory_space<vmem>>, vector<1x1x32x64xf32>
    %22 = vector.shape_cast %21 : vector<1x1x32x64xf32> to vector<32x64xf32>
    %cst_27 = arith.constant dense<0.000000e+00> : vector<32x64xf32>
    %23 = tpu.matmul %20, %22, %cst_27 {dimension_numbers = #tpu.dot_dimension_numbers<[1], [0], [0], [1], [0, 0, 1, 1], [], []>} : vector<32x32xf32>, vector<32x64xf32>, vector<32x64xf32> -> vector<32x64xf32>
    %24 = arith.addf %18, %23 : vector<32x64xf32>
    %c4 = arith.constant 4 : index
    %c0_28 = arith.constant 0 : index
    %c0_29 = arith.constant 0 : index
    %25 = vector.load %arg3[%c4, %c0_28, %c0_29] : memref<7x32x32xf32, #tpu.memory_space<vmem>>, vector<1x32x32xf32>
    %26 = vector.shape_cast %25 : vector<1x32x32xf32> to vector<32x32xf32>
    %c0_30 = arith.constant 0 : index
    %c4_31 = arith.constant 4 : index
    %c0_32 = arith.constant 0 : index
    %c0_33 = arith.constant 0 : index
    %27 = vector.load %arg1[%c0_30, %c4_31, %c0_32, %c0_33] : memref<1x7x32x64xf32, #tpu.memory_space<vmem>>, vector<1x1x32x64xf32>
    %28 = vector.shape_cast %27 : vector<1x1x32x64xf32> to vector<32x64xf32>
    %cst_34 = arith.constant dense<0.000000e+00> : vector<32x64xf32>
    %29 = tpu.matmul %26, %28, %cst_34 {dimension_numbers = #tpu.dot_dimension_numbers<[1], [0], [0], [1], [0, 0, 1, 1], [], []>} : vector<32x32xf32>, vector<32x64xf32>, vector<32x64xf32> -> vector<32x64xf32>
    %30 = arith.addf %24, %29 : vector<32x64xf32>
    %c5 = arith.constant 5 : index
    %c0_35 = arith.constant 0 : index
    %c0_36 = arith.constant 0 : index
    %31 = vector.load %arg3[%c5, %c0_35, %c0_36] : memref<7x32x32xf32, #tpu.memory_space<vmem>>, vector<1x32x32xf32>
    %32 = vector.shape_cast %31 : vector<1x32x32xf32> to vector<32x32xf32>
    %c0_37 = arith.constant 0 : index
    %c5_38 = arith.constant 5 : index
    %c0_39 = arith.constant 0 : index
    %c0_40 = arith.constant 0 : index
    %33 = vector.load %arg1[%c0_37, %c5_38, %c0_39, %c0_40] : memref<1x7x32x64xf32, #tpu.memory_space<vmem>>, vector<1x1x32x64xf32>
    %34 = vector.shape_cast %33 : vector<1x1x32x64xf32> to vector<32x64xf32>
    %cst_41 = arith.constant dense<0.000000e+00> : vector<32x64xf32>
    %35 = tpu.matmul %32, %34, %cst_41 {dimension_numbers = #tpu.dot_dimension_numbers<[1], [0], [0], [1], [0, 0, 1, 1], [], []>} : vector<32x32xf32>, vector<32x64xf32>, vector<32x64xf32> -> vector<32x64xf32>
    %36 = arith.addf %30, %35 : vector<32x64xf32>
    %c6 = arith.constant 6 : index
    %c0_42 = arith.constant 0 : index
    %c0_43 = arith.constant 0 : index
    %37 = vector.load %arg3[%c6, %c0_42, %c0_43] : memref<7x32x32xf32, #tpu.memory_space<vmem>>, vector<1x32x32xf32>
    %38 = vector.shape_cast %37 : vector<1x32x32xf32> to vector<32x32xf32>
    %c0_44 = arith.constant 0 : index
    %c6_45 = arith.constant 6 : index
    %c0_46 = arith.constant 0 : index
    %c0_47 = arith.constant 0 : index
    %39 = vector.load %arg1[%c0_44, %c6_45, %c0_46, %c0_47] : memref<1x7x32x64xf32, #tpu.memory_space<vmem>>, vector<1x1x32x64xf32>
    %40 = vector.shape_cast %39 : vector<1x1x32x64xf32> to vector<32x64xf32>
    %cst_48 = arith.constant dense<0.000000e+00> : vector<32x64xf32>
    %41 = tpu.matmul %38, %40, %cst_48 {dimension_numbers = #tpu.dot_dimension_numbers<[1], [0], [0], [1], [0, 0, 1, 1], [], []>} : vector<32x32xf32>, vector<32x64xf32>, vector<32x64xf32> -> vector<32x64xf32>
    %42 = arith.addf %36, %41 : vector<32x64xf32>
    %c0_49 = arith.constant 0 : index
    %c0_50 = arith.constant 0 : index
    %43 = vector.load %arg4[%c0_49, %c0_50] : memref<32x1xf32, #tpu.memory_space<vmem>>, vector<32x1xf32>
    %44 = vector.broadcast %43 : vector<32x1xf32> to vector<32x64xf32>
    %45 = arith.addf %42, %44 : vector<32x64xf32>
    %c0_51 = arith.constant 0 : index
    %c0_52 = arith.constant 0 : index
    %46 = vector.load %arg5[%c0_51, %c0_52] : memref<32x1xf32, #tpu.memory_space<vmem>>, vector<32x1xf32>
    %47 = vector.broadcast %46 : vector<32x1xf32> to vector<32x64xf32>
    %48 = arith.mulf %45, %47 : vector<32x64xf32>
    %c0_53 = arith.constant 0 : index
    %c0_54 = arith.constant 0 : index
    %49 = vector.load %arg6[%c0_53, %c0_54] : memref<32x1xf32, #tpu.memory_space<vmem>>, vector<32x1xf32>
    %50 = vector.broadcast %49 : vector<32x1xf32> to vector<32x64xf32>
    %51 = arith.addf %48, %50 : vector<32x64xf32>
    %cst_55 = arith.constant 0.000000e+00 : f32
    %52 = vector.broadcast %cst_55 : f32 to vector<32x64xf32>
    %53 = arith.maximumf %51, %52 : vector<32x64xf32>
    %cst_56 = arith.constant 0.000000e+00 : f32
    %54 = vector.broadcast %cst_56 : f32 to vector<32x70xf32>
    %c0_57 = arith.constant 0 : index
    %c0_58 = arith.constant 0 : index
    %55 = vector.load %arg10[%c0_57, %c0_58] : memref<32x70xf32, #tpu.memory_space<vmem>>, vector<32x70xf32>
    tpu.vector_store %arg10[%c0_57, %c0_58], %54 {strides = array<i32>} : memref<32x70xf32, #tpu.memory_space<vmem>>, vector<32x70xf32>,
    %c0_59 = arith.constant 0 : index
    %c3_60 = arith.constant 3 : index
    %56 = vector.load %arg10[%c0_59, %c3_60] : memref<32x70xf32, #tpu.memory_space<vmem>>, vector<32x64xf32>
    tpu.vector_store %arg10[%c0_59, %c3_60], %53 {strides = array<i32>} : memref<32x70xf32, #tpu.memory_space<vmem>>, vector<32x64xf32>,
    %cst_61 = arith.constant 0.000000e+00 : f32
    %57 = vector.broadcast %cst_61 : f32 to vector<32x64xf32>
    %c0_62 = arith.constant 0 : index
    %c0_63 = arith.constant 0 : index
    %c0_64 = arith.constant 0 : index
    %58 = vector.load %arg7[%c0_62, %c0_63, %c0_64] : memref<7x32x32xf32, #tpu.memory_space<vmem>>, vector<1x32x32xf32>
    %59 = vector.shape_cast %58 : vector<1x32x32xf32> to vector<32x32xf32>
    %c0_65 = arith.constant 0 : index
    %c0_66 = arith.constant 0 : index
    %60 = vector.load %arg10[%c0_65, %c0_66] : memref<32x70xf32, #tpu.memory_space<vmem>>, vector<32x64xf32>
    %cst_67 = arith.constant dense<0.000000e+00> : vector<32x64xf32>
    %61 = tpu.matmul %59, %60, %cst_67 {dimension_numbers = #tpu.dot_dimension_numbers<[1], [0], [0], [1], [0, 0, 1, 1], [], []>} : vector<32x32xf32>, vector<32x64xf32>, vector<32x64xf32> -> vector<32x64xf32>
    %62 = arith.addf %57, %61 : vector<32x64xf32>
    %c1_68 = arith.constant 1 : index
    %c0_69 = arith.constant 0 : index
    %c0_70 = arith.constant 0 : index
    %63 = vector.load %arg7[%c1_68, %c0_69, %c0_70] : memref<7x32x32xf32, #tpu.memory_space<vmem>>, vector<1x32x32xf32>
    %64 = vector.shape_cast %63 : vector<1x32x32xf32> to vector<32x32xf32>
    %c0_71 = arith.constant 0 : index
    %c1_72 = arith.constant 1 : index
    %65 = vector.load %arg10[%c0_71, %c1_72] : memref<32x70xf32, #tpu.memory_space<vmem>>, vector<32x64xf32>
    %cst_73 = arith.constant dense<0.000000e+00> : vector<32x64xf32>
    %66 = tpu.matmul %64, %65, %cst_73 {dimension_numbers = #tpu.dot_dimension_numbers<[1], [0], [0], [1], [0, 0, 1, 1], [], []>} : vector<32x32xf32>, vector<32x64xf32>, vector<32x64xf32> -> vector<32x64xf32>
    %67 = arith.addf %62, %66 : vector<32x64xf32>
    %c2_74 = arith.constant 2 : index
    %c0_75 = arith.constant 0 : index
    %c0_76 = arith.constant 0 : index
    %68 = vector.load %arg7[%c2_74, %c0_75, %c0_76] : memref<7x32x32xf32, #tpu.memory_space<vmem>>, vector<1x32x32xf32>
    %69 = vector.shape_cast %68 : vector<1x32x32xf32> to vector<32x32xf32>
    %c0_77 = arith.constant 0 : index
    %c2_78 = arith.constant 2 : index
    %70 = vector.load %arg10[%c0_77, %c2_78] : memref<32x70xf32, #tpu.memory_space<vmem>>, vector<32x64xf32>
    %cst_79 = arith.constant dense<0.000000e+00> : vector<32x64xf32>
    %71 = tpu.matmul %69, %70, %cst_79 {dimension_numbers = #tpu.dot_dimension_numbers<[1], [0], [0], [1], [0, 0, 1, 1], [], []>} : vector<32x32xf32>, vector<32x64xf32>, vector<32x64xf32> -> vector<32x64xf32>
    %72 = arith.addf %67, %71 : vector<32x64xf32>
    %c3_80 = arith.constant 3 : index
    %c0_81 = arith.constant 0 : index
    %c0_82 = arith.constant 0 : index
    %73 = vector.load %arg7[%c3_80, %c0_81, %c0_82] : memref<7x32x32xf32, #tpu.memory_space<vmem>>, vector<1x32x32xf32>
    %74 = vector.shape_cast %73 : vector<1x32x32xf32> to vector<32x32xf32>
    %c0_83 = arith.constant 0 : index
    %c3_84 = arith.constant 3 : index
    %75 = vector.load %arg10[%c0_83, %c3_84] : memref<32x70xf32, #tpu.memory_space<vmem>>, vector<32x64xf32>
    %cst_85 = arith.constant dense<0.000000e+00> : vector<32x64xf32>
    %76 = tpu.matmul %74, %75, %cst_85 {dimension_numbers = #tpu.dot_dimension_numbers<[1], [0], [0], [1], [0, 0, 1, 1], [], []>} : vector<32x32xf32>, vector<32x64xf32>, vector<32x64xf32> -> vector<32x64xf32>
    %77 = arith.addf %72, %76 : vector<32x64xf32>
    %c4_86 = arith.constant 4 : index
    %c0_87 = arith.constant 0 : index
    %c0_88 = arith.constant 0 : index
    %78 = vector.load %arg7[%c4_86, %c0_87, %c0_88] : memref<7x32x32xf32, #tpu.memory_space<vmem>>, vector<1x32x32xf32>
    %79 = vector.shape_cast %78 : vector<1x32x32xf32> to vector<32x32xf32>
    %c0_89 = arith.constant 0 : index
    %c4_90 = arith.constant 4 : index
    %80 = vector.load %arg10[%c0_89, %c4_90] : memref<32x70xf32, #tpu.memory_space<vmem>>, vector<32x64xf32>
    %cst_91 = arith.constant dense<0.000000e+00> : vector<32x64xf32>
    %81 = tpu.matmul %79, %80, %cst_91 {dimension_numbers = #tpu.dot_dimension_numbers<[1], [0], [0], [1], [0, 0, 1, 1], [], []>} : vector<32x32xf32>, vector<32x64xf32>, vector<32x64xf32> -> vector<32x64xf32>
    %82 = arith.addf %77, %81 : vector<32x64xf32>
    %c5_92 = arith.constant 5 : index
    %c0_93 = arith.constant 0 : index
    %c0_94 = arith.constant 0 : index
    %83 = vector.load %arg7[%c5_92, %c0_93, %c0_94] : memref<7x32x32xf32, #tpu.memory_space<vmem>>, vector<1x32x32xf32>
    %84 = vector.shape_cast %83 : vector<1x32x32xf32> to vector<32x32xf32>
    %c0_95 = arith.constant 0 : index
    %c5_96 = arith.constant 5 : index
    %85 = vector.load %arg10[%c0_95, %c5_96] : memref<32x70xf32, #tpu.memory_space<vmem>>, vector<32x64xf32>
    %cst_97 = arith.constant dense<0.000000e+00> : vector<32x64xf32>
    %86 = tpu.matmul %84, %85, %cst_97 {dimension_numbers = #tpu.dot_dimension_numbers<[1], [0], [0], [1], [0, 0, 1, 1], [], []>} : vector<32x32xf32>, vector<32x64xf32>, vector<32x64xf32> -> vector<32x64xf32>
    %87 = arith.addf %82, %86 : vector<32x64xf32>
    %c6_98 = arith.constant 6 : index
    %c0_99 = arith.constant 0 : index
    %c0_100 = arith.constant 0 : index
    %88 = vector.load %arg7[%c6_98, %c0_99, %c0_100] : memref<7x32x32xf32, #tpu.memory_space<vmem>>, vector<1x32x32xf32>
    %89 = vector.shape_cast %88 : vector<1x32x32xf32> to vector<32x32xf32>
    %c0_101 = arith.constant 0 : index
    %c6_102 = arith.constant 6 : index
    %90 = vector.load %arg10[%c0_101, %c6_102] : memref<32x70xf32, #tpu.memory_space<vmem>>, vector<32x64xf32>
    %cst_103 = arith.constant dense<0.000000e+00> : vector<32x64xf32>
    %91 = tpu.matmul %89, %90, %cst_103 {dimension_numbers = #tpu.dot_dimension_numbers<[1], [0], [0], [1], [0, 0, 1, 1], [], []>} : vector<32x32xf32>, vector<32x64xf32>, vector<32x64xf32> -> vector<32x64xf32>
    %92 = arith.addf %87, %91 : vector<32x64xf32>
    %c0_104 = arith.constant 0 : index
    %c0_105 = arith.constant 0 : index
    %93 = vector.load %arg8[%c0_104, %c0_105] : memref<32x1xf32, #tpu.memory_space<vmem>>, vector<32x1xf32>
    %94 = vector.broadcast %93 : vector<32x1xf32> to vector<32x64xf32>
    %95 = arith.addf %92, %94 : vector<32x64xf32>
    %c0_106 = arith.constant 0 : index
    %c0_107 = arith.constant 0 : index
    %c0_108 = arith.constant 0 : index
    %96 = vector.load %arg2[%c0_106, %c0_107, %c0_108] : memref<1x32x64xf32, #tpu.memory_space<vmem>>, vector<1x32x64xf32>
    %97 = vector.shape_cast %96 : vector<1x32x64xf32> to vector<32x64xf32>
    %98 = arith.addf %95, %97 : vector<32x64xf32>
    %c0_109 = arith.constant 0 : index
    %c0_110 = arith.constant 0 : index
    %c0_111 = arith.constant 0 : index
    %99 = vector.load %arg9[%c0_109, %c0_110, %c0_111] : memref<1x32x64xf32, #tpu.memory_space<vmem>>, vector<1x32x64xf32>
    %100 = vector.shape_cast %99 : vector<1x32x64xf32> to vector<32x64xf32>
    %101 = vector.shape_cast %98 : vector<32x64xf32> to vector<1x32x64xf32>
    tpu.vector_store %arg9[%c0_109, %c0_110, %c0_111], %101 {strides = array<i32>} : memref<1x32x64xf32, #tpu.memory_space<vmem>>, vector<1x32x64xf32>,
    return
  }
  func.func @transform_0(%arg0: i32) -> (i32, i32, i32, i32) {
    %c0_i32 = arith.constant 0 : i32
    %c0_i32_0 = arith.constant 0 : i32
    %c0_i32_1 = arith.constant 0 : i32
    %c0_i32_2 = arith.constant 0 : i32
    return %arg0, %c0_i32, %c0_i32_0, %c0_i32_1 : i32, i32, i32, i32
  }
  func.func @transform_1(%arg0: i32) -> (i32, i32, i32) {
    %c0_i32 = arith.constant 0 : i32
    %c0_i32_0 = arith.constant 0 : i32
    %c0_i32_1 = arith.constant 0 : i32
    return %arg0, %c0_i32, %c0_i32_0 : i32, i32, i32
  }
  func.func @transform_2(%arg0: i32) -> (i32, i32, i32) {
    %c0_i32 = arith.constant 0 : i32
    %c0_i32_0 = arith.constant 0 : i32
    %c0_i32_1 = arith.constant 0 : i32
    %c0_i32_2 = arith.constant 0 : i32
    return %c0_i32, %c0_i32_0, %c0_i32_1 : i32, i32, i32
  }
  func.func @transform_3(%arg0: i32) -> (i32, i32) {
    %c0_i32 = arith.constant 0 : i32
    %c0_i32_0 = arith.constant 0 : i32
    %c0_i32_1 = arith.constant 0 : i32
    return %c0_i32, %c0_i32_0 : i32, i32
  }
  func.func @transform_4(%arg0: i32) -> (i32, i32) {
    %c0_i32 = arith.constant 0 : i32
    %c0_i32_0 = arith.constant 0 : i32
    %c0_i32_1 = arith.constant 0 : i32
    return %c0_i32, %c0_i32_0 : i32, i32
  }
  func.func @transform_5(%arg0: i32) -> (i32, i32) {
    %c0_i32 = arith.constant 0 : i32
    %c0_i32_0 = arith.constant 0 : i32
    %c0_i32_1 = arith.constant 0 : i32
    return %c0_i32, %c0_i32_0 : i32, i32
  }
  func.func @transform_6(%arg0: i32) -> (i32, i32, i32) {
    %c0_i32 = arith.constant 0 : i32
    %c0_i32_0 = arith.constant 0 : i32
    %c0_i32_1 = arith.constant 0 : i32
    %c0_i32_2 = arith.constant 0 : i32
    return %c0_i32, %c0_i32_0, %c0_i32_1 : i32, i32, i32
  }
  func.func @transform_7(%arg0: i32) -> (i32, i32) {
    %c0_i32 = arith.constant 0 : i32
    %c0_i32_0 = arith.constant 0 : i32
    %c0_i32_1 = arith.constant 0 : i32
    return %c0_i32, %c0_i32_0 : i32, i32
  }
  func.func @transform_8(%arg0: i32) -> (i32, i32, i32) {
    %c0_i32 = arith.constant 0 : i32
    %c0_i32_0 = arith.constant 0 : i32
    %c0_i32_1 = arith.constant 0 : i32
    return %arg0, %c0_i32, %c0_i32_0 : i32, i32, i32
  }
}

module attributes {stable_mosaic.version = 11 : i64} {
  func.func @_final_kernel(%arg0: i32, %arg1: memref<1x64x64xf32, #tpu.memory_space<vmem>>, %arg2: memref<64x1xf32, #tpu.memory_space<vmem>>, %arg3: memref<64x1xf32, #tpu.memory_space<vmem>>, %arg4: memref<1x64x64xf32, #tpu.memory_space<vmem>>, %arg5: memref<1x64x1xf32, #tpu.memory_space<vmem>>) attributes {dimension_semantics = [#tpu.dimension_semantics<parallel>], iteration_bounds = array<i64: 4>, scalar_prefetch = 0 : i64, scratch_operands = 0 : i64, tpu.core_type = #tpu.core_type<tc>, window_params = [{transform_indices = @transform_0, window_bounds = array<i64: 1, 64, 64>}, {pipeline_mode = #tpu.pipeline_mode<synchronous>, transform_indices = @transform_1, window_bounds = array<i64: 64, 1>}, {pipeline_mode = #tpu.pipeline_mode<synchronous>, transform_indices = @transform_2, window_bounds = array<i64: 64, 1>}, {transform_indices = @transform_3, window_bounds = array<i64: 1, 64, 64>}, {transform_indices = @transform_4, window_bounds = array<i64: 1, 64, 1>}]} {
    %c0 = arith.constant 0 : index
    %c0_0 = arith.constant 0 : index
    %c0_1 = arith.constant 0 : index
    %0 = vector.load %arg1[%c0, %c0_0, %c0_1] : memref<1x64x64xf32, #tpu.memory_space<vmem>>, vector<1x64x64xf32>
    %1 = vector.shape_cast %0 : vector<1x64x64xf32> to vector<64x64xf32>
    %c0_2 = arith.constant 0 : index
    %c0_3 = arith.constant 0 : index
    %2 = vector.load %arg2[%c0_2, %c0_3] : memref<64x1xf32, #tpu.memory_space<vmem>>, vector<64x1xf32>
    %3 = vector.broadcast %2 : vector<64x1xf32> to vector<64x64xf32>
    %4 = arith.mulf %1, %3 : vector<64x64xf32>
    %c0_4 = arith.constant 0 : index
    %c0_5 = arith.constant 0 : index
    %5 = vector.load %arg3[%c0_4, %c0_5] : memref<64x1xf32, #tpu.memory_space<vmem>>, vector<64x1xf32>
    %6 = vector.broadcast %5 : vector<64x1xf32> to vector<64x64xf32>
    %7 = arith.addf %4, %6 : vector<64x64xf32>
    %cst = arith.constant 0.000000e+00 : f32
    %8 = vector.broadcast %cst : f32 to vector<64x64xf32>
    %9 = arith.maximumf %7, %8 : vector<64x64xf32>
    %c0_6 = arith.constant 0 : index
    %c0_7 = arith.constant 0 : index
    %c0_8 = arith.constant 0 : index
    %10 = vector.load %arg4[%c0_6, %c0_7, %c0_8] : memref<1x64x64xf32, #tpu.memory_space<vmem>>, vector<1x64x64xf32>
    %11 = vector.shape_cast %10 : vector<1x64x64xf32> to vector<64x64xf32>
    %12 = vector.shape_cast %9 : vector<64x64xf32> to vector<1x64x64xf32>
    tpu.vector_store %arg4[%c0_6, %c0_7, %c0_8], %12 {strides = array<i32>} : memref<1x64x64xf32, #tpu.memory_space<vmem>>, vector<1x64x64xf32>,
    %cst_9 = arith.constant dense<0.000000e+00> : vector<64xf32>
    %13 = vector.multi_reduction <add>, %9, %cst_9 [1] : vector<64x64xf32> to vector<64xf32>
    %14 = vector.shape_cast %13 : vector<64xf32> to vector<64x1xf32>
    %cst_10 = arith.constant 6.400000e+01 : f32
    %15 = vector.broadcast %cst_10 : f32 to vector<64x1xf32>
    %16 = arith.divf %14, %15 : vector<64x1xf32>
    %c0_11 = arith.constant 0 : index
    %c0_12 = arith.constant 0 : index
    %c0_13 = arith.constant 0 : index
    %17 = vector.load %arg5[%c0_11, %c0_12, %c0_13] : memref<1x64x1xf32, #tpu.memory_space<vmem>>, vector<1x64x1xf32>
    %18 = vector.shape_cast %17 : vector<1x64x1xf32> to vector<64x1xf32>
    %19 = vector.shape_cast %16 : vector<64x1xf32> to vector<1x64x1xf32>
    tpu.vector_store %arg5[%c0_11, %c0_12, %c0_13], %19 {strides = array<i32>} : memref<1x64x1xf32, #tpu.memory_space<vmem>>, vector<1x64x1xf32>,
    return
  }
  func.func @transform_0(%arg0: i32) -> (i32, i32, i32) {
    %c0_i32 = arith.constant 0 : i32
    %c0_i32_0 = arith.constant 0 : i32
    %c0_i32_1 = arith.constant 0 : i32
    return %arg0, %c0_i32, %c0_i32_0 : i32, i32, i32
  }
  func.func @transform_1(%arg0: i32) -> (i32, i32) {
    %c0_i32 = arith.constant 0 : i32
    %c0_i32_0 = arith.constant 0 : i32
    %c0_i32_1 = arith.constant 0 : i32
    return %c0_i32, %c0_i32_0 : i32, i32
  }
  func.func @transform_2(%arg0: i32) -> (i32, i32) {
    %c0_i32 = arith.constant 0 : i32
    %c0_i32_0 = arith.constant 0 : i32
    %c0_i32_1 = arith.constant 0 : i32
    return %c0_i32, %c0_i32_0 : i32, i32
  }
  func.func @transform_3(%arg0: i32) -> (i32, i32, i32) {
    %c0_i32 = arith.constant 0 : i32
    %c0_i32_0 = arith.constant 0 : i32
    %c0_i32_1 = arith.constant 0 : i32
    return %arg0, %c0_i32, %c0_i32_0 : i32, i32, i32
  }
  func.func @transform_4(%arg0: i32) -> (i32, i32, i32) {
    %c0_i32 = arith.constant 0 : i32
    %c0_i32_0 = arith.constant 0 : i32
    %c0_i32_1 = arith.constant 0 : i32
    return %arg0, %c0_i32, %c0_i32_0 : i32, i32, i32
  }
}

module attributes {stable_mosaic.version = 11 : i64} {
  func.func @_block_kernel_s1(%arg0: i32, %arg1: memref<1x32x64xf32, #tpu.memory_space<vmem>>, %arg2: memref<32x1xf32, #tpu.memory_space<vmem>>, %arg3: memref<32x1xf32, #tpu.memory_space<vmem>>, %arg4: memref<7x64x32xf32, #tpu.memory_space<vmem>>, %arg5: memref<64x1xf32, #tpu.memory_space<vmem>>, %arg6: memref<64x1xf32, #tpu.memory_space<vmem>>, %arg7: memref<64x1xf32, #tpu.memory_space<vmem>>, %arg8: memref<7x64x64xf32, #tpu.memory_space<vmem>>, %arg9: memref<64x1xf32, #tpu.memory_space<vmem>>, %arg10: memref<1x64x64xf32, #tpu.memory_space<vmem>>, %arg11: memref<32x70xf32, #tpu.memory_space<vmem>>, %arg12: memref<64x70xf32, #tpu.memory_space<vmem>>) attributes {dimension_semantics = [#tpu.dimension_semantics<parallel>], iteration_bounds = array<i64: 4>, scalar_prefetch = 0 : i64, scratch_operands = 2 : i64, tpu.core_type = #tpu.core_type<tc>, window_params = [{transform_indices = @transform_0, window_bounds = array<i64: 1, 32, 64>}, {pipeline_mode = #tpu.pipeline_mode<synchronous>, transform_indices = @transform_1, window_bounds = array<i64: 32, 1>}, {pipeline_mode = #tpu.pipeline_mode<synchronous>, transform_indices = @transform_2, window_bounds = array<i64: 32, 1>}, {pipeline_mode = #tpu.pipeline_mode<synchronous>, transform_indices = @transform_3, window_bounds = array<i64: 7, 64, 32>}, {pipeline_mode = #tpu.pipeline_mode<synchronous>, transform_indices = @transform_4, window_bounds = array<i64: 64, 1>}, {pipeline_mode = #tpu.pipeline_mode<synchronous>, transform_indices = @transform_5, window_bounds = array<i64: 64, 1>}, {pipeline_mode = #tpu.pipeline_mode<synchronous>, transform_indices = @transform_6, window_bounds = array<i64: 64, 1>}, {pipeline_mode = #tpu.pipeline_mode<synchronous>, transform_indices = @transform_7, window_bounds = array<i64: 7, 64, 64>}, {pipeline_mode = #tpu.pipeline_mode<synchronous>, transform_indices = @transform_8, window_bounds = array<i64: 64, 1>}, {transform_indices = @transform_9, window_bounds = array<i64: 1, 64, 64>}]} {
    %c0 = arith.constant 0 : index
    %c0_0 = arith.constant 0 : index
    %c0_1 = arith.constant 0 : index
    %0 = vector.load %arg1[%c0, %c0_0, %c0_1] : memref<1x32x64xf32, #tpu.memory_space<vmem>>, vector<1x32x64xf32>
    %1 = vector.shape_cast %0 : vector<1x32x64xf32> to vector<32x64xf32>
    %c0_2 = arith.constant 0 : index
    %c0_3 = arith.constant 0 : index
    %2 = vector.load %arg2[%c0_2, %c0_3] : memref<32x1xf32, #tpu.memory_space<vmem>>, vector<32x1xf32>
    %3 = vector.broadcast %2 : vector<32x1xf32> to vector<32x64xf32>
    %4 = arith.mulf %1, %3 : vector<32x64xf32>
    %c0_4 = arith.constant 0 : index
    %c0_5 = arith.constant 0 : index
    %5 = vector.load %arg3[%c0_4, %c0_5] : memref<32x1xf32, #tpu.memory_space<vmem>>, vector<32x1xf32>
    %6 = vector.broadcast %5 : vector<32x1xf32> to vector<32x64xf32>
    %7 = arith.addf %4, %6 : vector<32x64xf32>
    %cst = arith.constant 0.000000e+00 : f32
    %8 = vector.broadcast %cst : f32 to vector<32x64xf32>
    %9 = arith.maximumf %7, %8 : vector<32x64xf32>
    %cst_6 = arith.constant 0.000000e+00 : f32
    %10 = vector.broadcast %cst_6 : f32 to vector<32x70xf32>
    %c0_7 = arith.constant 0 : index
    %c0_8 = arith.constant 0 : index
    %11 = vector.load %arg11[%c0_7, %c0_8] : memref<32x70xf32, #tpu.memory_space<vmem>>, vector<32x70xf32>
    tpu.vector_store %arg11[%c0_7, %c0_8], %10 {strides = array<i32>} : memref<32x70xf32, #tpu.memory_space<vmem>>, vector<32x70xf32>,
    %c0_9 = arith.constant 0 : index
    %c3 = arith.constant 3 : index
    %12 = vector.load %arg11[%c0_9, %c3] : memref<32x70xf32, #tpu.memory_space<vmem>>, vector<32x64xf32>
    tpu.vector_store %arg11[%c0_9, %c3], %9 {strides = array<i32>} : memref<32x70xf32, #tpu.memory_space<vmem>>, vector<32x64xf32>,
    %cst_10 = arith.constant 0.000000e+00 : f32
    %13 = vector.broadcast %cst_10 : f32 to vector<64x64xf32>
    %c0_11 = arith.constant 0 : index
    %c0_12 = arith.constant 0 : index
    %c0_13 = arith.constant 0 : index
    %14 = vector.load %arg4[%c0_11, %c0_12, %c0_13] : memref<7x64x32xf32, #tpu.memory_space<vmem>>, vector<1x64x32xf32>
    %15 = vector.shape_cast %14 : vector<1x64x32xf32> to vector<64x32xf32>
    %c0_14 = arith.constant 0 : index
    %c0_15 = arith.constant 0 : index
    %16 = vector.load %arg11[%c0_14, %c0_15] : memref<32x70xf32, #tpu.memory_space<vmem>>, vector<32x64xf32>
    %cst_16 = arith.constant dense<0.000000e+00> : vector<64x64xf32>
    %17 = tpu.matmul %15, %16, %cst_16 {dimension_numbers = #tpu.dot_dimension_numbers<[1], [0], [0], [1], [0, 0, 1, 1], [], []>} : vector<64x32xf32>, vector<32x64xf32>, vector<64x64xf32> -> vector<64x64xf32>
    %18 = arith.addf %13, %17 : vector<64x64xf32>
    %c1 = arith.constant 1 : index
    %c0_17 = arith.constant 0 : index
    %c0_18 = arith.constant 0 : index
    %19 = vector.load %arg4[%c1, %c0_17, %c0_18] : memref<7x64x32xf32, #tpu.memory_space<vmem>>, vector<1x64x32xf32>
    %20 = vector.shape_cast %19 : vector<1x64x32xf32> to vector<64x32xf32>
    %c0_19 = arith.constant 0 : index
    %c1_20 = arith.constant 1 : index
    %21 = vector.load %arg11[%c0_19, %c1_20] : memref<32x70xf32, #tpu.memory_space<vmem>>, vector<32x64xf32>
    %cst_21 = arith.constant dense<0.000000e+00> : vector<64x64xf32>
    %22 = tpu.matmul %20, %21, %cst_21 {dimension_numbers = #tpu.dot_dimension_numbers<[1], [0], [0], [1], [0, 0, 1, 1], [], []>} : vector<64x32xf32>, vector<32x64xf32>, vector<64x64xf32> -> vector<64x64xf32>
    %23 = arith.addf %18, %22 : vector<64x64xf32>
    %c2 = arith.constant 2 : index
    %c0_22 = arith.constant 0 : index
    %c0_23 = arith.constant 0 : index
    %24 = vector.load %arg4[%c2, %c0_22, %c0_23] : memref<7x64x32xf32, #tpu.memory_space<vmem>>, vector<1x64x32xf32>
    %25 = vector.shape_cast %24 : vector<1x64x32xf32> to vector<64x32xf32>
    %c0_24 = arith.constant 0 : index
    %c2_25 = arith.constant 2 : index
    %26 = vector.load %arg11[%c0_24, %c2_25] : memref<32x70xf32, #tpu.memory_space<vmem>>, vector<32x64xf32>
    %cst_26 = arith.constant dense<0.000000e+00> : vector<64x64xf32>
    %27 = tpu.matmul %25, %26, %cst_26 {dimension_numbers = #tpu.dot_dimension_numbers<[1], [0], [0], [1], [0, 0, 1, 1], [], []>} : vector<64x32xf32>, vector<32x64xf32>, vector<64x64xf32> -> vector<64x64xf32>
    %28 = arith.addf %23, %27 : vector<64x64xf32>
    %c3_27 = arith.constant 3 : index
    %c0_28 = arith.constant 0 : index
    %c0_29 = arith.constant 0 : index
    %29 = vector.load %arg4[%c3_27, %c0_28, %c0_29] : memref<7x64x32xf32, #tpu.memory_space<vmem>>, vector<1x64x32xf32>
    %30 = vector.shape_cast %29 : vector<1x64x32xf32> to vector<64x32xf32>
    %c0_30 = arith.constant 0 : index
    %c3_31 = arith.constant 3 : index
    %31 = vector.load %arg11[%c0_30, %c3_31] : memref<32x70xf32, #tpu.memory_space<vmem>>, vector<32x64xf32>
    %cst_32 = arith.constant dense<0.000000e+00> : vector<64x64xf32>
    %32 = tpu.matmul %30, %31, %cst_32 {dimension_numbers = #tpu.dot_dimension_numbers<[1], [0], [0], [1], [0, 0, 1, 1], [], []>} : vector<64x32xf32>, vector<32x64xf32>, vector<64x64xf32> -> vector<64x64xf32>
    %33 = arith.addf %28, %32 : vector<64x64xf32>
    %c4 = arith.constant 4 : index
    %c0_33 = arith.constant 0 : index
    %c0_34 = arith.constant 0 : index
    %34 = vector.load %arg4[%c4, %c0_33, %c0_34] : memref<7x64x32xf32, #tpu.memory_space<vmem>>, vector<1x64x32xf32>
    %35 = vector.shape_cast %34 : vector<1x64x32xf32> to vector<64x32xf32>
    %c0_35 = arith.constant 0 : index
    %c4_36 = arith.constant 4 : index
    %36 = vector.load %arg11[%c0_35, %c4_36] : memref<32x70xf32, #tpu.memory_space<vmem>>, vector<32x64xf32>
    %cst_37 = arith.constant dense<0.000000e+00> : vector<64x64xf32>
    %37 = tpu.matmul %35, %36, %cst_37 {dimension_numbers = #tpu.dot_dimension_numbers<[1], [0], [0], [1], [0, 0, 1, 1], [], []>} : vector<64x32xf32>, vector<32x64xf32>, vector<64x64xf32> -> vector<64x64xf32>
    %38 = arith.addf %33, %37 : vector<64x64xf32>
    %c5 = arith.constant 5 : index
    %c0_38 = arith.constant 0 : index
    %c0_39 = arith.constant 0 : index
    %39 = vector.load %arg4[%c5, %c0_38, %c0_39] : memref<7x64x32xf32, #tpu.memory_space<vmem>>, vector<1x64x32xf32>
    %40 = vector.shape_cast %39 : vector<1x64x32xf32> to vector<64x32xf32>
    %c0_40 = arith.constant 0 : index
    %c5_41 = arith.constant 5 : index
    %41 = vector.load %arg11[%c0_40, %c5_41] : memref<32x70xf32, #tpu.memory_space<vmem>>, vector<32x64xf32>
    %cst_42 = arith.constant dense<0.000000e+00> : vector<64x64xf32>
    %42 = tpu.matmul %40, %41, %cst_42 {dimension_numbers = #tpu.dot_dimension_numbers<[1], [0], [0], [1], [0, 0, 1, 1], [], []>} : vector<64x32xf32>, vector<32x64xf32>, vector<64x64xf32> -> vector<64x64xf32>
    %43 = arith.addf %38, %42 : vector<64x64xf32>
    %c6 = arith.constant 6 : index
    %c0_43 = arith.constant 0 : index
    %c0_44 = arith.constant 0 : index
    %44 = vector.load %arg4[%c6, %c0_43, %c0_44] : memref<7x64x32xf32, #tpu.memory_space<vmem>>, vector<1x64x32xf32>
    %45 = vector.shape_cast %44 : vector<1x64x32xf32> to vector<64x32xf32>
    %c0_45 = arith.constant 0 : index
    %c6_46 = arith.constant 6 : index
    %46 = vector.load %arg11[%c0_45, %c6_46] : memref<32x70xf32, #tpu.memory_space<vmem>>, vector<32x64xf32>
    %cst_47 = arith.constant dense<0.000000e+00> : vector<64x64xf32>
    %47 = tpu.matmul %45, %46, %cst_47 {dimension_numbers = #tpu.dot_dimension_numbers<[1], [0], [0], [1], [0, 0, 1, 1], [], []>} : vector<64x32xf32>, vector<32x64xf32>, vector<64x64xf32> -> vector<64x64xf32>
    %48 = arith.addf %43, %47 : vector<64x64xf32>
    %c0_48 = arith.constant 0 : index
    %c0_49 = arith.constant 0 : index
    %49 = vector.load %arg5[%c0_48, %c0_49] : memref<64x1xf32, #tpu.memory_space<vmem>>, vector<64x1xf32>
    %50 = vector.broadcast %49 : vector<64x1xf32> to vector<64x64xf32>
    %51 = arith.addf %48, %50 : vector<64x64xf32>
    %c0_50 = arith.constant 0 : index
    %c0_51 = arith.constant 0 : index
    %52 = vector.load %arg6[%c0_50, %c0_51] : memref<64x1xf32, #tpu.memory_space<vmem>>, vector<64x1xf32>
    %53 = vector.broadcast %52 : vector<64x1xf32> to vector<64x64xf32>
    %54 = arith.mulf %51, %53 : vector<64x64xf32>
    %c0_52 = arith.constant 0 : index
    %c0_53 = arith.constant 0 : index
    %55 = vector.load %arg7[%c0_52, %c0_53] : memref<64x1xf32, #tpu.memory_space<vmem>>, vector<64x1xf32>
    %56 = vector.broadcast %55 : vector<64x1xf32> to vector<64x64xf32>
    %57 = arith.addf %54, %56 : vector<64x64xf32>
    %cst_54 = arith.constant 0.000000e+00 : f32
    %58 = vector.broadcast %cst_54 : f32 to vector<64x64xf32>
    %59 = arith.maximumf %57, %58 : vector<64x64xf32>
    %cst_55 = arith.constant 0.000000e+00 : f32
    %60 = vector.broadcast %cst_55 : f32 to vector<64x70xf32>
    %c0_56 = arith.constant 0 : index
    %c0_57 = arith.constant 0 : index
    %61 = vector.load %arg12[%c0_56, %c0_57] : memref<64x70xf32, #tpu.memory_space<vmem>>, vector<64x70xf32>
    tpu.vector_store %arg12[%c0_56, %c0_57], %60 {strides = array<i32>} : memref<64x70xf32, #tpu.memory_space<vmem>>, vector<64x70xf32>,
    %c0_58 = arith.constant 0 : index
    %c3_59 = arith.constant 3 : index
    %62 = vector.load %arg12[%c0_58, %c3_59] : memref<64x70xf32, #tpu.memory_space<vmem>>, vector<64x64xf32>
    tpu.vector_store %arg12[%c0_58, %c3_59], %59 {strides = array<i32>} : memref<64x70xf32, #tpu.memory_space<vmem>>, vector<64x64xf32>,
    %cst_60 = arith.constant 0.000000e+00 : f32
    %63 = vector.broadcast %cst_60 : f32 to vector<64x64xf32>
    %c0_61 = arith.constant 0 : index
    %c0_62 = arith.constant 0 : index
    %c0_63 = arith.constant 0 : index
    %64 = vector.load %arg8[%c0_61, %c0_62, %c0_63] : memref<7x64x64xf32, #tpu.memory_space<vmem>>, vector<1x64x64xf32>
    %65 = vector.shape_cast %64 : vector<1x64x64xf32> to vector<64x64xf32>
    %c0_64 = arith.constant 0 : index
    %c0_65 = arith.constant 0 : index
    %66 = vector.load %arg12[%c0_64, %c0_65] : memref<64x70xf32, #tpu.memory_space<vmem>>, vector<64x64xf32>
    %cst_66 = arith.constant dense<0.000000e+00> : vector<64x64xf32>
    %67 = tpu.matmul %65, %66, %cst_66 {dimension_numbers = #tpu.dot_dimension_numbers<[1], [0], [0], [1], [0, 0, 1, 1], [], []>} : vector<64x64xf32>, vector<64x64xf32>, vector<64x64xf32> -> vector<64x64xf32>
    %68 = arith.addf %63, %67 : vector<64x64xf32>
    %c1_67 = arith.constant 1 : index
    %c0_68 = arith.constant 0 : index
    %c0_69 = arith.constant 0 : index
    %69 = vector.load %arg8[%c1_67, %c0_68, %c0_69] : memref<7x64x64xf32, #tpu.memory_space<vmem>>, vector<1x64x64xf32>
    %70 = vector.shape_cast %69 : vector<1x64x64xf32> to vector<64x64xf32>
    %c0_70 = arith.constant 0 : index
    %c1_71 = arith.constant 1 : index
    %71 = vector.load %arg12[%c0_70, %c1_71] : memref<64x70xf32, #tpu.memory_space<vmem>>, vector<64x64xf32>
    %cst_72 = arith.constant dense<0.000000e+00> : vector<64x64xf32>
    %72 = tpu.matmul %70, %71, %cst_72 {dimension_numbers = #tpu.dot_dimension_numbers<[1], [0], [0], [1], [0, 0, 1, 1], [], []>} : vector<64x64xf32>, vector<64x64xf32>, vector<64x64xf32> -> vector<64x64xf32>
    %73 = arith.addf %68, %72 : vector<64x64xf32>
    %c2_73 = arith.constant 2 : index
    %c0_74 = arith.constant 0 : index
    %c0_75 = arith.constant 0 : index
    %74 = vector.load %arg8[%c2_73, %c0_74, %c0_75] : memref<7x64x64xf32, #tpu.memory_space<vmem>>, vector<1x64x64xf32>
    %75 = vector.shape_cast %74 : vector<1x64x64xf32> to vector<64x64xf32>
    %c0_76 = arith.constant 0 : index
    %c2_77 = arith.constant 2 : index
    %76 = vector.load %arg12[%c0_76, %c2_77] : memref<64x70xf32, #tpu.memory_space<vmem>>, vector<64x64xf32>
    %cst_78 = arith.constant dense<0.000000e+00> : vector<64x64xf32>
    %77 = tpu.matmul %75, %76, %cst_78 {dimension_numbers = #tpu.dot_dimension_numbers<[1], [0], [0], [1], [0, 0, 1, 1], [], []>} : vector<64x64xf32>, vector<64x64xf32>, vector<64x64xf32> -> vector<64x64xf32>
    %78 = arith.addf %73, %77 : vector<64x64xf32>
    %c3_79 = arith.constant 3 : index
    %c0_80 = arith.constant 0 : index
    %c0_81 = arith.constant 0 : index
    %79 = vector.load %arg8[%c3_79, %c0_80, %c0_81] : memref<7x64x64xf32, #tpu.memory_space<vmem>>, vector<1x64x64xf32>
    %80 = vector.shape_cast %79 : vector<1x64x64xf32> to vector<64x64xf32>
    %c0_82 = arith.constant 0 : index
    %c3_83 = arith.constant 3 : index
    %81 = vector.load %arg12[%c0_82, %c3_83] : memref<64x70xf32, #tpu.memory_space<vmem>>, vector<64x64xf32>
    %cst_84 = arith.constant dense<0.000000e+00> : vector<64x64xf32>
    %82 = tpu.matmul %80, %81, %cst_84 {dimension_numbers = #tpu.dot_dimension_numbers<[1], [0], [0], [1], [0, 0, 1, 1], [], []>} : vector<64x64xf32>, vector<64x64xf32>, vector<64x64xf32> -> vector<64x64xf32>
    %83 = arith.addf %78, %82 : vector<64x64xf32>
    %c4_85 = arith.constant 4 : index
    %c0_86 = arith.constant 0 : index
    %c0_87 = arith.constant 0 : index
    %84 = vector.load %arg8[%c4_85, %c0_86, %c0_87] : memref<7x64x64xf32, #tpu.memory_space<vmem>>, vector<1x64x64xf32>
    %85 = vector.shape_cast %84 : vector<1x64x64xf32> to vector<64x64xf32>
    %c0_88 = arith.constant 0 : index
    %c4_89 = arith.constant 4 : index
    %86 = vector.load %arg12[%c0_88, %c4_89] : memref<64x70xf32, #tpu.memory_space<vmem>>, vector<64x64xf32>
    %cst_90 = arith.constant dense<0.000000e+00> : vector<64x64xf32>
    %87 = tpu.matmul %85, %86, %cst_90 {dimension_numbers = #tpu.dot_dimension_numbers<[1], [0], [0], [1], [0, 0, 1, 1], [], []>} : vector<64x64xf32>, vector<64x64xf32>, vector<64x64xf32> -> vector<64x64xf32>
    %88 = arith.addf %83, %87 : vector<64x64xf32>
    %c5_91 = arith.constant 5 : index
    %c0_92 = arith.constant 0 : index
    %c0_93 = arith.constant 0 : index
    %89 = vector.load %arg8[%c5_91, %c0_92, %c0_93] : memref<7x64x64xf32, #tpu.memory_space<vmem>>, vector<1x64x64xf32>
    %90 = vector.shape_cast %89 : vector<1x64x64xf32> to vector<64x64xf32>
    %c0_94 = arith.constant 0 : index
    %c5_95 = arith.constant 5 : index
    %91 = vector.load %arg12[%c0_94, %c5_95] : memref<64x70xf32, #tpu.memory_space<vmem>>, vector<64x64xf32>
    %cst_96 = arith.constant dense<0.000000e+00> : vector<64x64xf32>
    %92 = tpu.matmul %90, %91, %cst_96 {dimension_numbers = #tpu.dot_dimension_numbers<[1], [0], [0], [1], [0, 0, 1, 1], [], []>} : vector<64x64xf32>, vector<64x64xf32>, vector<64x64xf32> -> vector<64x64xf32>
    %93 = arith.addf %88, %92 : vector<64x64xf32>
    %c6_97 = arith.constant 6 : index
    %c0_98 = arith.constant 0 : index
    %c0_99 = arith.constant 0 : index
    %94 = vector.load %arg8[%c6_97, %c0_98, %c0_99] : memref<7x64x64xf32, #tpu.memory_space<vmem>>, vector<1x64x64xf32>
    %95 = vector.shape_cast %94 : vector<1x64x64xf32> to vector<64x64xf32>
    %c0_100 = arith.constant 0 : index
    %c6_101 = arith.constant 6 : index
    %96 = vector.load %arg12[%c0_100, %c6_101] : memref<64x70xf32, #tpu.memory_space<vmem>>, vector<64x64xf32>
    %cst_102 = arith.constant dense<0.000000e+00> : vector<64x64xf32>
    %97 = tpu.matmul %95, %96, %cst_102 {dimension_numbers = #tpu.dot_dimension_numbers<[1], [0], [0], [1], [0, 0, 1, 1], [], []>} : vector<64x64xf32>, vector<64x64xf32>, vector<64x64xf32> -> vector<64x64xf32>
    %98 = arith.addf %93, %97 : vector<64x64xf32>
    %c0_103 = arith.constant 0 : index
    %c0_104 = arith.constant 0 : index
    %99 = vector.load %arg9[%c0_103, %c0_104] : memref<64x1xf32, #tpu.memory_space<vmem>>, vector<64x1xf32>
    %100 = vector.broadcast %99 : vector<64x1xf32> to vector<64x64xf32>
    %101 = arith.addf %98, %100 : vector<64x64xf32>
    %c0_105 = arith.constant 0 : index
    %c0_106 = arith.constant 0 : index
    %c0_107 = arith.constant 0 : index
    %102 = vector.load %arg10[%c0_105, %c0_106, %c0_107] : memref<1x64x64xf32, #tpu.memory_space<vmem>>, vector<1x64x64xf32>
    %103 = vector.shape_cast %102 : vector<1x64x64xf32> to vector<64x64xf32>
    %104 = vector.shape_cast %101 : vector<64x64xf32> to vector<1x64x64xf32>
    tpu.vector_store %arg10[%c0_105, %c0_106, %c0_107], %104 {strides = array<i32>} : memref<1x64x64xf32, #tpu.memory_space<vmem>>, vector<1x64x64xf32>,
    %105 = vector.extract_strided_slice %101 {offsets = [16, 0], sizes = [32, 64], strides = [1, 1]} : vector<64x64xf32> to vector<32x64xf32>
    %106 = arith.addf %105, %1 : vector<32x64xf32>
    %c0_108 = arith.constant 0 : index
    %c16 = arith.constant 16 : index
    %c0_109 = arith.constant 0 : index
    %107 = vector.load %arg10[%c0_108, %c16, %c0_109] : memref<1x64x64xf32, #tpu.memory_space<vmem>>, vector<1x32x64xf32>
    %108 = vector.shape_cast %107 : vector<1x32x64xf32> to vector<32x64xf32>
    %109 = vector.shape_cast %106 : vector<32x64xf32> to vector<1x32x64xf32>
    tpu.vector_store %arg10[%c0_108, %c16, %c0_109], %109 {strides = array<i32>} : memref<1x64x64xf32, #tpu.memory_space<vmem>>, vector<1x32x64xf32>,
    return
  }
  func.func @transform_0(%arg0: i32) -> (i32, i32, i32) {
    %c0_i32 = arith.constant 0 : i32
    %c0_i32_0 = arith.constant 0 : i32
    %c0_i32_1 = arith.constant 0 : i32
    return %arg0, %c0_i32, %c0_i32_0 : i32, i32, i32
  }
  func.func @transform_1(%arg0: i32) -> (i32, i32) {
    %c0_i32 = arith.constant 0 : i32
    %c0_i32_0 = arith.constant 0 : i32
    %c0_i32_1 = arith.constant 0 : i32
    return %c0_i32, %c0_i32_0 : i32, i32
  }
  func.func @transform_2(%arg0: i32) -> (i32, i32) {
    %c0_i32 = arith.constant 0 : i32
    %c0_i32_0 = arith.constant 0 : i32
    %c0_i32_1 = arith.constant 0 : i32
    return %c0_i32, %c0_i32_0 : i32, i32
  }
  func.func @transform_3(%arg0: i32) -> (i32, i32, i32) {
    %c0_i32 = arith.constant 0 : i32
    %c0_i32_0 = arith.constant 0 : i32
    %c0_i32_1 = arith.constant 0 : i32
    %c0_i32_2 = arith.constant 0 : i32
    return %c0_i32, %c0_i32_0, %c0_i32_1 : i32, i32, i32
  }
  func.func @transform_4(%arg0: i32) -> (i32, i32) {
    %c0_i32 = arith.constant 0 : i32
    %c0_i32_0 = arith.constant 0 : i32
    %c0_i32_1 = arith.constant 0 : i32
    return %c0_i32, %c0_i32_0 : i32, i32
  }
  func.func @transform_5(%arg0: i32) -> (i32, i32) {
    %c0_i32 = arith.constant 0 : i32
    %c0_i32_0 = arith.constant 0 : i32
    %c0_i32_1 = arith.constant 0 : i32
    return %c0_i32, %c0_i32_0 : i32, i32
  }
  func.func @transform_6(%arg0: i32) -> (i32, i32) {
    %c0_i32 = arith.constant 0 : i32
    %c0_i32_0 = arith.constant 0 : i32
    %c0_i32_1 = arith.constant 0 : i32
    return %c0_i32, %c0_i32_0 : i32, i32
  }
  func.func @transform_7(%arg0: i32) -> (i32, i32, i32) {
    %c0_i32 = arith.constant 0 : i32
    %c0_i32_0 = arith.constant 0 : i32
    %c0_i32_1 = arith.constant 0 : i32
    %c0_i32_2 = arith.constant 0 : i32
    return %c0_i32, %c0_i32_0, %c0_i32_1 : i32, i32, i32
  }
  func.func @transform_8(%arg0: i32) -> (i32, i32) {
    %c0_i32 = arith.constant 0 : i32
    %c0_i32_0 = arith.constant 0 : i32
    %c0_i32_1 = arith.constant 0 : i32
    return %c0_i32, %c0_i32_0 : i32, i32
  }
  func.func @transform_9(%arg0: i32) -> (i32, i32, i32) {
    %c0_i32 = arith.constant 0 : i32
    %c0_i32_0 = arith.constant 0 : i32
    %c0_i32_1 = arith.constant 0 : i32
    return %arg0, %c0_i32, %c0_i32_0 : i32, i32, i32
  }
}

</mosaic_0001>

<bundles_post_ra>
// kernel: forward.5
= control target key start
LH: loop header
LB: loop body
LE: loop exit
PB: predicated region body
PF: predicated region fallthrough
CT: control target
= control target key end

     0   :  { %s1423_s18 = smov 0   ;;  %s1608_s0 = inlined_call_operand.vmem [shape: f32[4,4,128], index: 0, kind: input, shape index: {}]   ;;  %s1609_s1 = inlined_call_operand.vmem [shape: f32[7,32,4], index: 1, kind: input, shape index: {}]   ;;  %s1610_s2 = inlined_call_operand.vmem [shape: f32[32,1], index: 2, kind: input, shape index: {}]   ;;  %s1611_s3 = inlined_call_operand.vmem [shape: f32[32,1], index: 3, kind: input, shape index: {}]   ;;  %s1612_s4 = inlined_call_operand.vmem [shape: f32[32,1], index: 4, kind: input, shape index: {}]   ;;  %s1613_s5 = inlined_call_operand.vmem [shape: f32[4,32,128], index: 5, kind: output, shape index: {}]  }
   0x1 LB: > { %s1170_s19 = sadd.s32 4294967295, %s1382_s18   ;;  %p1174_p0 = scmp.ge.s32.totalorder %s1382_s18, 1  ;;  %s1382_s18 = sphi %s1423_s18, %s15_s18  }
   0x2   : > { %p186_p1 = scmp.lt.s32.totalorder %s1382_s18, 5 }
   0x4   : > { %p187_p2 = pnand %p1174_p0, %p186_p1 }
   0x5   : > { %p213_p3 = scmp.lt.s32.totalorder (!%p187_p2), %s1170_s19, 3  ;;  %vm224_vm0 = vcmask (!%p187_p2), 44032   ;;  %v1384_v0 = vmov (!%p187_p2), 0.0   ;;  %s1385_s24 = smov (!%p187_p2), 3   ;;  %v1178_v2 = vld [vmem:[%s1609_s1 + $0x20] sm:$0xff] (!%p187_p2)  ;;  %vm253_vm1 = vcmask (!%p187_p2), 31744  }
   0x6   : > { %190 = sbr.rel (%p187_p2) target bundleno = 516 (0x204), region = 40  ;;  %223 = vst [vmem:[#allocation2] sm:$0xf] (!%p187_p2), %v1384_v0  ;;  %225 = vst.msk [vmem:[#allocation2 + $0x8] sm:$0xf] (!%p187_p2), %vm224_vm0, %v1384_v0  ;;  %vm230_vm2 = vcmask (!%p187_p2), 1043480   ;;  %1277 = vmatprep.mubr.msk.f32.mxu1 (!%p187_p2), %vm253_vm1, %v1178_v2 }
   0x7   : > { %vm232_vm3 = vcmask (!%p187_p2), 19456   ;;  %v1201_v4 = vld [vmem:[%s1609_s1 + $0x60] sm:$0xff] (!%p187_p2)  ;;  %s1386_s29 = smov (!%p187_p2), 127   ;;  %s1387_s30 = smov (!%p187_p2), 125   ;;  %v1392_v8 = vmov (!%p187_p2), 0   ;;  %v1024_v9 = vld [vmem:[%s1610_s2 + $0x8] sm:$0xff] (!%p187_p2) }
   0x8   : > { %1301 = vmatprep.mubr.msk.f32.mxu0 (!%p187_p2), %vm253_vm1, %v1201_v4  ;;  %s1388_s6 = smov (!%p187_p2), 124   ;;  %s1389_s7 = smov (!%p187_p2), 126   ;;  %v1023_v7 = vld [vmem:[%s1610_s2] sm:$0xff] (!%p187_p2)  ;;  %1374 = vset.pattern.permute.xlu1 (!%p187_p2), %v1392_v8  ;;  %v1025_v10 = vld [vmem:[%s1610_s2 + $0x10] sm:$0xff] (!%p187_p2)  ;;  %v1026_v12 = vld [vmem:[%s1610_s2 + $0x18] sm:$0xff] (!%p187_p2)  ;;  %vm251_vm4 = vcmask (!%p187_p2), 1039360  }
   0x9   : > { %s1390_s8 = smov (!%p187_p2), 123   ;;  %s1391_s9 = smov (!%p187_p2), 122   ;;  %1375 = vset.pattern.permute.xlu0 (!%p187_p2), %v1392_v8  ;;  %v1051_v11 = vld [vmem:[%s1611_s3] sm:$0xff] (!%p187_p2)  ;;  %v1053_v13 = vld [vmem:[%s1611_s3 + $0x10] sm:$0xff] (!%p187_p2)  ;;  %v1052_v14 = vld [vmem:[%s1611_s3 + $0x8] sm:$0xff] (!%p187_p2)  ;;  %vm266_vm5 = vcmask (!%p187_p2), 1043456  }
   0xa   : > { %v1079_v15 = vld [vmem:[%s1612_s4] sm:$0xff] (!%p187_p2)  ;;  %v1054_v16 = vld [vmem:[%s1611_s3 + $0x18] sm:$0xff] (!%p187_p2)  ;;  %v1081_v17 = vld [vmem:[%s1612_s4 + $0x10] sm:$0xff] (!%p187_p2)  ;;  %vm576_vm6 = vcmask (!%p187_p2), 1022976   ;;  %vm690_vm7 = vcmask (!%p187_p2), 1014784   ;;  %vm462_vm8 = vcmask (!%p187_p2), 1031168  }
   0xb   : > { %v1080_v18 = vld [vmem:[%s1612_s4 + $0x8] sm:$0xff] (!%p187_p2)  ;;  %v1082_v19 = vld [vmem:[%s1612_s4 + $0x18] sm:$0xff] (!%p187_p2)  ;;  %v1180_v24 = vld [vmem:[%s1609_s1 + $0x30] sm:$0xff] (!%p187_p2)  ;;  %vm804_vm9 = vcmask (!%p187_p2), 1006592   ;;  %vm918_vm10 = vcmask (!%p187_p2), 998400  }
   0xc   : > { %v1179_v23 = vld [vmem:[%s1609_s1 + $0x28] sm:$0xff] (!%p187_p2)  ;;  %v1181_v28 = vld [vmem:[%s1609_s1 + $0x38] sm:$0xff] (!%p187_p2)  ;;  %v234_v30 = vld [vmem:[%s1609_s1] sm:$0xff] (!%p187_p2) }
   0xd   : > { %s1615_s19 = smov (!%p213_p3, %s1170_s19), 3  ;;  %v1202_v29 = vld [vmem:[%s1609_s1 + $0x68] sm:$0xff]  ;;  %v1210_v31 = vld [vmem:[%s1609_s1 + $0x80] sm:$0xff]  ;;  %v236_v36 = vld [vmem:[%s1609_s1 + $0x10] sm:$0xff] }
   0xe   : > { %s1175_s20 = sshll.u32 %s1615_s19, 2  ;;  %v235_v35 = vld [vmem:[%s1609_s1 + $0x8] sm:$0xff]  ;;  %v237_v40 = vld [vmem:[%s1609_s1 + $0x18] sm:$0xff]  ;;  %v1192_v42 = vld [vmem:[%s1609_s1 + $0x40] sm:$0xff]  ;;  %s1239_s17 = sshll.u32 %s1615_s19, 5 }
   0xf   : > { %s216_s23 = scalar_lea.vmem %s1608_s0, %s1175_s20  ;;  %v1211_v41 = vld [vmem:[%s1609_s1 + $0x88] sm:$0xff]  ;;  %v1212_v43 = vld [vmem:[%s1609_s1 + $0x90] sm:$0xff]  ;;  %v1213_v48 = vld [vmem:[%s1609_s1 + $0x98] sm:$0xff]  ;;  %s221_s22 = scalar_lea.vmem %s1613_s5, %s1239_s17 }
  0x10   : > { %v222_v1 = vld [vmem:[%s216_s23] sm:$0xf]  ;;  %v1193_v47 = vld [vmem:[%s1609_s1 + $0x48] sm:$0xff]  ;;  %v1194_v49 = vld [vmem:[%s1609_s1 + $0x50] sm:$0xff] }
  0x11   : > { %227 = vrot.lane.b32.xlu0 %v222_v1, %s1385_s24  ;;  %v1219_v52 = vld [vmem:[%s1609_s1 + $0xa0] sm:$0xff]  ;;  %v1195_v54 = vld [vmem:[%s1609_s1 + $0x58] sm:$0xff]  ;;  %v1220_v55 = vld [vmem:[%s1609_s1 + $0xa8] sm:$0xff] }
  0x12   : > { %v1203_v56 = vld [vmem:[%s1609_s1 + $0x70] sm:$0xff]  ;;  %v1222_v58 = vld [vmem:[%s1609_s1 + $0xb8] sm:$0xff]  ;;  %v1228_v59 = vld [vmem:[%s1609_s1 + $0xc0] sm:$0xff] }
  0x13   : > { %v1221_v57 = vld [vmem:[%s1609_s1 + $0xb0] sm:$0xff]  ;;  %v1204_v60 = vld [vmem:[%s1609_s1 + $0x78] sm:$0xff]  ;;  %v1229_v61 = vld [vmem:[%s1609_s1 + $0xc8] sm:$0xff] }
  0x14   : > { %v1230_v62 = vld [vmem:[%s1609_s1 + $0xd0] sm:$0xff]  ;;  %v1231_v63 = vld [vmem:[%s1609_s1 + $0xd8] sm:$0xff] }
  0x83   : > { %v228_v3 = vpop.permute.xlu0 %227 }
  0x84   : > { %231 = vst.msk [vmem:[#allocation2] sm:$0xf] %vm230_vm2, %v228_v3 }
  0x85   : > { %233 = vst.msk [vmem:[#allocation2 + $0x8] sm:$0xf] %vm232_vm3, %v228_v3 }
  0x8b   : > { %v238_v6 = vld [vmem:[#allocation2] sm:$0xf] }
  0x8c   : > { %v244_v5 = vld [vmem:[#allocation2 + $0x8] sm:$0xf]  ;;  %247 = vrot.lane.b32.xlu0 %v238_v6, %s1386_s29 }
  0x8d   : > { %249 = vrot.lane.b32.xlu1 %v244_v5, %s1386_s29 }
  0x90   : > { %574 = vrot.lane.b32.xlu0 %v244_v5, %s1387_s30 }
  0x91   : > { %572 = vrot.lane.b32.xlu1 %v238_v6, %s1387_s30 }
  0x94   : > { %688 = vrot.lane.b32.xlu0 %v244_v5, %s1388_s6 }
  0x95   : > { %686 = vrot.lane.b32.xlu1 %v238_v6, %s1388_s6 }
  0x98   : > { %460 = vrot.lane.b32.xlu0 %v244_v5, %s1389_s7 }
  0x99   : > { %458 = vrot.lane.b32.xlu1 %v238_v6, %s1389_s7 }
  0x9c   : > { %802 = vrot.lane.b32.xlu0 %v244_v5, %s1390_s8 }
  0x9d   : > { %800 = vrot.lane.b32.xlu1 %v238_v6, %s1390_s8 }
  0xa0   : > { %916 = vrot.lane.b32.xlu0 %v244_v5, %s1391_s9 }
  0xa1   : > { %914 = vrot.lane.b32.xlu1 %v238_v6, %s1391_s9 }
  0xa4   : > { %1034 = vperm.xlu0 %1375, %v1024_v9  }
  0xa5   : > { %1029 = vperm.xlu1 %1374, %v1023_v7  }
  0xa8   : > { %1057 = vperm.xlu0 %1375, %v1051_v11  }
  0xa9   : > { %1039 = vperm.xlu1 %1374, %v1025_v10  }
  0xac   : > { %1067 = vperm.xlu0 %1375, %v1053_v13  }
  0xad   : > { %1044 = vperm.xlu1 %1374, %v1026_v12  }
  0xb0   : > { %1085 = vperm.xlu0 %1375, %v1079_v15  }
  0xb1   : > { %1062 = vperm.xlu1 %1374, %v1052_v14  }
  0xb4   : > { %1095 = vperm.xlu0 %1375, %v1081_v17  }
  0xb5   : > { %1072 = vperm.xlu1 %1374, %v1054_v16  }
  0xb9   : > { %1090 = vperm.xlu1 %1374, %v1080_v18  }
  0xbd   : > { %1100 = vperm.xlu1 %1374, %v1082_v19  }
  0xfe   : > { %v248_v21 = vpop.permute.xlu0 %247 }
  0xff   : > { %v250_v20 = vpop.permute.xlu1 %249 }
 0x100   : > { %v252_v22 = vsel %vm251_vm4, %v248_v21, %v250_v20 }
 0x101   : > { %1275 = vmatprep.subr.msk.mxu1 %vm266_vm5, %v252_v22 }
 0x102   : > { %1276 = vmatpush3.msk.msra.mxu1 %vm266_vm5, %v252_v22  ;;  %v575_v26 = vpop.permute.xlu0 %574 }
 0x103   : > { %v573_v25 = vpop.permute.xlu1 %572  ;;  %1278 = vmatmul.mubr.msk.f32.vlgmr.msra.gmra.mrb[0].mxu1 %vm253_vm1, %v1179_v23  ;;  %1283 = vmatprep.subr.msk.mxu1 %vm266_vm5, %v238_v6 }
 0x104   : > { %v577_v27 = vsel %vm576_vm6, %v573_v25, %v575_v26  ;;  %1284 = vmatpush3.msk.msra.mxu1 %vm266_vm5, %v238_v6  ;;  %1280 = vmatprep.mubr.msk.f32.mxu1 %vm253_vm1, %v1180_v24 }
 0x105   : > { %1299 = vmatprep.subr.msk.mxu0 %vm266_vm5, %v577_v27 }
 0x106   : > { %1300 = vmatpush3.msk.msra.mxu0 %vm266_vm5, %v577_v27  ;;  %v689_v33 = vpop.permute.xlu0 %688 }
 0x107   : > { %v687_v32 = vpop.permute.xlu1 %686  ;;  %1281 = vmatmul.mubr.msk.f32.gmra.mrb[2].mxu1 %vm253_vm1, %v1181_v28  ;;  %1302 = vmatmul.mubr.msk.f32.vlgmr.msra.gmra.mrb[0].mxu0 %vm253_vm1, %v1202_v29 }
 0x108   : > { %v691_v34 = vsel %vm690_vm7, %v687_v32, %v689_v33  ;;  %1285 = vmatprep.mubr.msk.f32.mxu1 %vm253_vm1, %v234_v30  ;;  %1309 = vmatprep.mubr.msk.f32.mxu0 %vm253_vm1, %v1210_v31 }
 0x109   : > { %1307 = vmatprep.subr.msk.mxu0 %vm266_vm5, %v691_v34 }
 0x10a   : > { %1308 = vmatpush3.msk.msra.mxu0 %vm266_vm5, %v691_v34  ;;  %v461_v38 = vpop.permute.xlu0 %460 }
 0x10b   : > { %v459_v37 = vpop.permute.xlu1 %458  ;;  %1286 = vmatmul.mubr.msk.f32.vlgmr.msra.gmra.mrb[0].mxu1 %vm253_vm1, %v235_v35 }
 0x10c   : > { %v463_v39 = vsel %vm462_vm8, %v459_v37, %v461_v38  ;;  %1288 = vmatprep.mubr.msk.f32.mxu1 %vm253_vm1, %v236_v36 }
 0x10d   : > { %1291 = vmatprep.subr.msk.mxu1 %vm266_vm5, %v463_v39 }
 0x10e   : > { %1292 = vmatpush3.msk.msra.mxu1 %vm266_vm5, %v463_v39  ;;  %v803_v45 = vpop.permute.xlu0 %802 }
 0x10f   : > { %v801_v44 = vpop.permute.xlu1 %800  ;;  %1289 = vmatmul.mubr.msk.f32.gmra.mrb[2].mxu1 %vm253_vm1, %v237_v40  ;;  %1331 = vmatprep.subr.msk.mxu1 %vm266_vm5, %v577_v27 }
 0x110   : > { %1310 = vmatmul.mubr.msk.f32.vlgmr.msra.gmra.mrb[0].mxu0 %vm253_vm1, %v1211_v41  ;;  %v805_v46 = vsel %vm804_vm9, %v801_v44, %v803_v45  ;;  %1293 = vmatprep.mubr.msk.f32.mxu1 %vm253_vm1, %v1192_v42 }
 0x111   : > { %1315 = vmatprep.subr.msk.mxu0 %vm266_vm5, %v805_v46  ;;  %1312 = vmatprep.mubr.msk.f32.mxu0 %vm253_vm1, %v1212_v43 }
 0x112   : > { %1316 = vmatpush3.msk.msra.mxu0 %vm266_vm5, %v805_v46  ;;  %v917_v51 = vpop.permute.xlu0 %916 }
 0x113   : > { %v915_v50 = vpop.permute.xlu1 %914  ;;  %1294 = vmatmul.mubr.msk.f32.vlgmr.msra.gmra.mrb[0].mxu1 %vm253_vm1, %v1193_v47 }
 0x114   : > { %1332 = vmatpush3.msk.msra.mxu1 %vm266_vm5, %v577_v27  ;;  %1313 = vmatmul.mubr.msk.f32.gmra.mrb[2].mxu0 %vm253_vm1, %v1213_v48  ;;  %v919_v53 = vsel %vm918_vm10, %v915_v50, %v917_v51 }
 0x115   : > { %1323 = vmatprep.subr.msk.mxu0 %vm266_vm5, %v919_v53  ;;  %1296 = vmatprep.mubr.msk.f32.mxu1 %vm253_vm1, %v1194_v49 }
 0x116   : > { %1317 = vmatprep.mubr.msk.f32.mxu0 %vm253_vm1, %v1219_v52 }
 0x117   : > { %1297 = vmatmul.mubr.msk.f32.gmra.mrb[2].mxu1 %vm253_vm1, %v1195_v54 }
 0x118   : > { %1318 = vmatmul.mubr.msk.f32.vlgmr.msra.gmra.mrb[0].mxu0 %vm253_vm1, %v1220_v55  ;;  %1304 = vmatprep.mubr.msk.f32.mxu1 %vm253_vm1, %v1203_v56 }
 0x119   : > { %1324 = vmatpush3.msk.msra.mxu0 %vm266_vm5, %v919_v53  ;;  %1320 = vmatprep.mubr.msk.f32.mxu0 %vm253_vm1, %v1221_v57 }
 0x11c   : > { %1321 = vmatmul.mubr.msk.f32.gmra.mrb[2].mxu0 %vm253_vm1, %v1222_v58 }
 0x11d   : > { %1325 = vmatprep.mubr.msk.f32.mxu0 %vm253_vm1, %v1228_v59 }
 0x11f   : > { %1305 = vmatmul.mubr.msk.f32.vlgmr.msra.gmra.mrb[2].mxu1 %vm253_vm1, %v1204_v60 }
 0x120   : > { %1326 = vmatmul.mubr.msk.f32.vlgmr.msra.gmra.mrb[0].mxu0 %vm253_vm1, %v1229_v61 }
 0x121   : > { %1328 = vmatprep.mubr.msk.f32.mxu0 %vm253_vm1, %v1230_v62 }
 0x123   : > { %v1035_v3 = vpop.permute.xlu0 %1034 }
 0x124   : > { %1329 = vmatmul.mubr.msk.f32.gmra.mrb[2].mxu0 %vm253_vm1, %v1231_v63  ;;  %v1030_v0 = vpop.permute.xlu1 %1029 }
 0x127   : > { %v1058_v7 = vpop.permute.xlu0 %1057 }
 0x128   : > { %v1040_v1 = vpop.permute.xlu1 %1039 }
 0x12b   : > { %v1068_v9 = vpop.permute.xlu0 %1067 }
 0x12c   : > { %v1045_v2 = vpop.permute.xlu1 %1044 }
 0x12f   : > { %v1086_v20 = vpop.permute.xlu0 %1085 }
 0x130   : > { %v1063_v6 = vpop.permute.xlu1 %1062 }
 0x133   : > { %v1096_v35 = vpop.permute.xlu0 %1095 }
 0x134   : > { %v1073_v8 = vpop.permute.xlu1 %1072 }
 0x138   : > { %v1091_v17 = vpop.permute.xlu1 %1090 }
 0x13c   : > { %v1101_v32 = vpop.permute.xlu1 %1100 }
 0x1e6   : > { %v1295_v4 = vpop.f32.mrb[0].mxu1 }
 0x1e7   : > { %v544_v5 = vpop.f32.mrb[1].mxu1 }
 0x1f2   : > { %v1306_v10 = vpop.f32.mrb[2].mxu1 }
 0x1f3   : > { %v1327_v11 = vpop.f32.mrb[0].mxu0  ;;  %v668_v12 = vpop.f32.mrb[3].mxu1 }
 0x1f4   : > { %v1333_v13 = vadd.f32 %v1327_v11, %v1295_v4  ;;  %v1000_v14 = vpop.f32.mrb[1].mxu0 }
 0x1f5   : > { %v1334_v15 = vadd.f32 %v1000_v14, %v544_v5 }
 0x1f6   : > { %v1048_v16 = vadd.f32 %v1333_v13, %v1035_v3 }
 0x1f7   : > { %v1047_v18 = vadd.f32 %v1334_v15, %v1030_v0  ;;  %v1330_v19 = vpop.f32.mrb[2].mxu0 }
 0x1f8   : > { %v1076_v21 = vmul.f32 %v1063_v6, %v1048_v16  ;;  %v1335_v22 = vadd.f32 %v1330_v19, %v1306_v10  ;;  %v1010_v23 = vpop.f32.mrb[3].mxu0 }
 0x1f9   : > { %v1075_v24 = vmul.f32 %v1058_v7, %v1047_v18  ;;  %v1336_v25 = vadd.f32 %v1010_v23, %v668_v12 }
 0x1fa   : > { %v1104_v26 = vadd.f32 %v1091_v17, %v1076_v21  ;;  %v1050_v27 = vadd.f32 %v1335_v22, %v1045_v2 }
 0x1fb   : > { %v1103_v28 = vadd.f32 %v1086_v20, %v1075_v24  ;;  %v1049_v29 = vadd.f32 %v1336_v25, %v1040_v1 }
 0x1fc   : > { %v1108_v30 = vmax.f32 %v1104_v26, 0.0  ;;  %v1078_v31 = vmul.f32 %v1073_v8, %v1050_v27 }
 0x1fd   : > { %v1107_v33 = vmax.f32 %v1103_v28, 0.0  ;;  %v1077_v34 = vmul.f32 %v1068_v9, %v1049_v29 }
 0x1fe   : > { %1112 = vst [vmem:[%s221_s22 + $0x8] sm:$0xff] %v1108_v30  ;;  %v1106_v36 = vadd.f32 %v1101_v32, %v1078_v31 }
 0x1ff   : > { %1111 = vst [vmem:[%s221_s22] sm:$0xff] %v1107_v33  ;;  %v1105_v37 = vadd.f32 %v1096_v35, %v1077_v34 }
 0x200   : > { %v1110_v38 = vmax.f32 %v1106_v36, 0.0 }
 0x201   : > { %v1109_v39 = vmax.f32 %v1105_v37, 0.0 }
 0x202   : > { %1114 = vst [vmem:[%s221_s22 + $0x18] sm:$0xff] %v1110_v38 }
 0x203   : > { %1113 = vst [vmem:[%s221_s22 + $0x10] sm:$0xff] %v1109_v39 }
 0x204 PF: > { %s15_s18 = sadd.s32 1, %s1382_s18  }
 0x205   : > { %p12_p4 = scmp.ge.s32.totalorder %s15_s18, 6  }
 0x207   :  { %14 = sbr.rel (!%p12_p4) target bundleno = 1 (0x1), region = 76 }

// kernel: forward.6
= control target key start
LH: loop header
LB: loop body
LE: loop exit
PB: predicated region body
PF: predicated region fallthrough
CT: control target
= control target key end

     0   :  { %s3291_s28 = smov 0   ;;  %s3747_s0 = inlined_call_operand.vmem [shape: f32[4,32,128], index: 0, kind: input, shape index: {}]   ;;  %s3748_s1 = inlined_call_operand.vmem [shape: f32[32,1], index: 1, kind: input, shape index: {}]   ;;  %s3749_s2 = inlined_call_operand.vmem [shape: f32[32,1], index: 2, kind: input, shape index: {}]   ;;  %s3750_s3 = inlined_call_operand.vmem [shape: f32[7,32,32], index: 3, kind: input, shape index: {}]   ;;  %s3751_s4 = inlined_call_operand.vmem [shape: f32[32,1], index: 4, kind: input, shape index: {}]   ;;  %s3752_s5 = inlined_call_operand.vmem [shape: f32[32,1], index: 5, kind: input, shape index: {}]   ;;  %s3753_s6 = inlined_call_operand.vmem [shape: f32[32,1], index: 6, kind: input, shape index: {}]   ;;  %s3754_s7 = inlined_call_operand.vmem [shape: f32[7,32,32], index: 7, kind: input, shape index: {}]   ;;  %s3755_s8 = inlined_call_operand.vmem [shape: f32[32,1], index: 8, kind: input, shape index: {}]   ;;  %s3756_s9 = inlined_call_operand.vmem [shape: f32[4,32,128], index: 9, kind: output, shape index: {}]  }
   0x1 LB: > { %s2376_s29 = sadd.s32 4294967295, %s3230_s28   ;;  %p2380_p0 = scmp.ge.s32.totalorder %s3230_s28, 1  ;;  %s3230_s28 = sphi %s3291_s28, %s19_s28  }
   0x2   : > { %p287_p1 = scmp.lt.s32.totalorder %s3230_s28, 5 }
   0x4   : > { %p288_p2 = pnand %p2380_p0, %p287_p1 }
   0x5   : > { %p3299_p3 = scmp.lt.s32.totalorder (!%p288_p2), %s2376_s29, 3  ;;  %vm338_vm0 = vcmask (!%p288_p2), 48128   ;;  %v3232_v0 = vmov (!%p288_p2), 0.0   ;;  %s3233_s14 = smov (!%p288_p2), 3   ;;  %vm362_vm1 = vcmask (!%p288_p2), 1047576   ;;  %vm364_vm2 = vcmask (!%p288_p2), 23552  }
   0x6   : > { %291 = sbr.rel (%p288_p2) target bundleno = 1068 (0x42c), region = 56  ;;  %342 = vst [vmem:[#allocation2 + $0x20] sm:$0xff] (!%p288_p2), %v3232_v0  ;;  %343 = vst.msk [vmem:[#allocation2 + $0x28] sm:$0xff] (!%p288_p2), %vm338_vm0, %v3232_v0  ;;  %s3234_s15 = smov (!%p288_p2), 127   ;;  %v2385_v20 = vld [vmem:[%s3750_s3 + $0x20] sm:$0xff] (!%p288_p2)  ;;  %vm422_vm3 = vcmask (!%p288_p2), 261120  }
   0x7   : > { %337 = vst [vmem:[#allocation2] sm:$0xff] (!%p288_p2), %v3232_v0  ;;  %339 = vst.msk [vmem:[#allocation2 + $0x8] sm:$0xff] (!%p288_p2), %vm338_vm0, %v3232_v0  ;;  %2613 = vmatprep.mubr.msk.f32.mxu0 (!%p288_p2), %vm422_vm3, %v2385_v20  ;;  %s3235_s18 = smov (!%p288_p2), 126   ;;  %s3236_s19 = smov (!%p288_p2), 125   ;;  %v1272_v24 = vld [vmem:[%s3751_s4] sm:$0xff] (!%p288_p2)  ;;  %v1273_v25 = vld [vmem:[%s3751_s4 + $0x8] sm:$0xff] (!%p288_p2) }
   0x8   : > { %340 = vst [vmem:[#allocation2 + $0x10] sm:$0xff] (!%p288_p2), %v3232_v0  ;;  %341 = vst.msk [vmem:[#allocation2 + $0x18] sm:$0xff] (!%p288_p2), %vm338_vm0, %v3232_v0  ;;  %s3237_s20 = smov (!%p288_p2), 124   ;;  %s3238_s21 = smov (!%p288_p2), 123   ;;  %v3240_v26 = vmov (!%p288_p2), 0   ;;  %v1301_v27 = vld [vmem:[%s3752_s5 + $0x8] sm:$0xff] (!%p288_p2) }
   0x9   : > { %344 = vst [vmem:[#allocation2 + $0x30] sm:$0xff] (!%p288_p2), %v3232_v0  ;;  %345 = vst.msk [vmem:[#allocation2 + $0x38] sm:$0xff] (!%p288_p2), %vm338_vm0, %v3232_v0  ;;  %s3239_s22 = smov (!%p288_p2), 122   ;;  %3099 = vset.pattern.permute.xlu1 (!%p288_p2), %v3240_v26  ;;  %3098 = vset.pattern.permute.xlu0 (!%p288_p2), %v3240_v26  ;;  %v1300_v28 = vld [vmem:[%s3752_s5] sm:$0xff] (!%p288_p2)  ;;  %v1275_v29 = vld [vmem:[%s3751_s4 + $0x18] sm:$0xff] (!%p288_p2)  ;;  %vm413_vm4 = vcmask (!%p288_p2), 1039360  }
   0xa   : > { %1360 = vst [vmem:[#allocation3] sm:$0xff] (!%p288_p2), %v3232_v0  ;;  %1361 = vst.msk [vmem:[#allocation3 + $0x8] sm:$0xff] (!%p288_p2), %vm338_vm0, %v3232_v0  ;;  %v1274_v30 = vld [vmem:[%s3751_s4 + $0x10] sm:$0xff] (!%p288_p2)  ;;  %v1329_v31 = vld [vmem:[%s3753_s6 + $0x8] sm:$0xff] (!%p288_p2)  ;;  %vm638_vm5 = vcmask (!%p288_p2), 1031168   ;;  %vm769_vm6 = vcmask (!%p288_p2), 1022976  }
   0xb   : > { %1362 = vst [vmem:[#allocation3 + $0x10] sm:$0xff] (!%p288_p2), %v3232_v0  ;;  %1363 = vst.msk [vmem:[#allocation3 + $0x18] sm:$0xff] (!%p288_p2), %vm338_vm0, %v3232_v0  ;;  %v1328_v32 = vld [vmem:[%s3753_s6] sm:$0xff] (!%p288_p2)  ;;  %v1303_v33 = vld [vmem:[%s3752_s5 + $0x18] sm:$0xff] (!%p288_p2)  ;;  %vm900_vm7 = vcmask (!%p288_p2), 1014784   ;;  %vm1031_vm8 = vcmask (!%p288_p2), 1006592  }
   0xc   : > { %1364 = vst [vmem:[#allocation3 + $0x20] sm:$0xff] (!%p288_p2), %v3232_v0  ;;  %1365 = vst.msk [vmem:[#allocation3 + $0x28] sm:$0xff] (!%p288_p2), %vm338_vm0, %v3232_v0  ;;  %v1302_v34 = vld [vmem:[%s3752_s5 + $0x10] sm:$0xff] (!%p288_p2)  ;;  %v1331_v35 = vld [vmem:[%s3753_s6 + $0x18] sm:$0xff] (!%p288_p2)  ;;  %vm1162_vm9 = vcmask (!%p288_p2), 998400  }
   0xd   : > { %1366 = vst [vmem:[#allocation3 + $0x30] sm:$0xff] %v3232_v0  ;;  %1367 = vst.msk [vmem:[#allocation3 + $0x38] sm:$0xff] %vm338_vm0, %v3232_v0  ;;  %s3759_s29 = smov (!%p3299_p3, %s2376_s29), 3  ;;  %v1330_v36 = vld [vmem:[%s3753_s6 + $0x10] sm:$0xff]  ;;  %v2386_v60 = vld [vmem:[%s3750_s3 + $0x28] sm:$0xff] }
   0xe   : > { %s2491_s10 = sshll.u32 %s3759_s29, 5  ;;  %v2387_v63 = vld [vmem:[%s3750_s3 + $0x30] sm:$0xff]  ;;  %v375_v26 = vld [vmem:[%s3750_s3 + $0x18] sm:$0xff] }
   0xf   : > { %s3321_s13 = scalar_lea.vmem %s3747_s0, %s2491_s10  ;;  %s332_s12 = scalar_lea.vmem %s3756_s9, %s2491_s10 }
  0x10   : > { %v335_v1 = vld [vmem:[%s3321_s13 + $0x10] sm:$0xff]  ;;  %v333_v2 = vld [vmem:[%s3321_s13] sm:$0xff]  ;;  %v336_v3 = vld [vmem:[%s3321_s13 + $0x18] sm:$0xff] }
  0x11   : > { %354 = vrot.lane.b32.xlu1 %v335_v1, %s3233_s14  ;;  %350 = vrot.lane.b32.xlu0 %v333_v2, %s3233_s14  ;;  %v334_v4 = vld [vmem:[%s3321_s13 + $0x8] sm:$0xff] }
  0x15   : > { %356 = vrot.lane.b32.xlu1 %v336_v3, %s3233_s14  ;;  %352 = vrot.lane.b32.xlu0 %v334_v4, %s3233_s14  ;;  %v2388_v4 = vld [vmem:[%s3750_s3 + $0x38] sm:$0xff] }
  0x83   : > { %v355_v5 = vpop.permute.xlu1 %354  ;;  %v351_v6 = vpop.permute.xlu0 %350 }
  0x84   : > { %368 = vst.msk [vmem:[#allocation2 + $0x20] sm:$0xff] %vm362_vm1, %v355_v5  ;;  %363 = vst.msk [vmem:[#allocation2] sm:$0xff] %vm362_vm1, %v351_v6 }
  0x85   : > { %369 = vst.msk [vmem:[#allocation2 + $0x28] sm:$0xff] %vm364_vm2, %v355_v5  ;;  %365 = vst.msk [vmem:[#allocation2 + $0x8] sm:$0xff] %vm364_vm2, %v351_v6 }
  0x87   : > { %v357_v7 = vpop.permute.xlu1 %356  ;;  %v353_v8 = vpop.permute.xlu0 %352 }
  0x88   : > { %370 = vst.msk [vmem:[#allocation2 + $0x30] sm:$0xff] %vm362_vm1, %v357_v7  ;;  %366 = vst.msk [vmem:[#allocation2 + $0x10] sm:$0xff] %vm362_vm1, %v353_v8 }
  0x89   : > { %371 = vst.msk [vmem:[#allocation2 + $0x38] sm:$0xff] %vm364_vm2, %v357_v7  ;;  %367 = vst.msk [vmem:[#allocation2 + $0x18] sm:$0xff] %vm364_vm2, %v353_v8  ;;  %v372_v8 = vld [vmem:[%s3750_s3] sm:$0xff] }
  0x8b   : > { %v376_v9 = vld [vmem:[#allocation2] sm:$0xff] }
  0x8c   : > { %v385_v10 = vld [vmem:[#allocation2 + $0x8] sm:$0xff]  ;;  %v378_v11 = vld [vmem:[#allocation2 + $0x20] sm:$0xff] }
  0x8d   : > { %v2978_v12 = vpack.i.bf16 %v385_v10, %v376_v9  ;;  %v387_v13 = vld [vmem:[#allocation2 + $0x28] sm:$0xff] }
  0x8e   : > { %v2988_v14 = vpack.i.bf16 %v387_v13, %v378_v11 }
  0x8f   : > { %2979 = vrot.lane.b32.xlu0 %v2978_v12, %s3234_s15  ;;  %v377_v15 = vld [vmem:[#allocation2 + $0x10] sm:$0xff] }
  0x90   : > { %v386_v16 = vld [vmem:[#allocation2 + $0x18] sm:$0xff]  ;;  %v379_v18 = vld [vmem:[#allocation2 + $0x30] sm:$0xff]  ;;  %v3345_v22 = vpack.c.bf16 %v377_v15, %v376_v9 }
  0x91   : > { %v2983_v17 = vpack.i.bf16 %v386_v16, %v377_v15  ;;  %v388_v19 = vld [vmem:[#allocation2 + $0x38] sm:$0xff]  ;;  %v3348_v23 = vpack.c.bf16 %v379_v18, %v378_v11  ;;  %v373_v15 = vld [vmem:[%s3750_s3 + $0x8] sm:$0xff] }
  0x92   : > { %v2993_v21 = vpack.i.bf16 %v388_v19, %v379_v18  ;;  %v374_v19 = vld [vmem:[%s3750_s3 + $0x10] sm:$0xff] }
  0x93   : > { %2989 = vrot.lane.b32.xlu0 %v2988_v14, %s3234_s15  ;;  %2984 = vrot.lane.b32.xlu1 %v2983_v17, %s3234_s15 }
  0x97   : > { %2999 = vrot.lane.b32.xlu0 %v2978_v12, %s3235_s18  ;;  %2994 = vrot.lane.b32.xlu1 %v2993_v21, %s3234_s15 }
  0x9b   : > { %3009 = vrot.lane.b32.xlu0 %v2988_v14, %s3235_s18  ;;  %3004 = vrot.lane.b32.xlu1 %v2983_v17, %s3235_s18 }
  0x9f   : > { %3019 = vrot.lane.b32.xlu0 %v2978_v12, %s3236_s19  ;;  %3014 = vrot.lane.b32.xlu1 %v2993_v21, %s3235_s18 }
  0xa3   : > { %3029 = vrot.lane.b32.xlu0 %v2988_v14, %s3236_s19  ;;  %3024 = vrot.lane.b32.xlu1 %v2983_v17, %s3236_s19 }
  0xa7   : > { %3039 = vrot.lane.b32.xlu0 %v2978_v12, %s3237_s20  ;;  %3034 = vrot.lane.b32.xlu1 %v2993_v21, %s3236_s19 }
  0xab   : > { %3049 = vrot.lane.b32.xlu0 %v2988_v14, %s3237_s20  ;;  %3044 = vrot.lane.b32.xlu1 %v2983_v17, %s3237_s20 }
  0xaf   : > { %3059 = vrot.lane.b32.xlu0 %v2978_v12, %s3238_s21  ;;  %3054 = vrot.lane.b32.xlu1 %v2993_v21, %s3237_s20 }
  0xb3   : > { %3069 = vrot.lane.b32.xlu0 %v2988_v14, %s3238_s21  ;;  %3064 = vrot.lane.b32.xlu1 %v2983_v17, %s3238_s21 }
  0xb7   : > { %3079 = vrot.lane.b32.xlu0 %v2978_v12, %s3239_s22  ;;  %3074 = vrot.lane.b32.xlu1 %v2993_v21, %s3238_s21 }
  0xbb   : > { %3089 = vrot.lane.b32.xlu0 %v2988_v14, %s3239_s22  ;;  %3084 = vrot.lane.b32.xlu1 %v2983_v17, %s3239_s22 }
  0xbf   : > { %3094 = vrot.lane.b32.xlu1 %v2993_v21, %s3239_s22  ;;  %1278 = vperm.xlu0 %3098, %v1272_v24  }
  0xc3   : > { %1283 = vperm.xlu1 %3099, %v1273_v25   ;;  %1311 = vperm.xlu0 %3098, %v1301_v27  }
  0xc7   : > { %1306 = vperm.xlu1 %3099, %v1300_v28   ;;  %1293 = vperm.xlu0 %3098, %v1275_v29  }
  0xcb   : > { %1288 = vperm.xlu1 %3099, %v1274_v30   ;;  %1339 = vperm.xlu0 %3098, %v1329_v31   ;;  %v2397_v30 = vld [vmem:[%s3750_s3 + $0x40] sm:$0xff] }
  0xcf   : > { %1334 = vperm.xlu1 %3099, %v1328_v32   ;;  %1321 = vperm.xlu0 %3098, %v1303_v33  }
  0xd3   : > { %1316 = vperm.xlu1 %3099, %v1302_v34   ;;  %1349 = vperm.xlu0 %3098, %v1331_v35  }
  0xd7   : > { %1344 = vperm.xlu1 %3099, %v1330_v36  }
 0x101   : > { %v2980_v37 = vpop.permute.xlu0 %2979 }
 0x102   : > { %v2982_v38 = vunpack.i.h.bf16 %v2980_v37  ;;  %v2981_v39 = vunpack.i.l.bf16 %v2980_v37  ;;  %v2398_v37 = vld [vmem:[%s3750_s3 + $0x48] sm:$0xff] }
 0x104   : > { %v414_v46 = vsel %vm413_vm4, %v2981_v39, %v2982_v38 }
 0x105   : > { %v2985_v40 = vpop.permute.xlu1 %2984  ;;  %v2990_v41 = vpop.permute.xlu0 %2989 }
 0x106   : > { %v2987_v42 = vunpack.i.h.bf16 %v2985_v40  ;;  %v2986_v43 = vunpack.i.l.bf16 %v2985_v40  ;;  %v2992_v44 = vunpack.i.h.bf16 %v2990_v41  ;;  %v2991_v45 = vunpack.i.l.bf16 %v2990_v41  ;;  %v2399_v41 = vld [vmem:[%s3750_s3 + $0x50] sm:$0xff] }
 0x108   : > { %v415_v47 = vsel %vm413_vm4, %v2986_v43, %v2987_v42  ;;  %v416_v53 = vsel %vm413_vm4, %v2991_v45, %v2992_v44 }
 0x109   : > { %v2995_v48 = vpop.permute.xlu1 %2994  ;;  %v3000_v49 = vpop.permute.xlu0 %2999  ;;  %v2801_v50 = vpack.c.bf16 %v415_v47, %v414_v46 }
 0x10a   : > { %v2997_v51 = vunpack.i.h.bf16 %v2995_v48  ;;  %v2996_v52 = vunpack.i.l.bf16 %v2995_v48  ;;  %v3002_v0 = vunpack.i.h.bf16 %v3000_v49  ;;  %v3001_v1 = vunpack.i.l.bf16 %v3000_v49  ;;  %v2400_v48 = vld [vmem:[%s3750_s3 + $0x58] sm:$0xff] }
 0x10b   : > { %2802 = vmatprep.subr.bf16.mxu0 %v2801_v50 }
 0x10c   : > { %2804 = vmatpush3.bf16.msra.mxu0 %v2801_v50  ;;  %v417_v54 = vsel %vm413_vm4, %v2996_v52, %v2997_v51  ;;  %v639_v11 = vsel %vm638_vm5, %v3001_v1, %v3002_v0  ;;  %v2405_v51 = vld [vmem:[%s3750_s3 + $0x60] sm:$0xff] }
 0x10d   : > { %v3005_v55 = vpop.permute.xlu1 %3004  ;;  %v3010_v56 = vpop.permute.xlu0 %3009  ;;  %v2805_v57 = vpack.c.bf16 %v417_v54, %v416_v53 }
 0x10e   : > { %v3007_v58 = vunpack.i.h.bf16 %v3005_v55  ;;  %v3006_v59 = vunpack.i.l.bf16 %v3005_v55  ;;  %v3012_v9 = vunpack.i.h.bf16 %v3010_v56  ;;  %v3011_v10 = vunpack.i.l.bf16 %v3010_v56 }
 0x10f   : > { %2806 = vmatprep.subr.bf16.mxu0 %v2805_v57 }
 0x110   : > { %2808 = vmatpush3.bf16.msra.mxu0 %v2805_v57  ;;  %v640_v5 = vsel %vm638_vm5, %v3006_v59, %v3007_v58  ;;  %v2406_v59 = vld [vmem:[%s3750_s3 + $0x68] sm:$0xff] }
 0x111   : > { %v3015_v61 = vpop.permute.xlu1 %3014  ;;  %v3020_v62 = vpop.permute.xlu0 %3019  ;;  %2810 = vmatprep.subr.bf16.mxu0 %v3345_v22  ;;  %v2817_v12 = vpack.c.bf16 %v640_v5, %v639_v11  ;;  %v2408_v5 = vld [vmem:[%s3750_s3 + $0x78] sm:$0xff] }
 0x112   : > { %v3017_v2 = vunpack.i.h.bf16 %v3015_v61  ;;  %v3016_v3 = vunpack.i.l.bf16 %v3015_v61  ;;  %v3022_v20 = vunpack.i.h.bf16 %v3020_v62  ;;  %v3021_v21 = vunpack.i.l.bf16 %v3020_v62  ;;  %v2407_v62 = vld [vmem:[%s3750_s3 + $0x70] sm:$0xff] }
 0x113   : > { %2614 = vmatmul.mubr.msk.f32.vlgmr.msra.gmra.mrb[0].mxu0 %vm422_vm3, %v2386_v60 }
 0x114   : > { %2812 = vmatpush3.bf16.msra.mxu0 %v3345_v22  ;;  %2616 = vmatprep.mubr.msk.f32.mxu0 %vm422_vm3, %v2387_v63  ;;  %v642_v16 = vsel %vm638_vm5, %v3016_v3, %v3017_v2  ;;  %v641_v22 = vsel %vm638_vm5, %v3011_v10, %v3012_v9  ;;  %v770_v33 = vsel %vm769_vm6, %v3021_v21, %v3022_v20  ;;  %v2413_v9 = vld [vmem:[%s3750_s3 + $0x80] sm:$0xff] }
 0x115   : > { %v3025_v6 = vpop.permute.xlu1 %3024  ;;  %v3030_v7 = vpop.permute.xlu0 %3029  ;;  %2814 = vmatprep.subr.bf16.mxu0 %v3348_v23 }
 0x116   : > { %v3027_v13 = vunpack.i.h.bf16 %v3025_v6  ;;  %v3026_v14 = vunpack.i.l.bf16 %v3025_v6  ;;  %v3032_v31 = vunpack.i.h.bf16 %v3030_v7  ;;  %v3031_v32 = vunpack.i.l.bf16 %v3030_v7 }
 0x117   : > { %2617 = vmatmul.mubr.msk.f32.gmra.mrb[2].mxu0 %vm422_vm3, %v2388_v4 }
 0x118   : > { %2816 = vmatpush3.bf16.msra.mxu0 %v3348_v23  ;;  %2627 = vmatprep.mubr.msk.f32.mxu0 %vm422_vm3, %v372_v8  ;;  %v2821_v23 = vpack.c.bf16 %v642_v16, %v641_v22  ;;  %v771_v27 = vsel %vm769_vm6, %v3026_v14, %v3027_v13  ;;  %v772_v44 = vsel %vm769_vm6, %v3031_v32, %v3032_v31  ;;  %v2414_v16 = vld [vmem:[%s3750_s3 + $0x88] sm:$0xff] }
 0x119   : > { %v3035_v17 = vpop.permute.xlu1 %3034  ;;  %v3040_v18 = vpop.permute.xlu0 %3039  ;;  %2818 = vmatprep.subr.bf16.mxu0 %v2817_v12  ;;  %v2825_v34 = vpack.c.bf16 %v771_v27, %v770_v33  ;;  %v2416_v27 = vld [vmem:[%s3750_s3 + $0x98] sm:$0xff] }
 0x11a   : > { %v3037_v24 = vunpack.i.h.bf16 %v3035_v17  ;;  %v3036_v25 = vunpack.i.l.bf16 %v3035_v17  ;;  %v3042_v42 = vunpack.i.h.bf16 %v3040_v18  ;;  %v3041_v43 = vunpack.i.l.bf16 %v3040_v18 }
 0x11b   : > { %2628 = vmatmul.mubr.msk.f32.vlgmr.msra.gmra.mrb[0].mxu0 %vm422_vm3, %v373_v15 }
 0x11c   : > { %2820 = vmatpush3.bf16.msra.mxu0 %v2817_v12  ;;  %2630 = vmatprep.mubr.msk.f32.mxu0 %vm422_vm3, %v374_v19  ;;  %v773_v38 = vsel %vm769_vm6, %v3036_v25, %v3037_v24  ;;  %v901_v54 = vsel %vm900_vm7, %v3041_v43, %v3042_v42  ;;  %v2415_v19 = vld [vmem:[%s3750_s3 + $0x90] sm:$0xff]  ;;  %v2432_v43 = vld [vmem:[%s3750_s3 + $0xd8] sm:$0xff] }
 0x11d   : > { %v3045_v28 = vpop.permute.xlu1 %3044  ;;  %v3050_v29 = vpop.permute.xlu0 %3049  ;;  %2822 = vmatprep.subr.bf16.mxu0 %v2821_v23  ;;  %v2829_v45 = vpack.c.bf16 %v773_v38, %v772_v44  ;;  %v2431_v42 = vld [vmem:[%s3750_s3 + $0xd0] sm:$0xff] }
 0x11e   : > { %v3047_v35 = vunpack.i.h.bf16 %v3045_v28  ;;  %v3046_v36 = vunpack.i.l.bf16 %v3045_v28  ;;  %v3052_v52 = vunpack.i.h.bf16 %v3050_v29  ;;  %v3051_v53 = vunpack.i.l.bf16 %v3050_v29  ;;  %v2421_v29 = vld [vmem:[%s3750_s3 + $0xa0] sm:$0xff] }
 0x11f   : > { %2631 = vmatmul.mubr.msk.f32.gmra.mrb[2].mxu0 %vm422_vm3, %v375_v26 }
 0x120   : > { %2824 = vmatpush3.bf16.msra.mxu0 %v2821_v23  ;;  %2641 = vmatprep.mubr.msk.f32.mxu0 %vm422_vm3, %v2397_v30  ;;  %v902_v49 = vsel %vm900_vm7, %v3046_v36, %v3047_v35  ;;  %v903_v1 = vsel %vm900_vm7, %v3051_v53, %v3052_v52  ;;  %v2423_v36 = vld [vmem:[%s3750_s3 + $0xb0] sm:$0xff] }
 0x121   : > { %v3055_v39 = vpop.permute.xlu1 %3054  ;;  %v3060_v40 = vpop.permute.xlu0 %3059  ;;  %2826 = vmatprep.subr.bf16.mxu0 %v2825_v34  ;;  %v2833_v56 = vpack.c.bf16 %v902_v49, %v901_v54 }
 0x122   : > { %v3057_v46 = vunpack.i.h.bf16 %v3055_v39  ;;  %v3056_v47 = vunpack.i.l.bf16 %v3055_v39  ;;  %v3062_v63 = vunpack.i.h.bf16 %v3060_v40  ;;  %v3061_v0 = vunpack.i.l.bf16 %v3060_v40  ;;  %v2424_v39 = vld [vmem:[%s3750_s3 + $0xb8] sm:$0xff]  ;;  %v2429_v40 = vld [vmem:[%s3750_s3 + $0xc0] sm:$0xff] }
 0x123   : > { %2642 = vmatmul.mubr.msk.f32.vlgmr.msra.gmra.mrb[0].mxu0 %vm422_vm3, %v2398_v37 }
 0x124   : > { %2828 = vmatpush3.bf16.msra.mxu0 %v2825_v34  ;;  %2644 = vmatprep.mubr.msk.f32.mxu0 %vm422_vm3, %v2399_v41  ;;  %v904_v60 = vsel %vm900_vm7, %v3056_v47, %v3057_v46  ;;  %v1032_v12 = vsel %vm1031_vm8, %v3061_v0, %v3062_v63  ;;  %v2422_v34 = vld [vmem:[%s3750_s3 + $0xa8] sm:$0xff] }
 0x125   : > { %v3065_v50 = vpop.permute.xlu1 %3064  ;;  %2830 = vmatprep.subr.bf16.mxu0 %v2829_v45  ;;  %v3070_v55 = vpop.permute.xlu0 %3069  ;;  %v2837_v2 = vpack.c.bf16 %v904_v60, %v903_v1  ;;  %v2430_v41 = vld [vmem:[%s3750_s3 + $0xc8] sm:$0xff] }
 0x126   : > { %v3067_v57 = vunpack.i.h.bf16 %v3065_v50  ;;  %v3066_v58 = vunpack.i.l.bf16 %v3065_v50  ;;  %v3072_v10 = vunpack.i.h.bf16 %v3070_v55  ;;  %v3071_v11 = vunpack.i.l.bf16 %v3070_v55 }
 0x127   : > { %2645 = vmatmul.mubr.msk.f32.gmra.mrb[2].mxu0 %vm422_vm3, %v2400_v48 }
 0x128   : > { %2832 = vmatpush3.bf16.msra.mxu0 %v2829_v45  ;;  %2655 = vmatprep.mubr.msk.f32.mxu0 %vm422_vm3, %v2405_v51  ;;  %v1033_v6 = vsel %vm1031_vm8, %v3066_v58, %v3067_v57  ;;  %v1034_v22 = vsel %vm1031_vm8, %v3071_v11, %v3072_v10 }
 0x129   : > { %v3075_v61 = vpop.permute.xlu1 %3074  ;;  %2834 = vmatprep.subr.bf16.mxu0 %v2833_v56  ;;  %v3080_v7 = vpop.permute.xlu0 %3079  ;;  %v2841_v13 = vpack.c.bf16 %v1033_v6, %v1032_v12 }
 0x12a   : > { %v3077_v3 = vunpack.i.h.bf16 %v3075_v61  ;;  %v3076_v4 = vunpack.i.l.bf16 %v3075_v61  ;;  %v3082_v20 = vunpack.i.h.bf16 %v3080_v7  ;;  %v3081_v21 = vunpack.i.l.bf16 %v3080_v7 }
 0x12b   : > { %2656 = vmatmul.mubr.msk.f32.vlgmr.msra.gmra.mrb[0].mxu0 %vm422_vm3, %v2406_v59 }
 0x12c   : > { %2836 = vmatpush3.bf16.msra.mxu0 %v2833_v56  ;;  %2658 = vmatprep.mubr.msk.f32.mxu0 %vm422_vm3, %v2407_v62  ;;  %v1035_v17 = vsel %vm1031_vm8, %v3076_v4, %v3077_v3  ;;  %v1163_v32 = vsel %vm1162_vm9, %v3081_v21, %v3082_v20 }
 0x12d   : > { %v3085_v8 = vpop.permute.xlu1 %3084  ;;  %2838 = vmatprep.subr.bf16.mxu0 %v2837_v2  ;;  %v3090_v23 = vpop.permute.xlu0 %3089  ;;  %v2845_v24 = vpack.c.bf16 %v1035_v17, %v1034_v22  ;;  %v2437_v22 = vld [vmem:[%s3754_s7 + $0x20] sm:$0xff] }
 0x12e   : > { %v3087_v14 = vunpack.i.h.bf16 %v3085_v8  ;;  %v3086_v15 = vunpack.i.l.bf16 %v3085_v8  ;;  %v3092_v30 = vunpack.i.h.bf16 %v3090_v23  ;;  %v3091_v31 = vunpack.i.l.bf16 %v3090_v23  ;;  %2711 = vmatprep.mubr.msk.f32.mxu1 %vm422_vm3, %v2437_v22 }
 0x12f   : > { %2659 = vmatmul.mubr.msk.f32.gmra.mrb[2].mxu0 %vm422_vm3, %v2408_v5 }
 0x130   : > { %2840 = vmatpush3.bf16.msra.mxu0 %v2837_v2  ;;  %2669 = vmatprep.mubr.msk.f32.mxu0 %vm422_vm3, %v2413_v9  ;;  %v1164_v28 = vsel %vm1162_vm9, %v3086_v15, %v3087_v14  ;;  %v1165_v37 = vsel %vm1162_vm9, %v3091_v31, %v3092_v30  ;;  %v2286_v31 = vld [vmem:[%s3755_s8 + $0x8] sm:$0xff] }
 0x131   : > { %v3095_v18 = vpop.permute.xlu1 %3094  ;;  %2842 = vmatprep.subr.bf16.mxu0 %v2841_v13  ;;  %v2849_v33 = vpack.c.bf16 %v1164_v28, %v1163_v32  ;;  %v2285_v32 = vld [vmem:[%s3755_s8] sm:$0xff] }
 0x132   : > { %v3097_v25 = vunpack.i.h.bf16 %v3095_v18  ;;  %v3096_v26 = vunpack.i.l.bf16 %v3095_v18 }
 0x133   : > { %2670 = vmatmul.mubr.msk.f32.vlgmr.msra.gmra.mrb[0].mxu0 %vm422_vm3, %v2414_v16 }
 0x134   : > { %2844 = vmatpush3.bf16.msra.mxu0 %v2841_v13  ;;  %2672 = vmatprep.mubr.msk.f32.mxu0 %vm422_vm3, %v2415_v19  ;;  %v1166_v35 = vsel %vm1162_vm9, %v3096_v26, %v3097_v25 }
 0x135   : > { %2846 = vmatprep.subr.bf16.mxu0 %v2845_v24  ;;  %v2853_v38 = vpack.c.bf16 %v1166_v35, %v1165_v37 }
 0x137   : > { %2673 = vmatmul.mubr.msk.f32.gmra.mrb[2].mxu0 %vm422_vm3, %v2416_v27 }
 0x138   : > { %2848 = vmatpush3.bf16.msra.mxu0 %v2845_v24  ;;  %2683 = vmatprep.mubr.msk.f32.mxu0 %vm422_vm3, %v2421_v29 }
 0x139   : > { %2850 = vmatprep.subr.bf16.mxu0 %v2849_v33 }
 0x13b   : > { %2684 = vmatmul.mubr.msk.f32.vlgmr.msra.gmra.mrb[0].mxu0 %vm422_vm3, %v2422_v34  ;;  %v2287_v34 = vld [vmem:[%s3755_s8 + $0x10] sm:$0xff] }
 0x13c   : > { %2852 = vmatpush3.bf16.msra.mxu0 %v2849_v33  ;;  %2686 = vmatprep.mubr.msk.f32.mxu0 %vm422_vm3, %v2423_v36  ;;  %v2288_v33 = vld [vmem:[%s3755_s8 + $0x18] sm:$0xff] }
 0x13d   : > { %2854 = vmatprep.subr.bf16.mxu0 %v2853_v38 }
 0x13e   : > { %v1279_v44 = vpop.permute.xlu0 %1278 }
 0x13f   : > { %2687 = vmatmul.mubr.msk.f32.gmra.mrb[2].mxu0 %vm422_vm3, %v2424_v39 }
 0x140   : > { %2856 = vmatpush3.bf16.msra.mxu0 %v2853_v38  ;;  %2697 = vmatprep.mubr.msk.f32.mxu0 %vm422_vm3, %v2429_v40 }
 0x142   : > { %v1284_v45 = vpop.permute.xlu1 %1283  ;;  %v1312_v46 = vpop.permute.xlu0 %1311 }
 0x143   : > { %2698 = vmatmul.mubr.msk.f32.vlgmr.msra.gmra.mrb[0].mxu0 %vm422_vm3, %v2430_v41 }
 0x144   : > { %2700 = vmatprep.mubr.msk.f32.mxu0 %vm422_vm3, %v2431_v42 }
 0x146   : > { %v1307_v47 = vpop.permute.xlu1 %1306  ;;  %v1294_v48 = vpop.permute.xlu0 %1293 }
 0x147   : > { %2701 = vmatmul.mubr.msk.f32.gmra.mrb[2].mxu0 %vm422_vm3, %v2432_v43 }
 0x14a   : > { %v1289_v49 = vpop.permute.xlu1 %1288  ;;  %v1340_v50 = vpop.permute.xlu0 %1339 }
 0x14e   : > { %v1335_v51 = vpop.permute.xlu1 %1334  ;;  %v1322_v55 = vpop.permute.xlu0 %1321 }
 0x152   : > { %v1317_v57 = vpop.permute.xlu1 %1316  ;;  %v1350_v4 = vpop.permute.xlu0 %1349 }
 0x156   : > { %v1345_v7 = vpop.permute.xlu1 %1344 }
 0x216   : > { %v2699_v52 = vpop.f32.mrb[0].mxu0 }
 0x217   : > { %v1297_v53 = vadd.f32 %v2699_v52, %v1284_v45  ;;  %v1249_v54 = vpop.f32.mrb[1].mxu0 }
 0x218   : > { %v1296_v56 = vadd.f32 %v1279_v44, %v1249_v54 }
 0x219   : > { %v1325_v58 = vmul.f32 %v1312_v46, %v1297_v53 }
 0x21a   : > { %v1324_v59 = vmul.f32 %v1307_v47, %v1296_v56  ;;  %v2702_v60 = vpop.f32.mrb[2].mxu0 }
 0x21b   : > { %v1299_v61 = vadd.f32 %v2702_v60, %v1294_v48  ;;  %v1259_v62 = vpop.f32.mrb[3].mxu0  ;;  %v1353_v63 = vadd.f32 %v1340_v50, %v1325_v58  ;;  %v2438_v60 = vld [vmem:[%s3754_s7 + $0x28] sm:$0xff] }
 0x21c   : > { %v1298_v0 = vadd.f32 %v1289_v49, %v1259_v62  ;;  %v1352_v1 = vadd.f32 %v1335_v51, %v1324_v59  ;;  %v2439_v62 = vld [vmem:[%s3754_s7 + $0x30] sm:$0xff] }
 0x21d   : > { %v1327_v2 = vmul.f32 %v1322_v55, %v1299_v61  ;;  %v1357_v3 = vmax.f32 %v1353_v63, 0.0 }
 0x21e   : > { %v1326_v5 = vmul.f32 %v1317_v57, %v1298_v0  ;;  %v1356_v6 = vmax.f32 %v1352_v1, 0.0 }
 0x21f   : > { %1374 = vrot.lane.b32.xlu0 %v1357_v3, %s3233_s14  ;;  %v1355_v8 = vadd.f32 %v1350_v4, %v1327_v2 }
 0x220   : > { %1372 = vrot.lane.b32.xlu1 %v1356_v6, %s3233_s14  ;;  %v1354_v9 = vadd.f32 %v1345_v7, %v1326_v5  ;;  %v2440_v6 = vld [vmem:[%s3754_s7 + $0x38] sm:$0xff] }
 0x221   : > { %v1359_v10 = vmax.f32 %v1355_v8, 0.0  ;;  %v1392_v8 = vld [vmem:[%s3754_s7] sm:$0xff] }
 0x222   : > { %v1358_v11 = vmax.f32 %v1354_v9, 0.0 }
 0x223   : > { %1378 = vrot.lane.b32.xlu0 %v1359_v10, %s3233_s14 }
 0x224   : > { %1376 = vrot.lane.b32.xlu1 %v1358_v11, %s3233_s14 }
 0x291   : > { %v1375_v12 = vpop.permute.xlu0 %1374 }
 0x292   : > { %1386 = vst.msk [vmem:[#allocation3 + $0x10] sm:$0xff] %vm362_vm1, %v1375_v12  ;;  %v1373_v13 = vpop.permute.xlu1 %1372 }
 0x293   : > { %1387 = vst.msk [vmem:[#allocation3 + $0x18] sm:$0xff] %vm364_vm2, %v1375_v12  ;;  %1385 = vst.msk [vmem:[#allocation3 + $0x8] sm:$0xff] %vm364_vm2, %v1373_v13 }
 0x294   : > { %1384 = vst.msk [vmem:[#allocation3] sm:$0xff] %vm362_vm1, %v1373_v13 }
 0x295   : > { %v1379_v14 = vpop.permute.xlu0 %1378 }
 0x296   : > { %1390 = vst.msk [vmem:[#allocation3 + $0x30] sm:$0xff] %vm362_vm1, %v1379_v14  ;;  %v1377_v15 = vpop.permute.xlu1 %1376 }
 0x297   : > { %1391 = vst.msk [vmem:[#allocation3 + $0x38] sm:$0xff] %vm364_vm2, %v1379_v14  ;;  %1389 = vst.msk [vmem:[#allocation3 + $0x28] sm:$0xff] %vm364_vm2, %v1377_v15 }
 0x298   : > { %1388 = vst.msk [vmem:[#allocation3 + $0x20] sm:$0xff] %vm362_vm1, %v1377_v15  ;;  %v1393_v15 = vld [vmem:[%s3754_s7 + $0x8] sm:$0xff] }
 0x299   : > { %v1397_v16 = vld [vmem:[#allocation3 + $0x10] sm:$0xff] }
 0x29a   : > { %v1406_v17 = vld [vmem:[#allocation3 + $0x18] sm:$0xff]  ;;  %v1405_v20 = vld [vmem:[#allocation3 + $0x8] sm:$0xff] }
 0x29b   : > { %v3100_v18 = vpack.i.bf16 %v1406_v17, %v1397_v16  ;;  %v1396_v19 = vld [vmem:[#allocation3] sm:$0xff] }
 0x29c   : > { %v3105_v21 = vpack.i.bf16 %v1405_v20, %v1396_v19  ;;  %v3560_v25 = vpack.c.bf16 %v1397_v16, %v1396_v19  ;;  %v1394_v19 = vld [vmem:[%s3754_s7 + $0x10] sm:$0xff] }
 0x29d   : > { %3101 = vrot.lane.b32.xlu0 %v3100_v18, %s3234_s15  ;;  %v1399_v23 = vld [vmem:[#allocation3 + $0x30] sm:$0xff] }
 0x29e   : > { %3106 = vrot.lane.b32.xlu1 %v3105_v21, %s3234_s15  ;;  %v1408_v24 = vld [vmem:[#allocation3 + $0x38] sm:$0xff]  ;;  %v1407_v28 = vld [vmem:[#allocation3 + $0x28] sm:$0xff] }
 0x29f   : > { %v3115_v26 = vpack.i.bf16 %v1408_v24, %v1399_v23  ;;  %v1398_v27 = vld [vmem:[#allocation3 + $0x20] sm:$0xff] }
 0x2a0   : > { %v3110_v29 = vpack.i.bf16 %v1407_v28, %v1398_v27  ;;  %v3565_v30 = vpack.c.bf16 %v1399_v23, %v1398_v27  ;;  %v1395_v28 = vld [vmem:[%s3754_s7 + $0x18] sm:$0xff] }
 0x2a1   : > { %3116 = vrot.lane.b32.xlu0 %v3115_v26, %s3234_s15 }
 0x2a2   : > { %3111 = vrot.lane.b32.xlu1 %v3110_v29, %s3234_s15 }
 0x2a5   : > { %3126 = vrot.lane.b32.xlu0 %v3100_v18, %s3235_s18 }
 0x2a6   : > { %3121 = vrot.lane.b32.xlu1 %v3105_v21, %s3235_s18 }
 0x2a9   : > { %3131 = vrot.lane.b32.xlu0 %v3115_v26, %s3235_s18 }
 0x2aa   : > { %3136 = vrot.lane.b32.xlu1 %v3110_v29, %s3235_s18 }
 0x2ad   : > { %3146 = vrot.lane.b32.xlu0 %v3100_v18, %s3236_s19 }
 0x2ae   : > { %3141 = vrot.lane.b32.xlu1 %v3105_v21, %s3236_s19 }
 0x2b1   : > { %3151 = vrot.lane.b32.xlu0 %v3115_v26, %s3236_s19 }
 0x2b2   : > { %3156 = vrot.lane.b32.xlu1 %v3110_v29, %s3236_s19 }
 0x2b5   : > { %3166 = vrot.lane.b32.xlu0 %v3100_v18, %s3237_s20 }
 0x2b6   : > { %3161 = vrot.lane.b32.xlu1 %v3105_v21, %s3237_s20 }
 0x2b9   : > { %3171 = vrot.lane.b32.xlu0 %v3115_v26, %s3237_s20 }
 0x2ba   : > { %3176 = vrot.lane.b32.xlu1 %v3110_v29, %s3237_s20 }
 0x2bd   : > { %3186 = vrot.lane.b32.xlu0 %v3100_v18, %s3238_s21 }
 0x2be   : > { %3181 = vrot.lane.b32.xlu1 %v3105_v21, %s3238_s21 }
 0x2c1   : > { %3191 = vrot.lane.b32.xlu0 %v3115_v26, %s3238_s21 }
 0x2c2   : > { %3196 = vrot.lane.b32.xlu1 %v3110_v29, %s3238_s21 }
 0x2c5   : > { %3206 = vrot.lane.b32.xlu0 %v3100_v18, %s3239_s22 }
 0x2c6   : > { %3201 = vrot.lane.b32.xlu1 %v3105_v21, %s3239_s22 }
 0x2c9   : > { %3216 = vrot.lane.b32.xlu0 %v3115_v26, %s3239_s22 }
 0x2ca   : > { %3211 = vrot.lane.b32.xlu1 %v3110_v29, %s3239_s22 }
 0x2cd   : > { %2296 = vperm.xlu0 %3098, %v2286_v31  }
 0x2ce   : > { %2291 = vperm.xlu1 %3099, %v2285_v32  }
 0x2d1   : > { %2306 = vperm.xlu0 %3098, %v2288_v33  }
 0x2d2   : > { %2301 = vperm.xlu1 %3099, %v2287_v34  }
 0x30f   : > { %v3102_v35 = vpop.permute.xlu0 %3101 }
 0x310   : > { %v3104_v36 = vunpack.i.h.bf16 %v3102_v35  ;;  %v3103_v37 = vunpack.i.l.bf16 %v3102_v35  ;;  %v3107_v38 = vpop.permute.xlu1 %3106 }
 0x311   : > { %v3109_v39 = vunpack.i.h.bf16 %v3107_v38  ;;  %v3108_v40 = vunpack.i.l.bf16 %v3107_v38 }
 0x312   : > { %v1434_v41 = vsel %vm413_vm4, %v3103_v37, %v3104_v36  ;;  %v2450_v37 = vld [vmem:[%s3754_s7 + $0x48] sm:$0xff] }
 0x313   : > { %v3117_v42 = vpop.permute.xlu0 %3116  ;;  %v1433_v43 = vsel %vm413_vm4, %v3108_v40, %v3109_v39 }
 0x314   : > { %v3119_v44 = vunpack.i.h.bf16 %v3117_v42  ;;  %v3118_v45 = vunpack.i.l.bf16 %v3117_v42  ;;  %v3112_v46 = vpop.permute.xlu1 %3111  ;;  %v2857_v47 = vpack.c.bf16 %v1434_v41, %v1433_v43  ;;  %v2451_v41 = vld [vmem:[%s3754_s7 + $0x50] sm:$0xff] }
 0x315   : > { %v3114_v48 = vunpack.i.h.bf16 %v3112_v46  ;;  %v3113_v49 = vunpack.i.l.bf16 %v3112_v46 }
 0x316   : > { %2858 = vmatprep.subr.bf16.mxu1 %v2857_v47  ;;  %v1436_v50 = vsel %vm413_vm4, %v3118_v45, %v3119_v44 }
 0x317   : > { %v3127_v51 = vpop.permute.xlu0 %3126  ;;  %2860 = vmatpush3.bf16.msra.mxu1 %v2857_v47  ;;  %v1435_v52 = vsel %vm413_vm4, %v3113_v49, %v3114_v48 }
 0x318   : > { %v3122_v53 = vpop.permute.xlu1 %3121  ;;  %v2861_v54 = vpack.c.bf16 %v1436_v50, %v1435_v52  ;;  %v3129_v55 = vunpack.i.h.bf16 %v3127_v51  ;;  %v3128_v56 = vunpack.i.l.bf16 %v3127_v51  ;;  %v2452_v50 = vld [vmem:[%s3754_s7 + $0x58] sm:$0xff]  ;;  %v2457_v52 = vld [vmem:[%s3754_s7 + $0x60] sm:$0xff] }
 0x319   : > { %v3124_v57 = vunpack.i.h.bf16 %v3122_v53  ;;  %v3123_v58 = vunpack.i.l.bf16 %v3122_v53 }
 0x31a   : > { %2862 = vmatprep.subr.bf16.mxu1 %v2861_v54  ;;  %v1657_v0 = vsel %vm638_vm5, %v3128_v56, %v3129_v55 }
 0x31b   : > { %v3132_v59 = vpop.permute.xlu0 %3131  ;;  %2864 = vmatpush3.bf16.msra.mxu1 %v2861_v54  ;;  %v1656_v63 = vsel %vm638_vm5, %v3123_v58, %v3124_v57 }
 0x31c   : > { %v3137_v61 = vpop.permute.xlu1 %3136  ;;  %2866 = vmatprep.subr.bf16.mxu1 %v3560_v25  ;;  %v3134_v1 = vunpack.i.h.bf16 %v3132_v59  ;;  %v3133_v2 = vunpack.i.l.bf16 %v3132_v59  ;;  %v2873_v9 = vpack.c.bf16 %v1657_v0, %v1656_v63  ;;  %v2458_v59 = vld [vmem:[%s3754_s7 + $0x68] sm:$0xff]  ;;  %v2459_v63 = vld [vmem:[%s3754_s7 + $0x70] sm:$0xff] }
 0x31d   : > { %v3139_v3 = vunpack.i.h.bf16 %v3137_v61  ;;  %v3138_v4 = vunpack.i.l.bf16 %v3137_v61 }
 0x31e   : > { %2712 = vmatmul.mubr.msk.f32.vlgmr.msra.gmra.mrb[0].mxu1 %vm422_vm3, %v2438_v60  ;;  %v1659_v17 = vsel %vm638_vm5, %v3133_v2, %v3134_v1 }
 0x31f   : > { %v3147_v5 = vpop.permute.xlu0 %3146  ;;  %2868 = vmatpush3.bf16.msra.mxu1 %v3560_v25  ;;  %2714 = vmatprep.mubr.msk.f32.mxu1 %vm422_vm3, %v2439_v62  ;;  %v1658_v16 = vsel %vm638_vm5, %v3138_v4, %v3139_v3 }
 0x320   : > { %v3142_v7 = vpop.permute.xlu1 %3141  ;;  %2870 = vmatprep.subr.bf16.mxu1 %v3565_v30  ;;  %v3149_v10 = vunpack.i.h.bf16 %v3147_v5  ;;  %v3148_v11 = vunpack.i.l.bf16 %v3147_v5  ;;  %v2877_v20 = vpack.c.bf16 %v1659_v17, %v1658_v16  ;;  %v2466_v16 = vld [vmem:[%s3754_s7 + $0x88] sm:$0xff] }
 0x321   : > { %v3144_v12 = vunpack.i.h.bf16 %v3142_v7  ;;  %v3143_v13 = vunpack.i.l.bf16 %v3142_v7 }
 0x322   : > { %2715 = vmatmul.mubr.msk.f32.gmra.mrb[2].mxu1 %vm422_vm3, %v2440_v6  ;;  %v1787_v22 = vsel %vm769_vm6, %v3148_v11, %v3149_v10  ;;  %v2465_v10 = vld [vmem:[%s3754_s7 + $0x80] sm:$0xff] }
 0x323   : > { %v3152_v14 = vpop.permute.xlu0 %3151  ;;  %2872 = vmatpush3.bf16.msra.mxu1 %v3565_v30  ;;  %2725 = vmatprep.mubr.msk.f32.mxu1 %vm422_vm3, %v1392_v8  ;;  %v1786_v21 = vsel %vm769_vm6, %v3143_v13, %v3144_v12  ;;  %v2449_v30 = vld [vmem:[%s3754_s7 + $0x40] sm:$0xff]  ;;  %v2460_v8 = vld [vmem:[%s3754_s7 + $0x78] sm:$0xff] }
 0x324   : > { %v3157_v18 = vpop.permute.xlu1 %3156  ;;  %2874 = vmatprep.subr.bf16.mxu1 %v2873_v9  ;;  %v3154_v23 = vunpack.i.h.bf16 %v3152_v14  ;;  %v3153_v24 = vunpack.i.l.bf16 %v3152_v14  ;;  %v2881_v31 = vpack.c.bf16 %v1787_v22, %v1786_v21  ;;  %v2467_v21 = vld [vmem:[%s3754_s7 + $0x90] sm:$0xff] }
 0x325   : > { %v3159_v25 = vunpack.i.h.bf16 %v3157_v18  ;;  %v3158_v26 = vunpack.i.l.bf16 %v3157_v18 }
 0x326   : > { %2726 = vmatmul.mubr.msk.f32.vlgmr.msra.gmra.mrb[0].mxu1 %vm422_vm3, %v1393_v15  ;;  %v1789_v39 = vsel %vm769_vm6, %v3153_v24, %v3154_v23 }
 0x327   : > { %v3167_v27 = vpop.permute.xlu0 %3166  ;;  %2876 = vmatpush3.bf16.msra.mxu1 %v2873_v9  ;;  %2728 = vmatprep.mubr.msk.f32.mxu1 %vm422_vm3, %v1394_v19  ;;  %v1788_v38 = vsel %vm769_vm6, %v3158_v26, %v3159_v25 }
 0x328   : > { %v3162_v29 = vpop.permute.xlu1 %3161  ;;  %2878 = vmatprep.subr.bf16.mxu1 %v2877_v20  ;;  %v3169_v32 = vunpack.i.h.bf16 %v3167_v27  ;;  %v3168_v33 = vunpack.i.l.bf16 %v3167_v27  ;;  %v2885_v42 = vpack.c.bf16 %v1789_v39, %v1788_v38  ;;  %v2481_v38 = vld [vmem:[%s3754_s7 + $0xc0] sm:$0xff]  ;;  %v2482_v39 = vld [vmem:[%s3754_s7 + $0xc8] sm:$0xff] }
 0x329   : > { %v3164_v34 = vunpack.i.h.bf16 %v3162_v29  ;;  %v3163_v35 = vunpack.i.l.bf16 %v3162_v29  ;;  %v2468_v29 = vld [vmem:[%s3754_s7 + $0x98] sm:$0xff] }
 0x32a   : > { %2729 = vmatmul.mubr.msk.f32.gmra.mrb[2].mxu1 %vm422_vm3, %v1395_v28  ;;  %v1917_v44 = vsel %vm900_vm7, %v3168_v33, %v3169_v32  ;;  %v2474_v32 = vld [vmem:[%s3754_s7 + $0xa8] sm:$0xff] }
 0x32b   : > { %v3172_v36 = vpop.permute.xlu0 %3171  ;;  %2880 = vmatpush3.bf16.msra.mxu1 %v2877_v20  ;;  %2739 = vmatprep.mubr.msk.f32.mxu1 %vm422_vm3, %v2449_v30  ;;  %v1916_v43 = vsel %vm900_vm7, %v3163_v35, %v3164_v34  ;;  %v2473_v30 = vld [vmem:[%s3754_s7 + $0xa0] sm:$0xff]  ;;  %v2475_v35 = vld [vmem:[%s3754_s7 + $0xb0] sm:$0xff] }
 0x32c   : > { %v3177_v40 = vpop.permute.xlu1 %3176  ;;  %2882 = vmatprep.subr.bf16.mxu1 %v2881_v31  ;;  %v3174_v45 = vunpack.i.h.bf16 %v3172_v36  ;;  %v3173_v46 = vunpack.i.l.bf16 %v3172_v36  ;;  %v2889_v53 = vpack.c.bf16 %v1917_v44, %v1916_v43 }
 0x32d   : > { %v3179_v47 = vunpack.i.h.bf16 %v3177_v40  ;;  %v3178_v48 = vunpack.i.l.bf16 %v3177_v40  ;;  %v2483_v40 = vld [vmem:[%s3754_s7 + $0xd0] sm:$0xff] }
 0x32e   : > { %2740 = vmatmul.mubr.msk.f32.vlgmr.msra.gmra.mrb[0].mxu1 %vm422_vm3, %v2450_v37  ;;  %v1919_v61 = vsel %vm900_vm7, %v3173_v46, %v3174_v45  ;;  %v2476_v37 = vld [vmem:[%s3754_s7 + $0xb8] sm:$0xff] }
 0x32f   : > { %v3187_v49 = vpop.permute.xlu0 %3186  ;;  %2884 = vmatpush3.bf16.msra.mxu1 %v2881_v31  ;;  %2742 = vmatprep.mubr.msk.f32.mxu1 %vm422_vm3, %v2451_v41  ;;  %v1918_v60 = vsel %vm900_vm7, %v3178_v48, %v3179_v47  ;;  %v2484_v41 = vld [vmem:[%s3754_s7 + $0xd8] sm:$0xff]  ;;  %v3220_v48 = vld [vmem:[%s3321_s13 + $0x8] sm:$0xff] }
 0x330   : > { %v3182_v51 = vpop.permute.xlu1 %3181  ;;  %2886 = vmatprep.subr.bf16.mxu1 %v2885_v42  ;;  %v3189_v54 = vunpack.i.h.bf16 %v3187_v49  ;;  %v3188_v55 = vunpack.i.l.bf16 %v3187_v49  ;;  %v2893_v0 = vpack.c.bf16 %v1919_v61, %v1918_v60  ;;  %v3223_v60 = vld [vmem:[%s3321_s13 + $0x10] sm:$0xff] }
 0x331   : > { %v3184_v56 = vunpack.i.h.bf16 %v3182_v51  ;;  %v3183_v57 = vunpack.i.l.bf16 %v3182_v51  ;;  %v3221_v51 = vld [vmem:[%s3321_s13] sm:$0xff] }
 0x332   : > { %2743 = vmatmul.mubr.msk.f32.gmra.mrb[2].mxu1 %vm422_vm3, %v2452_v50  ;;  %v2047_v2 = vsel %vm1031_vm8, %v3188_v55, %v3189_v54 }
 0x333   : > { %v3192_v58 = vpop.permute.xlu0 %3191  ;;  %2888 = vmatpush3.bf16.msra.mxu1 %v2885_v42  ;;  %2753 = vmatprep.mubr.msk.f32.mxu1 %vm422_vm3, %v2457_v52  ;;  %v2046_v1 = vsel %vm1031_vm8, %v3183_v57, %v3184_v56 }
 0x334   : > { %v3197_v62 = vpop.permute.xlu1 %3196  ;;  %2890 = vmatprep.subr.bf16.mxu1 %v2889_v53  ;;  %v3194_v3 = vunpack.i.h.bf16 %v3192_v58  ;;  %v3193_v4 = vunpack.i.l.bf16 %v3192_v58  ;;  %v2897_v11 = vpack.c.bf16 %v2047_v2, %v2046_v1  ;;  %v3222_v58 = vld [vmem:[%s3321_s13 + $0x18] sm:$0xff] }
 0x335   : > { %v3199_v5 = vunpack.i.h.bf16 %v3197_v62  ;;  %v3198_v6 = vunpack.i.l.bf16 %v3197_v62 }
 0x336   : > { %2754 = vmatmul.mubr.msk.f32.vlgmr.msra.gmra.mrb[0].mxu1 %vm422_vm3, %v2458_v59  ;;  %v2049_v18 = vsel %vm1031_vm8, %v3193_v4, %v3194_v3 }
 0x337   : > { %v3207_v7 = vpop.permute.xlu0 %3206  ;;  %2892 = vmatpush3.bf16.msra.mxu1 %v2889_v53  ;;  %2756 = vmatprep.mubr.msk.f32.mxu1 %vm422_vm3, %v2459_v63  ;;  %v2048_v17 = vsel %vm1031_vm8, %v3198_v6, %v3199_v5 }
 0x338   : > { %v3202_v9 = vpop.permute.xlu1 %3201  ;;  %2894 = vmatprep.subr.bf16.mxu1 %v2893_v0  ;;  %v3209_v12 = vunpack.i.h.bf16 %v3207_v7  ;;  %v3208_v13 = vunpack.i.l.bf16 %v3207_v7  ;;  %v2901_v22 = vpack.c.bf16 %v2049_v18, %v2048_v17 }
 0x339   : > { %v3204_v14 = vunpack.i.h.bf16 %v3202_v9  ;;  %v3203_v15 = vunpack.i.l.bf16 %v3202_v9 }
 0x33a   : > { %2757 = vmatmul.mubr.msk.f32.gmra.mrb[2].mxu1 %vm422_vm3, %v2460_v8  ;;  %v2177_v24 = vsel %vm1162_vm9, %v3208_v13, %v3209_v12 }
 0x33b   : > { %2896 = vmatpush3.bf16.msra.mxu1 %v2893_v0  ;;  %2767 = vmatprep.mubr.msk.f32.mxu1 %vm422_vm3, %v2465_v10  ;;  %v3217_v19 = vpop.permute.xlu0 %3216  ;;  %v2176_v23 = vsel %vm1162_vm9, %v3203_v15, %v3204_v14 }
 0x33c   : > { %v3212_v20 = vpop.permute.xlu1 %3211  ;;  %2898 = vmatprep.subr.bf16.mxu1 %v2897_v11  ;;  %v3219_v25 = vunpack.i.h.bf16 %v3217_v19  ;;  %v3218_v26 = vunpack.i.l.bf16 %v3217_v19  ;;  %v2905_v31 = vpack.c.bf16 %v2177_v24, %v2176_v23 }
 0x33d   : > { %v3214_v27 = vunpack.i.h.bf16 %v3212_v20  ;;  %v3213_v28 = vunpack.i.l.bf16 %v3212_v20 }
 0x33e   : > { %2768 = vmatmul.mubr.msk.f32.vlgmr.msra.gmra.mrb[0].mxu1 %vm422_vm3, %v2466_v16  ;;  %v2179_v34 = vsel %vm1162_vm9, %v3218_v26, %v3219_v25 }
 0x33f   : > { %2900 = vmatpush3.bf16.msra.mxu1 %v2897_v11  ;;  %2770 = vmatprep.mubr.msk.f32.mxu1 %vm422_vm3, %v2467_v21  ;;  %v2178_v33 = vsel %vm1162_vm9, %v3213_v28, %v3214_v27 }
 0x340   : > { %2902 = vmatprep.subr.bf16.mxu1 %v2901_v22  ;;  %v2909_v36 = vpack.c.bf16 %v2179_v34, %v2178_v33 }
 0x342   : > { %2771 = vmatmul.mubr.msk.f32.gmra.mrb[2].mxu1 %vm422_vm3, %v2468_v29 }
 0x343   : > { %2904 = vmatpush3.bf16.msra.mxu1 %v2901_v22  ;;  %2781 = vmatprep.mubr.msk.f32.mxu1 %vm422_vm3, %v2473_v30 }
 0x344   : > { %2906 = vmatprep.subr.bf16.mxu1 %v2905_v31 }
 0x346   : > { %2782 = vmatmul.mubr.msk.f32.vlgmr.msra.gmra.mrb[0].mxu1 %vm422_vm3, %v2474_v32 }
 0x347   : > { %2908 = vmatpush3.bf16.msra.mxu1 %v2905_v31  ;;  %2784 = vmatprep.mubr.msk.f32.mxu1 %vm422_vm3, %v2475_v35 }
 0x348   : > { %2910 = vmatprep.subr.bf16.mxu1 %v2909_v36 }
 0x34a   : > { %2785 = vmatmul.mubr.msk.f32.gmra.mrb[2].mxu1 %vm422_vm3, %v2476_v37 }
 0x34b   : > { %2912 = vmatpush3.bf16.msra.mxu1 %v2909_v36  ;;  %2795 = vmatprep.mubr.msk.f32.mxu1 %vm422_vm3, %v2481_v38 }
 0x34c   : > { %v2297_v42 = vpop.permute.xlu0 %2296 }
 0x34d   : > { %v2292_v43 = vpop.permute.xlu1 %2291 }
 0x34e   : > { %2796 = vmatmul.mubr.msk.f32.vlgmr.msra.gmra.mrb[0].mxu1 %vm422_vm3, %v2482_v39 }
 0x34f   : > { %2798 = vmatprep.mubr.msk.f32.mxu1 %vm422_vm3, %v2483_v40 }
 0x350   : > { %v2307_v50 = vpop.permute.xlu0 %2306 }
 0x351   : > { %v2302_v54 = vpop.permute.xlu1 %2301 }
 0x352   : > { %2799 = vmatmul.mubr.msk.f32.gmra.mrb[2].mxu1 %vm422_vm3, %v2484_v41 }
 0x421   : > { %v2797_v44 = vpop.f32.mrb[0].mxu1 }
 0x422   : > { %v2310_v45 = vadd.f32 %v2797_v44, %v2297_v42  ;;  %v2262_v46 = vpop.f32.mrb[1].mxu1 }
 0x423   : > { %v2309_v47 = vadd.f32 %v2292_v43, %v2262_v46 }
 0x424   : > { %v2314_v49 = vadd.f32 %v3220_v48, %v2310_v45 }
 0x425   : > { %v2313_v52 = vadd.f32 %v3221_v51, %v2309_v47  ;;  %v2800_v53 = vpop.f32.mrb[2].mxu1 }
 0x426   : > { %2318 = vst [vmem:[%s332_s12 + $0x8] sm:$0xff] %v2314_v49  ;;  %v2312_v55 = vadd.f32 %v2800_v53, %v2307_v50  ;;  %v2272_v56 = vpop.f32.mrb[3].mxu1 }
 0x427   : > { %2317 = vst [vmem:[%s332_s12] sm:$0xff] %v2313_v52  ;;  %v2311_v57 = vadd.f32 %v2302_v54, %v2272_v56 }
 0x428   : > { %v2316_v59 = vadd.f32 %v3222_v58, %v2312_v55 }
 0x429   : > { %v2315_v61 = vadd.f32 %v3223_v60, %v2311_v57 }
 0x42a   : > { %2320 = vst [vmem:[%s332_s12 + $0x18] sm:$0xff] %v2316_v59 }
 0x42b   : > { %2319 = vst [vmem:[%s332_s12 + $0x10] sm:$0xff] %v2315_v61 }
 0x42c PF: > { %s19_s28 = sadd.s32 1, %s3230_s28  }
 0x42d   : > { %p16_p4 = scmp.ge.s32.totalorder %s19_s28, 6  }
 0x42f   :  { %18 = sbr.rel (!%p16_p4) target bundleno = 1 (0x1), region = 98 }

// kernel: forward.7
= control target key start
LH: loop header
LB: loop body
LE: loop exit
PB: predicated region body
PF: predicated region fallthrough
CT: control target
= control target key end

     0   :  { %s2881_s27 = smov 0   ;;  %s3211_s0 = inlined_call_operand.vmem [shape: f32[4,7,32,64], index: 0, kind: input, shape index: {}]   ;;  %s3212_s1 = inlined_call_operand.vmem [shape: f32[4,32,64], index: 1, kind: input, shape index: {}]   ;;  %s3213_s2 = inlined_call_operand.vmem [shape: f32[7,32,32], index: 2, kind: input, shape index: {}]   ;;  %s3214_s3 = inlined_call_operand.vmem [shape: f32[32,1], index: 3, kind: input, shape index: {}]   ;;  %s3215_s4 = inlined_call_operand.vmem [shape: f32[32,1], index: 4, kind: input, shape index: {}]   ;;  %s3216_s5 = inlined_call_operand.vmem [shape: f32[32,1], index: 5, kind: input, shape index: {}]   ;;  %s3217_s6 = inlined_call_operand.vmem [shape: f32[7,32,32], index: 6, kind: input, shape index: {}]   ;;  %s3218_s7 = inlined_call_operand.vmem [shape: f32[32,1], index: 7, kind: input, shape index: {}]   ;;  %s3219_s8 = inlined_call_operand.vmem [shape: f32[4,32,64], index: 8, kind: output, shape index: {}]  }
   0x1 LB: > { %s2129_s28 = sadd.s32 4294967295, %s2825_s27   ;;  %p2133_p0 = scmp.ge.s32.totalorder %s2825_s27, 1  ;;  %s2825_s27 = sphi %s2881_s27, %s18_s27  }
   0x2   : > { %p272_p1 = scmp.lt.s32.totalorder %s2825_s27, 5 }
   0x4   : > { %p273_p2 = pnand %p2133_p0, %p272_p1 }
   0x5   : > { %p311_p3 = scmp.lt.s32.totalorder (!%p273_p2), %s2129_s28, 3  ;;  %v2139_v0 = vld [vmem:[%s3213_s2 + $0x20] sm:$0xff] (!%p273_p2)  ;;  %vm344_vm0 = vcmask (!%p273_p2), 261120   ;;  %v2827_v1 = vmov (!%p273_p2), 0   ;;  %v2140_v13 = vld [vmem:[%s3213_s2 + $0x28] sm:$0xff] (!%p273_p2)  ;;  %v2141_v14 = vld [vmem:[%s3213_s2 + $0x30] sm:$0xff] (!%p273_p2) }
   0x6   : > { %276 = sbr.rel (%p273_p2) target bundleno = 819 (0x333), region = 52  ;;  %2391 = vmatprep.mubr.msk.f32.mxu0 (!%p273_p2), %vm344_vm0, %v2139_v0  ;;  %2758 = vset.pattern.permute.xlu1 (!%p273_p2), %v2827_v1  ;;  %v1122_v18 = vld [vmem:[%s3215_s4] sm:$0xff] (!%p273_p2)  ;;  %v2142_v19 = vld [vmem:[%s3213_s2 + $0x38] sm:$0xff] (!%p273_p2)  ;;  %v1123_v25 = vld [vmem:[%s3215_s4 + $0x8] sm:$0xff] (!%p273_p2)  ;;  %vm1182_vm1 = vcmask (!%p273_p2), 572416   ;;  %s2829_s14 = smov (!%p273_p2), 3  }
   0x7   : > { %2757 = vset.pattern.permute.xlu0 (!%p273_p2), %v2827_v1  ;;  %v1094_v20 = vld [vmem:[%s3214_s3] sm:$0xff] (!%p273_p2)  ;;  %1128 = vperm.xlu1 (!%p273_p2), %2758, %v1122_v18   ;;  %v1095_v26 = vld [vmem:[%s3214_s3 + $0x8] sm:$0xff] (!%p273_p2)  ;;  %v328_v28 = vld [vmem:[%s3213_s2 + $0x10] sm:$0xff] (!%p273_p2)  ;;  %vm1203_vm2 = vcmask (!%p273_p2), 547864   ;;  %s2830_s17 = smov (!%p273_p2), 127   ;;  %s2831_s18 = smov (!%p273_p2), 126  }
   0x8   : > { %v326_v21 = vld [vmem:[%s3213_s2] sm:$0xff] (!%p273_p2)  ;;  %1100 = vperm.xlu0 (!%p273_p2), %2757, %v1094_v20   ;;  %v327_v27 = vld [vmem:[%s3213_s2 + $0x8] sm:$0xff] (!%p273_p2)  ;;  %v1097_v32 = vld [vmem:[%s3214_s3 + $0x18] sm:$0xff] (!%p273_p2)  ;;  %s2832_s19 = smov (!%p273_p2), 125   ;;  %s2833_s20 = smov (!%p273_p2), 124   ;;  %vm2057_vm3 = vcmask (!%p273_p2), 523264  }
   0x9   : > { %v1096_v33 = vld [vmem:[%s3214_s3 + $0x10] sm:$0xff] (!%p273_p2)  ;;  %v329_v34 = vld [vmem:[%s3213_s2 + $0x18] sm:$0xff] (!%p273_p2)  ;;  %v2155_v35 = vld [vmem:[%s3213_s2 + $0x40] sm:$0xff] (!%p273_p2)  ;;  %s2834_s21 = smov (!%p273_p2), 123   ;;  %s2835_s22 = smov (!%p273_p2), 122  }
   0xa   : > { %v1151_v39 = vld [vmem:[%s3216_s5 + $0x8] sm:$0xff] (!%p273_p2)  ;;  %v1150_v40 = vld [vmem:[%s3216_s5] sm:$0xff] (!%p273_p2)  ;;  %v2157_v42 = vld [vmem:[%s3213_s2 + $0x50] sm:$0xff] (!%p273_p2) }
   0xb   : > { %1133 = vperm.xlu1 (!%p273_p2), %2758, %v1123_v25   ;;  %v2156_v41 = vld [vmem:[%s3213_s2 + $0x48] sm:$0xff] (!%p273_p2)  ;;  %v1125_v46 = vld [vmem:[%s3215_s4 + $0x18] sm:$0xff] (!%p273_p2)  ;;  %v1124_v47 = vld [vmem:[%s3215_s4 + $0x10] sm:$0xff] (!%p273_p2) }
   0xc   : > { %1105 = vperm.xlu0 (!%p273_p2), %2757, %v1095_v26   ;;  %v2158_v48 = vld [vmem:[%s3213_s2 + $0x58] sm:$0xff] (!%p273_p2)  ;;  %v2167_v49 = vld [vmem:[%s3213_s2 + $0x60] sm:$0xff] (!%p273_p2)  ;;  %v1152_v54 = vld [vmem:[%s3216_s5 + $0x10] sm:$0xff] (!%p273_p2) }
   0xd   : > { %s3221_s28 = smov (!%p311_p3, %s2129_s28), 3  ;;  %v1153_v53 = vld [vmem:[%s3216_s5 + $0x18] sm:$0xff]  ;;  %v2168_v55 = vld [vmem:[%s3213_s2 + $0x68] sm:$0xff]  ;;  %v2169_v56 = vld [vmem:[%s3213_s2 + $0x70] sm:$0xff] }
   0xe   : > { %s2739_s9 = smul.u32 224, %s3221_s28  ;;  %v2170_v60 = vld [vmem:[%s3213_s2 + $0x78] sm:$0xff]  ;;  %v2179_v61 = vld [vmem:[%s3213_s2 + $0x80] sm:$0xff]  ;;  %v2180_v1 = vld [vmem:[%s3213_s2 + $0x88] sm:$0xff]  ;;  %s2269_s24 = sshll.u32 %s3221_s28, 5 }
   0xf   : > { %1115 = vperm.xlu1 %2758, %v1097_v32   ;;  %v2206_v18 = vld [vmem:[%s3213_s2 + $0xd8] sm:$0xff]  ;;  %s320_s29 = scalar_lea.vmem %s3212_s1, %s2269_s24  ;;  %s325_s10 = scalar_lea.vmem %s3219_s8, %s2269_s24 }
  0x10   : > { %s2899_s12 = scalar_lea.vmem %s3211_s0, %s2739_s9  ;;  %1110 = vperm.xlu0 %2757, %v1096_v33  }
  0x11   : > { %v2143_v2 = vld [vmem:[%s2899_s12 + $0x20] sm:$0xff]  ;;  %v2144_v3 = vld [vmem:[%s2899_s12 + $0x28] sm:$0xff]  ;;  %v2145_v4 = vld [vmem:[%s2899_s12 + $0x30] sm:$0xff] }
  0x12   : > { %v2579_v5 = vpack.c.bf16 %v2144_v3, %v2143_v2  ;;  %v2146_v6 = vld [vmem:[%s2899_s12 + $0x38] sm:$0xff]  ;;  %v330_v8 = vld [vmem:[%s2899_s12] sm:$0xff]  ;;  %v331_v9 = vld [vmem:[%s2899_s12 + $0x8] sm:$0xff] }
  0x13   : > { %v2583_v7 = vpack.c.bf16 %v2146_v6, %v2145_v4  ;;  %v2587_v10 = vpack.c.bf16 %v331_v9, %v330_v8  ;;  %v332_v11 = vld [vmem:[%s2899_s12 + $0x10] sm:$0xff]  ;;  %v333_v12 = vld [vmem:[%s2899_s12 + $0x18] sm:$0xff]  ;;  %v2159_v16 = vld [vmem:[%s2899_s12 + $0x40] sm:$0xff]  ;;  %1161 = vperm.xlu1 %2758, %v1151_v39  }
  0x14   : > { %2580 = vmatprep.subr.bf16.mxu0 %v2579_v5  ;;  %v2591_v15 = vpack.c.bf16 %v333_v12, %v332_v11  ;;  %v2160_v17 = vld [vmem:[%s2899_s12 + $0x48] sm:$0xff]  ;;  %v2161_v23 = vld [vmem:[%s2899_s12 + $0x50] sm:$0xff]  ;;  %v2162_v24 = vld [vmem:[%s2899_s12 + $0x58] sm:$0xff]  ;;  %1156 = vperm.xlu0 %2757, %v1150_v40  }
  0x15   : > { %2582 = vmatpush3.bf16.msra.mxu0 %v2579_v5  ;;  %v2595_v22 = vpack.c.bf16 %v2160_v17, %v2159_v16  ;;  %v2599_v29 = vpack.c.bf16 %v2162_v24, %v2161_v23  ;;  %v2171_v30 = vld [vmem:[%s2899_s12 + $0x60] sm:$0xff]  ;;  %v2172_v31 = vld [vmem:[%s2899_s12 + $0x68] sm:$0xff]  ;;  %v2173_v37 = vld [vmem:[%s2899_s12 + $0x70] sm:$0xff] }
  0x16   : > { %2584 = vmatprep.subr.bf16.mxu0 %v2583_v7  ;;  %v2603_v36 = vpack.c.bf16 %v2172_v31, %v2171_v30  ;;  %v2174_v38 = vld [vmem:[%s2899_s12 + $0x78] sm:$0xff]  ;;  %v2183_v44 = vld [vmem:[%s2899_s12 + $0x80] sm:$0xff]  ;;  %v2184_v45 = vld [vmem:[%s2899_s12 + $0x88] sm:$0xff] }
  0x17   : > { %v2607_v43 = vpack.c.bf16 %v2174_v38, %v2173_v37  ;;  %v2611_v50 = vpack.c.bf16 %v2184_v45, %v2183_v44  ;;  %1143 = vperm.xlu1 %2758, %v1125_v46   ;;  %v2185_v51 = vld [vmem:[%s2899_s12 + $0x90] sm:$0xff]  ;;  %v2186_v52 = vld [vmem:[%s2899_s12 + $0x98] sm:$0xff]  ;;  %v2195_v58 = vld [vmem:[%s2899_s12 + $0xa0] sm:$0xff] }
  0x18   : > { %1138 = vperm.xlu0 %2757, %v1124_v47   ;;  %v2615_v57 = vpack.c.bf16 %v2186_v52, %v2185_v51  ;;  %v2196_v59 = vld [vmem:[%s2899_s12 + $0xa8] sm:$0xff]  ;;  %v2197_v63 = vld [vmem:[%s2899_s12 + $0xb0] sm:$0xff]  ;;  %v2198_v0 = vld [vmem:[%s2899_s12 + $0xb8] sm:$0xff] }
  0x19   : > { %2586 = vmatpush3.bf16.msra.mxu0 %v2583_v7  ;;  %v2619_v62 = vpack.c.bf16 %v2196_v59, %v2195_v58  ;;  %v2181_v2 = vld [vmem:[%s3213_s2 + $0x90] sm:$0xff]  ;;  %v2623_v3 = vpack.c.bf16 %v2198_v0, %v2197_v63  ;;  %v2207_v4 = vld [vmem:[%s2899_s12 + $0xc0] sm:$0xff]  ;;  %v2208_v5 = vld [vmem:[%s2899_s12 + $0xc8] sm:$0xff] }
  0x1a   : > { %2588 = vmatprep.subr.bf16.mxu0 %v2587_v10  ;;  %v2182_v6 = vld [vmem:[%s3213_s2 + $0x98] sm:$0xff]  ;;  %v2191_v7 = vld [vmem:[%s3213_s2 + $0xa0] sm:$0xff]  ;;  %v2627_v8 = vpack.c.bf16 %v2208_v5, %v2207_v4  ;;  %v2209_v9 = vld [vmem:[%s2899_s12 + $0xd0] sm:$0xff] }
  0x1b   : > { %1171 = vperm.xlu1 %2758, %v1153_v53   ;;  %v2192_v11 = vld [vmem:[%s3213_s2 + $0xa8] sm:$0xff]  ;;  %v2193_v12 = vld [vmem:[%s3213_s2 + $0xb0] sm:$0xff]  ;;  %v2215_v58 = vld [vmem:[%s3217_s6 + $0x20] sm:$0xff] }
  0x1c   : > { %2392 = vmatmul.mubr.msk.f32.vlgmr.msra.gmra.mrb[0].mxu0 %vm344_vm0, %v2140_v13  ;;  %1166 = vperm.xlu0 %2757, %v1152_v54   ;;  %v2204_v16 = vld [vmem:[%s3213_s2 + $0xc8] sm:$0xff]  ;;  %v2205_v17 = vld [vmem:[%s3213_s2 + $0xd0] sm:$0xff]  ;;  %v2024_v4 = vld [vmem:[%s3218_s7 + $0x18] sm:$0xff] }
  0x1d   : > { %2590 = vmatpush3.bf16.msra.mxu0 %v2587_v10  ;;  %2394 = vmatprep.mubr.msk.f32.mxu0 %vm344_vm0, %v2141_v14  ;;  %v2210_v10 = vld [vmem:[%s2899_s12 + $0xd8] sm:$0xff] }
  0x1e   : > { %2592 = vmatprep.subr.bf16.mxu0 %v2591_v15  ;;  %v2631_v13 = vpack.c.bf16 %v2210_v10, %v2209_v9  ;;  %v2194_v14 = vld [vmem:[%s3213_s2 + $0xb8] sm:$0xff]  ;;  %2489 = vmatprep.mubr.msk.f32.mxu1 %vm344_vm0, %v2215_v58 }
  0x20   : > { %2395 = vmatmul.mubr.msk.f32.gmra.mrb[2].mxu0 %vm344_vm0, %v2142_v19  ;;  %v2828_v19 = vmov 0.0  }
  0x21   : > { %2594 = vmatpush3.bf16.msra.mxu0 %v2591_v15  ;;  %2405 = vmatprep.mubr.msk.f32.mxu0 %vm344_vm0, %v326_v21  ;;  %v2203_v15 = vld [vmem:[%s3213_s2 + $0xc0] sm:$0xff]  ;;  %1184 = vst.msk [vmem:[#allocation2 + $0x8] sm:$0xff] %vm1182_vm1, %v2828_v19  ;;  %1183 = vst.msk [vmem:[#allocation2] sm:$0xff] %vm1182_vm1, %v2828_v19 }
  0x22   : > { %2596 = vmatprep.subr.bf16.mxu0 %v2595_v22  ;;  %1185 = vst.msk [vmem:[#allocation2 + $0x10] sm:$0xff] %vm1182_vm1, %v2828_v19  ;;  %1186 = vst.msk [vmem:[#allocation2 + $0x18] sm:$0xff] %vm1182_vm1, %v2828_v19  ;;  %v2218_v19 = vld [vmem:[%s3217_s6 + $0x38] sm:$0xff] }
  0x24   : > { %2406 = vmatmul.mubr.msk.f32.vlgmr.msra.gmra.mrb[0].mxu0 %vm344_vm0, %v327_v27 }
  0x25   : > { %2598 = vmatpush3.bf16.msra.mxu0 %v2595_v22  ;;  %2408 = vmatprep.mubr.msk.f32.mxu0 %vm344_vm0, %v328_v28 }
  0x26   : > { %2600 = vmatprep.subr.bf16.mxu0 %v2599_v29 }
  0x28   : > { %2409 = vmatmul.mubr.msk.f32.gmra.mrb[2].mxu0 %vm344_vm0, %v329_v34 }
  0x29   : > { %2602 = vmatpush3.bf16.msra.mxu0 %v2599_v29  ;;  %2419 = vmatprep.mubr.msk.f32.mxu0 %vm344_vm0, %v2155_v35 }
  0x2a   : > { %2604 = vmatprep.subr.bf16.mxu0 %v2603_v36 }
  0x2c   : > { %2420 = vmatmul.mubr.msk.f32.vlgmr.msra.gmra.mrb[0].mxu0 %vm344_vm0, %v2156_v41 }
  0x2d   : > { %2606 = vmatpush3.bf16.msra.mxu0 %v2603_v36  ;;  %2422 = vmatprep.mubr.msk.f32.mxu0 %vm344_vm0, %v2157_v42 }
  0x2e   : > { %2608 = vmatprep.subr.bf16.mxu0 %v2607_v43 }
  0x30   : > { %2423 = vmatmul.mubr.msk.f32.gmra.mrb[2].mxu0 %vm344_vm0, %v2158_v48 }
  0x31   : > { %2610 = vmatpush3.bf16.msra.mxu0 %v2607_v43  ;;  %2433 = vmatprep.mubr.msk.f32.mxu0 %vm344_vm0, %v2167_v49 }
  0x32   : > { %2612 = vmatprep.subr.bf16.mxu0 %v2611_v50 }
  0x34   : > { %2434 = vmatmul.mubr.msk.f32.vlgmr.msra.gmra.mrb[0].mxu0 %vm344_vm0, %v2168_v55 }
  0x35   : > { %2614 = vmatpush3.bf16.msra.mxu0 %v2611_v50  ;;  %2436 = vmatprep.mubr.msk.f32.mxu0 %vm344_vm0, %v2169_v56 }
  0x36   : > { %2616 = vmatprep.subr.bf16.mxu0 %v2615_v57 }
  0x38   : > { %2437 = vmatmul.mubr.msk.f32.gmra.mrb[2].mxu0 %vm344_vm0, %v2170_v60 }
  0x39   : > { %2618 = vmatpush3.bf16.msra.mxu0 %v2615_v57  ;;  %2447 = vmatprep.mubr.msk.f32.mxu0 %vm344_vm0, %v2179_v61 }
  0x3a   : > { %2620 = vmatprep.subr.bf16.mxu0 %v2619_v62 }
  0x3c   : > { %2448 = vmatmul.mubr.msk.f32.vlgmr.msra.gmra.mrb[0].mxu0 %vm344_vm0, %v2180_v1  ;;  %v2021_v1 = vld [vmem:[%s3218_s7] sm:$0xff] }
  0x3d   : > { %2622 = vmatpush3.bf16.msra.mxu0 %v2619_v62  ;;  %2450 = vmatprep.mubr.msk.f32.mxu0 %vm344_vm0, %v2181_v2  ;;  %v2023_v2 = vld [vmem:[%s3218_s7 + $0x10] sm:$0xff] }
  0x3e   : > { %2624 = vmatprep.subr.bf16.mxu0 %v2623_v3 }
  0x40   : > { %2451 = vmatmul.mubr.msk.f32.gmra.mrb[2].mxu0 %vm344_vm0, %v2182_v6 }
  0x41   : > { %2626 = vmatpush3.bf16.msra.mxu0 %v2623_v3  ;;  %2461 = vmatprep.mubr.msk.f32.mxu0 %vm344_vm0, %v2191_v7  ;;  %v2022_v3 = vld [vmem:[%s3218_s7 + $0x8] sm:$0xff] }
  0x42   : > { %2628 = vmatprep.subr.bf16.mxu0 %v2627_v8 }
  0x44   : > { %2462 = vmatmul.mubr.msk.f32.vlgmr.msra.gmra.mrb[0].mxu0 %vm344_vm0, %v2192_v11 }
  0x45   : > { %2630 = vmatpush3.bf16.msra.mxu0 %v2627_v8  ;;  %2464 = vmatprep.mubr.msk.f32.mxu0 %vm344_vm0, %v2193_v12 }
  0x46   : > { %2632 = vmatprep.subr.bf16.mxu0 %v2631_v13 }
  0x48   : > { %2465 = vmatmul.mubr.msk.f32.gmra.mrb[2].mxu0 %vm344_vm0, %v2194_v14  ;;  %v2216_v14 = vld [vmem:[%s3217_s6 + $0x28] sm:$0xff] }
  0x49   : > { %2634 = vmatpush3.bf16.msra.mxu0 %v2631_v13  ;;  %2475 = vmatprep.mubr.msk.f32.mxu0 %vm344_vm0, %v2203_v15  ;;  %v2217_v15 = vld [vmem:[%s3217_s6 + $0x30] sm:$0xff] }
  0x4c   : > { %2476 = vmatmul.mubr.msk.f32.vlgmr.msra.gmra.mrb[0].mxu0 %vm344_vm0, %v2204_v16 }
  0x4d   : > { %2478 = vmatprep.mubr.msk.f32.mxu0 %vm344_vm0, %v2205_v17 }
  0x50   : > { %2479 = vmatmul.mubr.msk.f32.gmra.mrb[2].mxu0 %vm344_vm0, %v2206_v18 }
  0x86   : > { %v1129_v20 = vpop.permute.xlu1 %1128 }
  0x87   : > { %v1101_v21 = vpop.permute.xlu0 %1100 }
  0x8a   : > { %v1134_v22 = vpop.permute.xlu1 %1133 }
  0x8b   : > { %v1106_v23 = vpop.permute.xlu0 %1105 }
  0x8e   : > { %v1116_v24 = vpop.permute.xlu1 %1115 }
  0x8f   : > { %v1111_v25 = vpop.permute.xlu0 %1110 }
  0x92   : > { %v1162_v26 = vpop.permute.xlu1 %1161 }
  0x93   : > { %v1157_v27 = vpop.permute.xlu0 %1156 }
  0x96   : > { %v1144_v31 = vpop.permute.xlu1 %1143 }
  0x97   : > { %v1139_v33 = vpop.permute.xlu0 %1138 }
  0x9a   : > { %v1172_v44 = vpop.permute.xlu1 %1171 }
  0x9b   : > { %v1167_v47 = vpop.permute.xlu0 %1166 }
 0x11f   : > { %v2477_v28 = vpop.f32.mrb[0].mxu0 }
 0x120   : > { %v1119_v29 = vadd.f32 %v2477_v28, %v1106_v23  ;;  %v1071_v30 = vpop.f32.mrb[1].mxu0 }
 0x121   : > { %v1118_v32 = vadd.f32 %v1101_v21, %v1071_v30 }
 0x122   : > { %v1147_v34 = vmul.f32 %v1134_v22, %v1119_v29 }
 0x123   : > { %v1146_v35 = vmul.f32 %v1129_v20, %v1118_v32  ;;  %v2480_v36 = vpop.f32.mrb[2].mxu0  ;;  %v1208_v20 = vld [vmem:[%s3217_s6] sm:$0xff] }
 0x124   : > { %v1121_v37 = vadd.f32 %v2480_v36, %v1116_v24  ;;  %v1081_v38 = vpop.f32.mrb[3].mxu0  ;;  %v1175_v39 = vadd.f32 %v1162_v26, %v1147_v34  ;;  %v1210_v26 = vld [vmem:[%s3217_s6 + $0x10] sm:$0xff]  ;;  %v2227_v32 = vld [vmem:[%s3217_s6 + $0x40] sm:$0xff] }
 0x125   : > { %v1120_v40 = vadd.f32 %v1111_v25, %v1081_v38  ;;  %v1174_v41 = vadd.f32 %v1157_v27, %v1146_v35  ;;  %v1209_v25 = vld [vmem:[%s3217_s6 + $0x8] sm:$0xff]  ;;  %v2229_v38 = vld [vmem:[%s3217_s6 + $0x50] sm:$0xff] }
 0x126   : > { %v1149_v42 = vmul.f32 %v1144_v31, %v1121_v37  ;;  %v1179_v43 = vmax.f32 %v1175_v39, 0.0  ;;  %v1211_v31 = vld [vmem:[%s3217_s6 + $0x18] sm:$0xff]  ;;  %v2228_v37 = vld [vmem:[%s3217_s6 + $0x48] sm:$0xff] }
 0x127   : > { %v1148_v45 = vmul.f32 %v1139_v33, %v1120_v40  ;;  %v1178_v46 = vmax.f32 %v1174_v41, 0.0 }
 0x128   : > { %1193 = vrot.lane.b32.xlu1 %v1179_v43, %s2829_s14  ;;  %v1177_v48 = vadd.f32 %v1172_v44, %v1149_v42  ;;  %v2230_v43 = vld [vmem:[%s3217_s6 + $0x58] sm:$0xff]  ;;  %v2235_v44 = vld [vmem:[%s3217_s6 + $0x60] sm:$0xff] }
 0x129   : > { %1191 = vrot.lane.b32.xlu0 %v1178_v46, %s2829_s14  ;;  %v1176_v49 = vadd.f32 %v1167_v47, %v1148_v45 }
 0x12a   : > { %v1181_v50 = vmax.f32 %v1177_v48, 0.0 }
 0x12b   : > { %v1180_v51 = vmax.f32 %v1176_v49, 0.0  ;;  %v2236_v49 = vld [vmem:[%s3217_s6 + $0x68] sm:$0xff] }
 0x12c   : > { %1197 = vrot.lane.b32.xlu1 %v1181_v50, %s2829_s14  ;;  %v2237_v50 = vld [vmem:[%s3217_s6 + $0x70] sm:$0xff] }
 0x12d   : > { %1195 = vrot.lane.b32.xlu0 %v1180_v51, %s2829_s14 }
 0x19a   : > { %v1194_v52 = vpop.permute.xlu1 %1193 }
 0x19b   : > { %1205 = vst.msk [vmem:[#allocation2 + $0x8] sm:$0xff] %vm1203_vm2, %v1194_v52  ;;  %v1192_v53 = vpop.permute.xlu0 %1191 }
 0x19c   : > { %1204 = vst.msk [vmem:[#allocation2] sm:$0xff] %vm1203_vm2, %v1192_v53 }
 0x19e   : > { %v1198_v54 = vpop.permute.xlu1 %1197 }
 0x19f   : > { %1207 = vst.msk [vmem:[#allocation2 + $0x18] sm:$0xff] %vm1203_vm2, %v1198_v54  ;;  %v1196_v55 = vpop.permute.xlu0 %1195 }
 0x1a0   : > { %1206 = vst.msk [vmem:[#allocation2 + $0x10] sm:$0xff] %vm1203_vm2, %v1196_v55  ;;  %v2238_v55 = vld [vmem:[%s3217_s6 + $0x78] sm:$0xff] }
 0x1a2   : > { %v1213_v56 = vld [vmem:[#allocation2 + $0x8] sm:$0xff] }
 0x1a3   : > { %v1212_v57 = vld [vmem:[#allocation2] sm:$0xff] }
 0x1a4   : > { %v2759_v59 = vpack.i.bf16 %v1213_v56, %v1212_v57  ;;  %v2643_v60 = vpack.c.bf16 %v1213_v56, %v1212_v57  ;;  %v2243_v56 = vld [vmem:[%s3217_s6 + $0x80] sm:$0xff] }
 0x1a6   : > { %2760 = vrot.lane.b32.xlu0 %v2759_v59, %s2830_s17  ;;  %v1215_v61 = vld [vmem:[#allocation2 + $0x18] sm:$0xff] }
 0x1a7   : > { %v1214_v62 = vld [vmem:[#allocation2 + $0x10] sm:$0xff] }
 0x1a8   : > { %v2764_v63 = vpack.i.bf16 %v1215_v61, %v1214_v62  ;;  %v2647_v0 = vpack.c.bf16 %v1215_v61, %v1214_v62  ;;  %v2244_v61 = vld [vmem:[%s3217_s6 + $0x88] sm:$0xff]  ;;  %v2245_v62 = vld [vmem:[%s3217_s6 + $0x90] sm:$0xff] }
 0x1aa   : > { %2770 = vrot.lane.b32.xlu0 %v2759_v59, %s2831_s18  ;;  %2765 = vrot.lane.b32.xlu1 %v2764_v63, %s2830_s17 }
 0x1ae   : > { %2780 = vrot.lane.b32.xlu0 %v2759_v59, %s2832_s19  ;;  %2775 = vrot.lane.b32.xlu1 %v2764_v63, %s2831_s18 }
 0x1b2   : > { %2790 = vrot.lane.b32.xlu0 %v2759_v59, %s2833_s20  ;;  %2785 = vrot.lane.b32.xlu1 %v2764_v63, %s2832_s19 }
 0x1b6   : > { %2800 = vrot.lane.b32.xlu0 %v2759_v59, %s2834_s21  ;;  %2795 = vrot.lane.b32.xlu1 %v2764_v63, %s2833_s20 }
 0x1ba   : > { %2810 = vrot.lane.b32.xlu0 %v2759_v59, %s2835_s22  ;;  %2805 = vrot.lane.b32.xlu1 %v2764_v63, %s2834_s21 }
 0x1be   : > { %2027 = vperm.xlu0 %2757, %v2021_v1   ;;  %2815 = vrot.lane.b32.xlu1 %v2764_v63, %s2835_s22 }
 0x1c2   : > { %2037 = vperm.xlu0 %2757, %v2023_v2   ;;  %2032 = vperm.xlu1 %2758, %v2022_v3   ;;  %v2246_v3 = vld [vmem:[%s3217_s6 + $0x98] sm:$0xff] }
 0x1c6   : > { %2042 = vperm.xlu1 %2758, %v2024_v4   ;;  %v2251_v4 = vld [vmem:[%s3217_s6 + $0xa0] sm:$0xff] }
 0x218   : > { %v2761_v5 = vpop.permute.xlu0 %2760 }
 0x219   : > { %v2763_v6 = vunpack.i.h.bf16 %v2761_v5  ;;  %v2762_v7 = vunpack.i.l.bf16 %v2761_v5 }
 0x21b   : > { %v2635_v8 = vpack.c.bf16 %v2763_v6, %v2762_v7 }
 0x21c   : > { %v2766_v9 = vpop.permute.xlu1 %2765  ;;  %v2771_v13 = vpop.permute.xlu0 %2770 }
 0x21d   : > { %v2768_v10 = vunpack.i.h.bf16 %v2766_v9  ;;  %v2767_v11 = vunpack.i.l.bf16 %v2766_v9  ;;  %2636 = vmatprep.subr.bf16.mxu1 %v2635_v8  ;;  %v2773_v16 = vunpack.i.h.bf16 %v2771_v13  ;;  %v2772_v17 = vunpack.i.l.bf16 %v2771_v13  ;;  %v2253_v9 = vld [vmem:[%s3217_s6 + $0xb0] sm:$0xff]  ;;  %v2260_v13 = vld [vmem:[%s3217_s6 + $0xc8] sm:$0xff] }
 0x21e   : > { %2638 = vmatpush3.bf16.msra.mxu1 %v2635_v8  ;;  %v2252_v8 = vld [vmem:[%s3217_s6 + $0xa8] sm:$0xff] }
 0x21f   : > { %v2639_v12 = vpack.c.bf16 %v2768_v10, %v2767_v11  ;;  %v2651_v21 = vpack.c.bf16 %v2773_v16, %v2772_v17  ;;  %v2254_v11 = vld [vmem:[%s3217_s6 + $0xb8] sm:$0xff] }
 0x220   : > { %v2776_v18 = vpop.permute.xlu1 %2775  ;;  %v2781_v24 = vpop.permute.xlu0 %2780 }
 0x221   : > { %2640 = vmatprep.subr.bf16.mxu1 %v2639_v12  ;;  %v2778_v22 = vunpack.i.h.bf16 %v2776_v18  ;;  %v2777_v23 = vunpack.i.l.bf16 %v2776_v18  ;;  %v2783_v28 = vunpack.i.h.bf16 %v2781_v24  ;;  %v2782_v29 = vunpack.i.l.bf16 %v2781_v24 }
 0x222   : > { %2642 = vmatpush3.bf16.msra.mxu1 %v2639_v12  ;;  %v2259_v12 = vld [vmem:[%s3217_s6 + $0xc0] sm:$0xff] }
 0x223   : > { %2644 = vmatprep.subr.bf16.mxu1 %v2643_v60  ;;  %v2655_v27 = vpack.c.bf16 %v2778_v22, %v2777_v23  ;;  %v2659_v33 = vpack.c.bf16 %v2783_v28, %v2782_v29  ;;  %v2049_v22 = vld [vmem:[%s320_s29] sm:$0xff]  ;;  %v2052_v28 = vld [vmem:[%s320_s29 + $0x18] sm:$0xff] }
 0x224   : > { %v2786_v30 = vpop.permute.xlu1 %2785  ;;  %v2791_v36 = vpop.permute.xlu0 %2790 }
 0x225   : > { %2490 = vmatmul.mubr.msk.f32.vlgmr.msra.gmra.mrb[0].mxu1 %vm344_vm0, %v2216_v14  ;;  %v2788_v34 = vunpack.i.h.bf16 %v2786_v30  ;;  %v2787_v35 = vunpack.i.l.bf16 %v2786_v30  ;;  %v2793_v40 = vunpack.i.h.bf16 %v2791_v36  ;;  %v2792_v41 = vunpack.i.l.bf16 %v2791_v36  ;;  %v2261_v14 = vld [vmem:[%s3217_s6 + $0xd0] sm:$0xff] }
 0x226   : > { %2646 = vmatpush3.bf16.msra.mxu1 %v2643_v60  ;;  %2492 = vmatprep.mubr.msk.f32.mxu1 %vm344_vm0, %v2217_v15  ;;  %v2262_v15 = vld [vmem:[%s3217_s6 + $0xd8] sm:$0xff] }
 0x227   : > { %2648 = vmatprep.subr.bf16.mxu1 %v2647_v0  ;;  %v2663_v39 = vpack.c.bf16 %v2788_v34, %v2787_v35  ;;  %v2667_v45 = vpack.c.bf16 %v2793_v40, %v2792_v41 }
 0x228   : > { %v2796_v42 = vpop.permute.xlu1 %2795  ;;  %v2801_v48 = vpop.permute.xlu0 %2800 }
 0x229   : > { %2493 = vmatmul.mubr.msk.f32.gmra.mrb[2].mxu1 %vm344_vm0, %v2218_v19  ;;  %v2798_v46 = vunpack.i.h.bf16 %v2796_v42  ;;  %v2797_v47 = vunpack.i.l.bf16 %v2796_v42  ;;  %v2803_v52 = vunpack.i.h.bf16 %v2801_v48  ;;  %v2802_v53 = vunpack.i.l.bf16 %v2801_v48  ;;  %v2050_v19 = vld [vmem:[%s320_s29 + $0x8] sm:$0xff] }
 0x22a   : > { %2650 = vmatpush3.bf16.msra.mxu1 %v2647_v0  ;;  %2503 = vmatprep.mubr.msk.f32.mxu1 %vm344_vm0, %v1208_v20 }
 0x22b   : > { %2652 = vmatprep.subr.bf16.mxu1 %v2651_v21  ;;  %v2671_v51 = vpack.c.bf16 %v2798_v46, %v2797_v47  ;;  %v2675_v57 = vpack.c.bf16 %v2803_v52, %v2802_v53 }
 0x22c   : > { %v2806_v54 = vpop.permute.xlu1 %2805  ;;  %v2811_v60 = vpop.permute.xlu0 %2810 }
 0x22d   : > { %2504 = vmatmul.mubr.msk.f32.vlgmr.msra.gmra.mrb[0].mxu1 %vm344_vm0, %v1209_v25  ;;  %v2808_v58 = vunpack.i.h.bf16 %v2806_v54  ;;  %v2807_v59 = vunpack.i.l.bf16 %v2806_v54  ;;  %v2813_v0 = vunpack.i.h.bf16 %v2811_v60  ;;  %v2812_v1 = vunpack.i.l.bf16 %v2811_v60 }
 0x22e   : > { %2654 = vmatpush3.bf16.msra.mxu1 %v2651_v21  ;;  %2506 = vmatprep.mubr.msk.f32.mxu1 %vm344_vm0, %v1210_v26 }
 0x22f   : > { %2656 = vmatprep.subr.bf16.mxu1 %v2655_v27  ;;  %v2679_v63 = vpack.c.bf16 %v2808_v58, %v2807_v59  ;;  %v2683_v5 = vpack.c.bf16 %v2813_v0, %v2812_v1 }
 0x230   : > { %v2816_v2 = vpop.permute.xlu1 %2815 }
 0x231   : > { %2507 = vmatmul.mubr.msk.f32.gmra.mrb[2].mxu1 %vm344_vm0, %v1211_v31  ;;  %v2818_v6 = vunpack.i.h.bf16 %v2816_v2  ;;  %v2817_v7 = vunpack.i.l.bf16 %v2816_v2 }
 0x232   : > { %2658 = vmatpush3.bf16.msra.mxu1 %v2655_v27  ;;  %2517 = vmatprep.mubr.msk.f32.mxu1 %vm344_vm0, %v2227_v32  ;;  %v2051_v32 = vld [vmem:[%s320_s29 + $0x10] sm:$0xff] }
 0x233   : > { %2660 = vmatprep.subr.bf16.mxu1 %v2659_v33  ;;  %v2687_v10 = vpack.c.bf16 %v2818_v6, %v2817_v7 }
 0x235   : > { %2518 = vmatmul.mubr.msk.f32.vlgmr.msra.gmra.mrb[0].mxu1 %vm344_vm0, %v2228_v37 }
 0x236   : > { %2662 = vmatpush3.bf16.msra.mxu1 %v2659_v33  ;;  %2520 = vmatprep.mubr.msk.f32.mxu1 %vm344_vm0, %v2229_v38 }
 0x237   : > { %2664 = vmatprep.subr.bf16.mxu1 %v2663_v39 }
 0x239   : > { %2521 = vmatmul.mubr.msk.f32.gmra.mrb[2].mxu1 %vm344_vm0, %v2230_v43 }
 0x23a   : > { %2666 = vmatpush3.bf16.msra.mxu1 %v2663_v39  ;;  %2531 = vmatprep.mubr.msk.f32.mxu1 %vm344_vm0, %v2235_v44 }
 0x23b   : > { %2668 = vmatprep.subr.bf16.mxu1 %v2667_v45 }
 0x23d   : > { %2532 = vmatmul.mubr.msk.f32.vlgmr.msra.gmra.mrb[0].mxu1 %vm344_vm0, %v2236_v49  ;;  %v2028_v17 = vpop.permute.xlu0 %2027 }
 0x23e   : > { %2670 = vmatpush3.bf16.msra.mxu1 %v2667_v45  ;;  %2534 = vmatprep.mubr.msk.f32.mxu1 %vm344_vm0, %v2237_v50 }
 0x23f   : > { %2672 = vmatprep.subr.bf16.mxu1 %v2671_v51 }
 0x241   : > { %2535 = vmatmul.mubr.msk.f32.gmra.mrb[2].mxu1 %vm344_vm0, %v2238_v55  ;;  %v2033_v16 = vpop.permute.xlu1 %2032  ;;  %v2038_v29 = vpop.permute.xlu0 %2037 }
 0x242   : > { %2674 = vmatpush3.bf16.msra.mxu1 %v2671_v51  ;;  %2545 = vmatprep.mubr.msk.f32.mxu1 %vm344_vm0, %v2243_v56 }
 0x243   : > { %2676 = vmatprep.subr.bf16.mxu1 %v2675_v57 }
 0x245   : > { %2546 = vmatmul.mubr.msk.f32.vlgmr.msra.gmra.mrb[0].mxu1 %vm344_vm0, %v2244_v61  ;;  %v2043_v25 = vpop.permute.xlu1 %2042 }
 0x246   : > { %2678 = vmatpush3.bf16.msra.mxu1 %v2675_v57  ;;  %2548 = vmatprep.mubr.msk.f32.mxu1 %vm344_vm0, %v2245_v62 }
 0x247   : > { %2680 = vmatprep.subr.bf16.mxu1 %v2679_v63 }
 0x249   : > { %2549 = vmatmul.mubr.msk.f32.gmra.mrb[2].mxu1 %vm344_vm0, %v2246_v3 }
 0x24a   : > { %2682 = vmatpush3.bf16.msra.mxu1 %v2679_v63  ;;  %2559 = vmatprep.mubr.msk.f32.mxu1 %vm344_vm0, %v2251_v4 }
 0x24b   : > { %2684 = vmatprep.subr.bf16.mxu1 %v2683_v5 }
 0x24d   : > { %2560 = vmatmul.mubr.msk.f32.vlgmr.msra.gmra.mrb[0].mxu1 %vm344_vm0, %v2252_v8 }
 0x24e   : > { %2686 = vmatpush3.bf16.msra.mxu1 %v2683_v5  ;;  %2562 = vmatprep.mubr.msk.f32.mxu1 %vm344_vm0, %v2253_v9 }
 0x24f   : > { %2688 = vmatprep.subr.bf16.mxu1 %v2687_v10 }
 0x251   : > { %2563 = vmatmul.mubr.msk.f32.gmra.mrb[2].mxu1 %vm344_vm0, %v2254_v11 }
 0x252   : > { %2690 = vmatpush3.bf16.msra.mxu1 %v2687_v10  ;;  %2573 = vmatprep.mubr.msk.f32.mxu1 %vm344_vm0, %v2259_v12 }
 0x255   : > { %2574 = vmatmul.mubr.msk.f32.vlgmr.msra.gmra.mrb[0].mxu1 %vm344_vm0, %v2260_v13 }
 0x256   : > { %2576 = vmatprep.mubr.msk.f32.mxu1 %vm344_vm0, %v2261_v14 }
 0x259   : > { %2577 = vmatmul.mubr.msk.f32.gmra.mrb[2].mxu1 %vm344_vm0, %v2262_v15 }
 0x328   : > { %v2575_v18 = vpop.f32.mrb[0].mxu1 }
 0x329   : > { %v2046_v20 = vadd.f32 %v2575_v18, %v2033_v16  ;;  %v1998_v21 = vpop.f32.mrb[1].mxu1 }
 0x32a   : > { %v2045_v23 = vadd.f32 %v2028_v17, %v1998_v21 }
 0x32b   : > { %v2054_v24 = vadd.f32 %v2050_v19, %v2046_v20 }
 0x32c   : > { %v2053_v26 = vadd.f32 %v2049_v22, %v2045_v23  ;;  %v2578_v27 = vpop.f32.mrb[2].mxu1 }
 0x32d   : > { %2059 = vst.msk [vmem:[%s325_s10 + $0x8] sm:$0xff] %vm2057_vm3, %v2054_v24  ;;  %v2048_v30 = vadd.f32 %v2578_v27, %v2043_v25  ;;  %v2008_v31 = vpop.f32.mrb[3].mxu1 }
 0x32e   : > { %2058 = vst.msk [vmem:[%s325_s10] sm:$0xff] %vm2057_vm3, %v2053_v26  ;;  %v2047_v33 = vadd.f32 %v2038_v29, %v2008_v31 }
 0x32f   : > { %v2056_v34 = vadd.f32 %v2052_v28, %v2048_v30 }
 0x330   : > { %v2055_v35 = vadd.f32 %v2051_v32, %v2047_v33 }
 0x331   : > { %2061 = vst.msk [vmem:[%s325_s10 + $0x18] sm:$0xff] %vm2057_vm3, %v2056_v34 }
 0x332   : > { %2060 = vst.msk [vmem:[%s325_s10 + $0x10] sm:$0xff] %vm2057_vm3, %v2055_v35 }
 0x333 PF: > { %s18_s27 = sadd.s32 1, %s2825_s27  }
 0x334   : > { %p15_p4 = scmp.ge.s32.totalorder %s18_s27, 6  }
 0x336   :  { %17 = sbr.rel (!%p15_p4) target bundleno = 1 (0x1), region = 103 }

// kernel: forward.9
= control target key start
LH: loop header
LB: loop body
LE: loop exit
PB: predicated region body
PF: predicated region fallthrough
CT: control target
= control target key end

     0   :  { %10 = vsyncpa [#allocation3], 0  ;;  %s861_s0 = inlined_call_operand.vmem [shape: f32[4,64,64], index: 0, kind: input, shape index: {}]   ;;  %s862_s1 = inlined_call_operand.vmem [shape: f32[64,1], index: 1, kind: input, shape index: {}]   ;;  %s863_s2 = inlined_call_operand.vmem [shape: f32[64,1], index: 2, kind: input, shape index: {}]   ;;  %s864_s3 = inlined_call_operand.hbm [shape: f32[4,64,64], index: 3, kind: output, shape index: {0}]   ;;  %s865_s4 = inlined_call_operand.vmem [shape: f32[4,64,1], index: 4, kind: output, shape index: {1}]  }
   0x1   :  { %12 = vsyncpa [#allocation3 + $0x1], 0  ;;  %s651_s15 = smov 0   ;;  %s653_s16 = smov 0  }
   0x2   :  { %s655_s17 = smov 0   ;;  %s657_s18 = smov 0  }
   0x3 LB: > { %s672_s19 = sadd.s32 4294967295, %s620_s18   ;;  %s497_s20 = sadd.s32 4294967294, %s620_s18   ;;  %s620_s18 = sphi %s657_s18, %s871_s18   ;;  %s616_s17 = sphi %s655_s17, %s870_s17   ;;  %s612_s16 = sphi %s653_s16, %s869_s16   ;;  %s608_s15 = sphi %s651_s15, %s868_s15  }
   0x4   : > { %s676_s21 = sadd.s32 1, %s620_s18   ;;  %s93_s22 = sadd.s32 1, %s616_s17 }
   0x5   : > { %s90_s23 = ssub.s32 %s620_s18, %s676_s21  ;;  %p103_p0 = scmp.ne.s32.totalorder %s616_s17, %s612_s16 }
   0x6   : > { %p91_p1 = scmp.eq.s32.totalorder %s90_s23, 0  ;;  %p104_p2 = scmp.eq.s32.totalorder %s672_s19, 3 }
   0x7   : > { %p109_p3 = scmp.ne.s32.totalorder %s612_s16, %s608_s15  ;;  %p110_p4 = scmp.eq.s32.totalorder %s497_s20, 3 }
   0x8   : > { %s687_s24 = scalar_select %p91_p1, %s616_s17, %s93_s22  }
   0x9   : > { %p689_p5 = por %p104_p2, %p103_p0  ;;  %p693_p6 = por %p110_p4, %p109_p3 }
   0xa   : > { %p500_p7 = scmp.ge.s32.totalorder %s620_s18, 1  ;;  %p168_p8 = scmp.lt.s32.totalorder %s620_s18, 5 }
   0xc   : > { %p169_p9 = pnand %p500_p7, %p168_p8 }
   0xd   : > { %v219_v0 = vld [vmem:[%s862_s1 + $0x10] sm:$0xff] (!%p169_p9)  ;;  %v217_v1 = vld [vmem:[%s862_s1] sm:$0xff] (!%p169_p9)  ;;  %v622_v2 = vmov (!%p169_p9), 0   ;;  %v220_v3 = vld [vmem:[%s862_s1 + $0x18] sm:$0xff] (!%p169_p9)  ;;  %p199_p10 = scmp.lt.s32.totalorder (!%p169_p9), %s672_s19, 3  ;;  %s189_s30 = sand.u32 (!%p169_p9), 1, %s612_s16  }
   0xe   : > { %172 = sbr.rel (%p169_p9) target bundleno = 325 (0x145), region = 32  ;;  %557 = vset.pattern.permute.xlu1 (!%p169_p9), %v622_v2  ;;  %556 = vset.pattern.permute.xlu0 (!%p169_p9), %v622_v2  ;;  %v218_v4 = vld [vmem:[%s862_s1 + $0x8] sm:$0xff] (!%p169_p9)  ;;  %v221_v6 = vld [vmem:[%s862_s1 + $0x20] sm:$0xff] (!%p169_p9)  ;;  %v224_v7 = vld [vmem:[%s862_s1 + $0x38] sm:$0xff] (!%p169_p9)  ;;  %s501_s5 = sshll.u32 (!%p169_p9), %s189_s30, 6  ;;  %vm337_vm0 = vcmask (!%p169_p9), 523264  }
   0xf   : > { %237 = vperm.xlu1 (!%p169_p9), %557, %v219_v0   ;;  %227 = vperm.xlu0 (!%p169_p9), %556, %v217_v1   ;;  %v222_v5 = vld [vmem:[%s862_s1 + $0x28] sm:$0xff] (!%p169_p9)  ;;  %v223_v8 = vld [vmem:[%s862_s1 + $0x30] sm:$0xff] (!%p169_p9)  ;;  %v273_v10 = vld [vmem:[%s863_s2] sm:$0xff] (!%p169_p9)  ;;  %s768_s6 = scalar_lea.vmem (!%p169_p9), [#allocation2], %s501_s5  ;;  %s513_s7 = sshll.u32 (!%p169_p9), %s672_s19, 10 }
  0x10   : > { %v274_v9 = vld [vmem:[%s863_s2 + $0x8] sm:$0xff] (!%p169_p9)  ;;  %v276_v11 = vld [vmem:[%s863_s2 + $0x18] sm:$0xff] (!%p169_p9)  ;;  %v275_v12 = vld [vmem:[%s863_s2 + $0x10] sm:$0xff] (!%p169_p9)  ;;  %s407_s8 = sshll.u32 (!%p169_p9), %s768_s6, 4  ;;  %s801_s11 = scalar_lea.hbm (!%p169_p9), %s864_s3, %s513_s7  ;;  %s803_s8 = int_to_ptr.vmem [resolvable:$true] %s407_s8 }
  0x11   : > { %v278_v13 = vld [vmem:[%s863_s2 + $0x28] sm:$0xff] (!%p169_p9)  ;;  %v277_v14 = vld [vmem:[%s863_s2 + $0x20] sm:$0xff] (!%p169_p9)  ;;  %v280_v15 = vld [vmem:[%s863_s2 + $0x38] sm:$0xff] (!%p169_p9)  ;;  %s807_s12 = scalar_lea.sflag (!%p169_p9), [#allocation3], %s189_s30  ;;  %s558_s13 = scalar_lea.vmem (!%p169_p9), %s803_s8, 1024 }
  0x12   : > { %v279_v16 = vld [vmem:[%s863_s2 + $0x30] sm:$0xff] (!%p169_p9)  ;;  %p559_p11 = scmp.ne.s32.totalorder (!%p169_p9), %s803_s8, %s558_s13 }
  0x13   : > { %242 = vperm.xlu1 (!%p169_p9), %557, %v220_v3   ;;  %232 = vperm.xlu0 (!%p169_p9), %556, %v218_v4  }
  0x14   : > { %p560_p12 = pnand (!%p169_p9), %p559_p11, %p689_p5 }
  0x15   : > { %s749_s22 = scalar_select %p199_p10, %s672_s19, 3 }
  0x16   : > { %p561_p13 = pneg %p560_p12  ;;  %s623_s19 = smov [#allocation2]  }
  0x17   : > { %252 = vperm.xlu1 %557, %v222_v5   ;;  %247 = vperm.xlu0 %556, %v221_v6   ;;  %s511_s23 = sshll.u32 %s749_s22, 6  ;;  %s562_s14 = sshll.u32 %s623_s19, 4  ;;  %s563_s14 = int_to_ptr.vmem [resolvable:$false] %s562_s14 }
  0x18   : > { %s757_s29 = scalar_lea.vmem %s861_s0, %s511_s23  ;;  %s564_s20 = scalar_lea.vmem %s563_s14, 2048 }
  0x19   : > { %v209_v23 = vld [vmem:[%s757_s29] sm:$0xff]  ;;  %v210_v24 = vld [vmem:[%s757_s29 + $0x8] sm:$0xff]  ;;  %v211_v29 = vld [vmem:[%s757_s29 + $0x10] sm:$0xff]  ;;  %p565_p0 = scmp.lt.s32.totalorder %s803_s8, %s563_s14  ;;  %p566_p1 = scmp.lt.s32.totalorder %s564_s20, %s558_s13 }
  0x1a   : > { %v212_v30 = vld [vmem:[%s757_s29 + $0x18] sm:$0xff]  ;;  %v214_v39 = vld [vmem:[%s757_s29 + $0x28] sm:$0xff]  ;;  %v213_v40 = vld [vmem:[%s757_s29 + $0x20] sm:$0xff] }
  0x1b   : > { %262 = vperm.xlu1 %557, %v224_v7   ;;  %257 = vperm.xlu0 %556, %v223_v8   ;;  %v216_v51 = vld [vmem:[%s757_s29 + $0x38] sm:$0xff]  ;;  %v215_v52 = vld [vmem:[%s757_s29 + $0x30] sm:$0xff]  ;;  %p567_p2 = por %p566_p1, %p565_p0 }
  0x1d   : > { %p568_p3 = pnand %p567_p2, %p561_p13 }
  0x1f   : > { %288 = vperm.xlu1 %557, %v274_v9   ;;  %283 = vperm.xlu0 %556, %v273_v10  }
  0x23   : > { %298 = vperm.xlu1 %557, %v276_v11   ;;  %293 = vperm.xlu0 %556, %v275_v12  }
  0x27   : > { %308 = vperm.xlu1 %557, %v278_v13   ;;  %303 = vperm.xlu0 %556, %v277_v14  }
  0x2b   : > { %318 = vperm.xlu1 %557, %v280_v15   ;;  %313 = vperm.xlu0 %556, %v279_v16  }
  0x8e   : > { %v238_v17 = vpop.permute.xlu1 %237  ;;  %v228_v18 = vpop.permute.xlu0 %227 }
  0x8f   : > { %v265_v27 = vmul.f32 %v228_v18, %v209_v23  ;;  %v267_v35 = vmul.f32 %v238_v17, %v211_v29 }
  0x92   : > { %v243_v19 = vpop.permute.xlu1 %242  ;;  %v233_v20 = vpop.permute.xlu0 %232 }
  0x93   : > { %v266_v28 = vmul.f32 %v233_v20, %v210_v24  ;;  %v268_v36 = vmul.f32 %v243_v19, %v212_v30 }
  0x96   : > { %v253_v21 = vpop.permute.xlu1 %252  ;;  %v248_v22 = vpop.permute.xlu0 %247 }
  0x97   : > { %v270_v47 = vmul.f32 %v253_v21, %v214_v39  ;;  %v269_v48 = vmul.f32 %v248_v22, %v213_v40 }
  0x9a   : > { %v263_v25 = vpop.permute.xlu1 %262  ;;  %v258_v26 = vpop.permute.xlu0 %257 }
  0x9b   : > { %v272_v58 = vmul.f32 %v263_v25, %v216_v51  ;;  %v271_v59 = vmul.f32 %v258_v26, %v215_v52 }
  0x9e   : > { %v289_v31 = vpop.permute.xlu1 %288  ;;  %v284_v32 = vpop.permute.xlu0 %283 }
  0x9f   : > { %v322_v33 = vadd.f32 %v289_v31, %v266_v28  ;;  %v321_v34 = vadd.f32 %v284_v32, %v265_v27 }
  0xa1   : > { %v330_v37 = vmax.f32 %v322_v33, 0.0  ;;  %v329_v38 = vmax.f32 %v321_v34, 0.0 }
  0xa2   : > { %v299_v41 = vpop.permute.xlu1 %298  ;;  %v294_v42 = vpop.permute.xlu0 %293 }
  0xa3   : > { %339 = vst.msk [vmem:[%s768_s6 + $0x8] sm:$0xff] %vm337_vm0, %v330_v37  ;;  %338 = vst.msk [vmem:[%s768_s6] sm:$0xff] %vm337_vm0, %v329_v38  ;;  %v324_v43 = vadd.f32 %v299_v41, %v268_v36  ;;  %v323_v44 = vadd.f32 %v294_v42, %v267_v35  ;;  %v349_v45 = vsel %vm337_vm0, %v330_v37, 0.0  ;;  %v346_v46 = vsel %vm337_vm0, %v329_v38, 0.0 }
  0xa4   : > { %350 = vadd.xlane.f32.xlu1 %v349_v45  ;;  %347 = vadd.xlane.f32.xlu0 %v346_v46 }
  0xa5   : > { %v332_v49 = vmax.f32 %v324_v43, 0.0  ;;  %v331_v50 = vmax.f32 %v323_v44, 0.0 }
  0xa6   : > { %v309_v53 = vpop.permute.xlu1 %308  ;;  %v304_v54 = vpop.permute.xlu0 %303 }
  0xa7   : > { %341 = vst.msk [vmem:[%s768_s6 + $0x18] sm:$0xff] %vm337_vm0, %v332_v49  ;;  %340 = vst.msk [vmem:[%s768_s6 + $0x10] sm:$0xff] %vm337_vm0, %v331_v50  ;;  %v326_v55 = vadd.f32 %v309_v53, %v270_v47  ;;  %v325_v56 = vadd.f32 %v304_v54, %v269_v48  ;;  %v352_v57 = vsel %vm337_vm0, %v331_v50, 0.0  ;;  %v355_v3 = vsel %vm337_vm0, %v332_v49, 0.0 }
  0xa8   : > { %353 = vadd.xlane.f32.xlu0 %v352_v57 }
  0xa9   : > { %v334_v60 = vmax.f32 %v326_v55, 0.0  ;;  %v333_v61 = vmax.f32 %v325_v56, 0.0 }
  0xaa   : > { %v319_v62 = vpop.permute.xlu1 %318  ;;  %v314_v63 = vpop.permute.xlu0 %313 }
  0xab   : > { %343 = vst.msk [vmem:[%s768_s6 + $0x28] sm:$0xff] %vm337_vm0, %v334_v60  ;;  %342 = vst.msk [vmem:[%s768_s6 + $0x20] sm:$0xff] %vm337_vm0, %v333_v61  ;;  %v328_v0 = vadd.f32 %v319_v62, %v272_v58  ;;  %v327_v1 = vadd.f32 %v314_v63, %v271_v59  ;;  %v358_v2 = vsel %vm337_vm0, %v333_v61, 0.0  ;;  %v361_v7 = vsel %vm337_vm0, %v334_v60, 0.0 }
  0xac   : > { %359 = vadd.xlane.f32.xlu1 %v358_v2  ;;  %356 = vadd.xlane.f32.xlu0 %v355_v3 }
  0xad   : > { %v336_v4 = vmax.f32 %v328_v0, 0.0  ;;  %v335_v5 = vmax.f32 %v327_v1, 0.0 }
  0xaf   : > { %345 = vst.msk [vmem:[%s768_s6 + $0x38] sm:$0xff] %vm337_vm0, %v336_v4  ;;  %344 = vst.msk [vmem:[%s768_s6 + $0x30] sm:$0xff] %vm337_vm0, %v335_v5  ;;  %v364_v6 = vsel %vm337_vm0, %v335_v5, 0.0  ;;  %v367_v8 = vsel %vm337_vm0, %v336_v4, 0.0 }
  0xb0   : > { %365 = vadd.xlane.f32.xlu1 %v364_v6  ;;  %362 = vadd.xlane.f32.xlu0 %v361_v7 }
  0xb4   : > { %368 = vadd.xlane.f32.xlu0 %v367_v8 }
  0xb5   : > { %571 = shalt.err (!%p568_p3)
}
  0xb6   : > { %s572_s27 = scalar_lea.hbm %s801_s11, 1024  ;;  %s576_s30 = scalar_lea.hbm %s864_s3, 4096 }
  0xb7   : > { %p573_p4 = scmp.ne.s32.totalorder %s801_s11, %s572_s27  ;;  %p577_p9 = scmp.lt.u32.totalorder %s801_s11, %s864_s3 }
  0xb8   : > { %p578_p10 = scmp.lt.u32.totalorder %s576_s30, %s572_s27  ;;  %p580_p12 = scmp.lt.u32.totalorder %s572_s27, %s801_s11 }
  0xb9   : > { %p574_p7 = pnand %p573_p4, %p689_p5 }
  0xba   : > { %p579_p11 = por %p578_p10, %p577_p9 }
  0xbb   : > { %p575_p8 = pneg %p574_p7 }
  0xbc   : > { %p581_p13 = por %p580_p12, %p579_p11 }
  0xbe   : > { %p582_p0 = pnand %p581_p13, %p575_p8 }
  0xc0   : > { %585 = shalt.err (!%p582_p0)
}
  0xc1   : > { %s624_s7 = smov 128   ;;  %s625_s9 = smov 8   ;;  %vm379_vm1 = vcmask 7168  }
  0xc2   : > { %514 = dma.vmem_to_hbm [thread:$0]  (%p689_p5), %s803_s8, 1024, %s801_s11, %s807_s12, %s624_s7, %s624_s7, %s625_s9  }
  0xc3   : > { %s208_s19 = scalar_lea.vmem %s865_s4, %s511_s23 }
 0x131   : > { %v351_v9 = vpop.xlane.xlu1 %350  ;;  %v348_v10 = vpop.xlane.xlu0 %347 }
 0x132   : > { %v372_v11 = vmul.f32 0.015625, %v351_v9  ;;  %v371_v12 = vmul.f32 0.015625, %v348_v10 }
 0x134   : > { %381 = vst.msk [vmem:[%s208_s19 + $0x8] sm:$0xff] %vm379_vm1, %v372_v11  ;;  %380 = vst.msk [vmem:[%s208_s19] sm:$0xff] %vm379_vm1, %v371_v12 }
 0x135   : > { %v354_v13 = vpop.xlane.xlu0 %353 }
 0x136   : > { %v373_v14 = vmul.f32 0.015625, %v354_v13 }
 0x138   : > { %382 = vst.msk [vmem:[%s208_s19 + $0x10] sm:$0xff] %vm379_vm1, %v373_v14 }
 0x139   : > { %v360_v15 = vpop.xlane.xlu1 %359  ;;  %v357_v16 = vpop.xlane.xlu0 %356 }
 0x13a   : > { %v375_v17 = vmul.f32 0.015625, %v360_v15  ;;  %v374_v18 = vmul.f32 0.015625, %v357_v16 }
 0x13c   : > { %384 = vst.msk [vmem:[%s208_s19 + $0x20] sm:$0xff] %vm379_vm1, %v375_v17  ;;  %383 = vst.msk [vmem:[%s208_s19 + $0x18] sm:$0xff] %vm379_vm1, %v374_v18 }
 0x13d   : > { %v366_v19 = vpop.xlane.xlu1 %365  ;;  %v363_v20 = vpop.xlane.xlu0 %362 }
 0x13e   : > { %v377_v21 = vmul.f32 0.015625, %v366_v19  ;;  %v376_v22 = vmul.f32 0.015625, %v363_v20 }
 0x140   : > { %386 = vst.msk [vmem:[%s208_s19 + $0x30] sm:$0xff] %vm379_vm1, %v377_v21  ;;  %385 = vst.msk [vmem:[%s208_s19 + $0x28] sm:$0xff] %vm379_vm1, %v376_v22 }
 0x141   : > { %v369_v23 = vpop.xlane.xlu0 %368 }
 0x142   : > { %v378_v24 = vmul.f32 0.015625, %v369_v23 }
 0x144   : > { %387 = vst.msk [vmem:[%s208_s19 + $0x38] sm:$0xff] %vm379_vm1, %v378_v24 }
 0x145 PF: > { %p520_p5 = scmp.ge.s32.totalorder %s620_s18, 2  ;;  %s425_s25 = sand.u32 1, %s608_s15  }
 0x146   : > { %s426_s22 = scalar_lea.sflag [#allocation3], %s425_s25 }
 0x147   : > { %p517_p1 = pnand %p520_p5, %p693_p6 }
 0x149   : > { %603 = dma.done.wait (!%p517_p1), %s426_s22, 1024  }
 0x14a   : > { %605 = vsyncadd (!%p517_p1), %s426_s22, 4294966272  ;;  %p15_p2 = scmp.ge.s32.totalorder %s676_s21, 6   ;;  %s868_s15 = smov %s612_s16 }
 0x14b   : > { %s869_s16 = smov %s616_s17  ;;  %s870_s17 = smov %s687_s24 }
 0x14c   : > { %s871_s18 = smov %s676_s21  ;;  %17 = sbr.rel (!%p15_p2) target bundleno = 3 (0x3), region = 79 }
 0x153   :  { %439 = vsyncpa [#allocation3], 1 }
 0x154   :  { %441 = vsyncpa [#allocation3 + $0x1], 1 }

// kernel: forward.8
= control target key start
LH: loop header
LB: loop body
LE: loop exit
PB: predicated region body
PF: predicated region fallthrough
CT: control target
= control target key end

     0   :  { %s4321_s30 = smov 0   ;;  %s5110_s0 = inlined_call_operand.vmem [shape: f32[4,32,64], index: 0, kind: input, shape index: {}]   ;;  %s5111_s1 = inlined_call_operand.vmem [shape: f32[32,1], index: 1, kind: input, shape index: {}]   ;;  %s5112_s2 = inlined_call_operand.vmem [shape: f32[32,1], index: 2, kind: input, shape index: {}]   ;;  %s5113_s3 = inlined_call_operand.vmem [shape: f32[7,64,32], index: 3, kind: input, shape index: {}]   ;;  %s5114_s4 = inlined_call_operand.vmem [shape: f32[64,1], index: 4, kind: input, shape index: {}]   ;;  %s5115_s5 = inlined_call_operand.vmem [shape: f32[64,1], index: 5, kind: input, shape index: {}]   ;;  %s5116_s6 = inlined_call_operand.vmem [shape: f32[64,1], index: 6, kind: input, shape index: {}]   ;;  %s5117_s7 = inlined_call_operand.vmem [shape: f32[7,64,64], index: 7, kind: input, shape index: {}]   ;;  %s5118_s8 = inlined_call_operand.vmem [shape: f32[64,1], index: 8, kind: input, shape index: {}]   ;;  %s5119_s9 = inlined_call_operand.vmem [shape: f32[4,64,64], index: 9, kind: output, shape index: {}]  }
   0x1 LB: > { %s3026_s10 = sadd.s32 4294967295, %s4260_s30   ;;  %p3030_p0 = scmp.ge.s32.totalorder %s4260_s30, 1  ;;  %s4260_s30 = sphi %s4321_s30, %s19_s30  }
   0x2   : > { %p287_p1 = scmp.lt.s32.totalorder %s4260_s30, 5 }
   0x4   : > { %p288_p2 = pnand %p3030_p0, %p287_p1 }
   0x5   : > { %v365_v0 = vld [vmem:[%s5112_s2] sm:$0xff] (!%p288_p2)  ;;  %v4262_v2 = vmov (!%p288_p2), 0   ;;  %v366_v3 = vld [vmem:[%s5112_s2 + $0x8] sm:$0xff] (!%p288_p2)  ;;  %v340_v5 = vld [vmem:[%s5111_s1 + $0x18] sm:$0xff] (!%p288_p2)  ;;  %vm397_vm0 = vcmask (!%p288_p2), 572416   ;;  %v4263_v9 = vmov (!%p288_p2), 0.0  }
   0x6   : > { %291 = sbr.rel (%p288_p2) target bundleno = 1296 (0x510), region = 56  ;;  %v337_v1 = vld [vmem:[%s5111_s1] sm:$0xff] (!%p288_p2)  ;;  %4069 = vset.pattern.permute.xlu1 (!%p288_p2), %v4262_v2  ;;  %4068 = vset.pattern.permute.xlu0 (!%p288_p2), %v4262_v2  ;;  %v338_v4 = vld [vmem:[%s5111_s1 + $0x8] sm:$0xff] (!%p288_p2)  ;;  %v339_v6 = vld [vmem:[%s5111_s1 + $0x10] sm:$0xff] (!%p288_p2)  ;;  %398 = vst.msk [vmem:[#allocation2] sm:$0xff] (!%p288_p2), %vm397_vm0, %v4263_v9  ;;  %p323_p3 = scmp.lt.s32.totalorder (!%p288_p2), %s3026_s10, 3 }
   0x7   : > { %371 = vperm.xlu1 (!%p288_p2), %4069, %v365_v0   ;;  %343 = vperm.xlu0 (!%p288_p2), %4068, %v337_v1   ;;  %v368_v7 = vld [vmem:[%s5112_s2 + $0x18] sm:$0xff] (!%p288_p2)  ;;  %v367_v8 = vld [vmem:[%s5112_s2 + $0x10] sm:$0xff] (!%p288_p2)  ;;  %399 = vst.msk [vmem:[#allocation2 + $0x8] sm:$0xff] (!%p288_p2), %vm397_vm0, %v4263_v9  ;;  %400 = vst.msk [vmem:[#allocation2 + $0x10] sm:$0xff] (!%p288_p2), %vm397_vm0, %v4263_v9  ;;  %s4264_s12 = smov (!%p288_p2), 3   ;;  %vm418_vm1 = vcmask (!%p288_p2), 547864  }
   0x8   : > { %401 = vst.msk [vmem:[#allocation2 + $0x18] sm:$0xff] (!%p288_p2), %vm397_vm0, %v4263_v9  ;;  %1685 = vst.msk [vmem:[#allocation3] sm:$0xff] (!%p288_p2), %vm397_vm0, %v4263_v9  ;;  %s4265_s13 = smov (!%p288_p2), 127   ;;  %v3035_v42 = vld [vmem:[%s5113_s3 + $0x40] sm:$0xff] (!%p288_p2)  ;;  %vm460_vm2 = vcmask (!%p288_p2), 261120   ;;  %s4266_s16 = smov (!%p288_p2), 126  }
   0x9   : > { %1686 = vst.msk [vmem:[#allocation3 + $0x8] sm:$0xff] (!%p288_p2), %vm397_vm0, %v4263_v9  ;;  %1687 = vst.msk [vmem:[#allocation3 + $0x10] sm:$0xff] (!%p288_p2), %vm397_vm0, %v4263_v9  ;;  %3451 = vmatprep.mubr.msk.f32.mxu0 (!%p288_p2), %vm460_vm2, %v3035_v42  ;;  %s4267_s17 = smov (!%p288_p2), 125   ;;  %s4268_s18 = smov (!%p288_p2), 124   ;;  %v1509_v47 = vld [vmem:[%s5114_s4] sm:$0xff] (!%p288_p2)  ;;  %v1510_v49 = vld [vmem:[%s5114_s4 + $0x8] sm:$0xff] (!%p288_p2) }
   0xa   : > { %1688 = vst.msk [vmem:[#allocation3 + $0x18] sm:$0xff] (!%p288_p2), %vm397_vm0, %v4263_v9  ;;  %1689 = vst.msk [vmem:[#allocation3 + $0x20] sm:$0xff] (!%p288_p2), %vm397_vm0, %v4263_v9  ;;  %s4269_s19 = smov (!%p288_p2), 123   ;;  %s4270_s20 = smov (!%p288_p2), 122   ;;  %v1565_v48 = vld [vmem:[%s5115_s5] sm:$0xff] (!%p288_p2)  ;;  %v1511_v50 = vld [vmem:[%s5114_s4 + $0x10] sm:$0xff] (!%p288_p2) }
   0xb   : > { %376 = vperm.xlu1 (!%p288_p2), %4069, %v366_v3   ;;  %348 = vperm.xlu0 (!%p288_p2), %4068, %v338_v4   ;;  %1690 = vst.msk [vmem:[#allocation3 + $0x28] sm:$0xff] (!%p288_p2), %vm397_vm0, %v4263_v9  ;;  %1691 = vst.msk [vmem:[#allocation3 + $0x30] sm:$0xff] (!%p288_p2), %vm397_vm0, %v4263_v9  ;;  %v1566_v51 = vld [vmem:[%s5115_s5 + $0x8] sm:$0xff] (!%p288_p2)  ;;  %v1621_v52 = vld [vmem:[%s5116_s6] sm:$0xff] (!%p288_p2)  ;;  %vm1790_vm3 = vcmask (!%p288_p2), 523264  }
   0xc   : > { %1692 = vst.msk [vmem:[#allocation3 + $0x38] sm:$0xff] (!%p288_p2), %vm397_vm0, %v4263_v9  ;;  %v1512_v53 = vld [vmem:[%s5114_s4 + $0x18] sm:$0xff] (!%p288_p2)  ;;  %v1567_v54 = vld [vmem:[%s5115_s5 + $0x10] sm:$0xff] (!%p288_p2)  ;;  %v1622_v55 = vld [vmem:[%s5116_s6 + $0x8] sm:$0xff] (!%p288_p2) }
   0xd   : > { %s5121_s10 = smov (!%p323_p3, %s3026_s10), 3  ;;  %v1513_v56 = vld [vmem:[%s5114_s4 + $0x20] sm:$0xff]  ;;  %v1568_v57 = vld [vmem:[%s5115_s5 + $0x18] sm:$0xff]  ;;  %v1623_v58 = vld [vmem:[%s5116_s6 + $0x10] sm:$0xff] }
   0xe   : > { %s3245_s27 = sshll.u32 %s5121_s10, 5  ;;  %v1514_v59 = vld [vmem:[%s5114_s4 + $0x28] sm:$0xff]  ;;  %v1569_v60 = vld [vmem:[%s5115_s5 + $0x20] sm:$0xff]  ;;  %v1624_v61 = vld [vmem:[%s5116_s6 + $0x18] sm:$0xff] }
   0xf   : > { %358 = vperm.xlu1 %4069, %v340_v5   ;;  %353 = vperm.xlu0 %4068, %v339_v6   ;;  %s4363_s11 = scalar_lea.vmem %s5110_s0, %s3245_s27  ;;  %v1515_v62 = vld [vmem:[%s5114_s4 + $0x30] sm:$0xff]  ;;  %v1570_v63 = vld [vmem:[%s5115_s5 + $0x28] sm:$0xff]  ;;  %v1625_v0 = vld [vmem:[%s5116_s6 + $0x20] sm:$0xff] }
  0x10   : > { %v333_v10 = vld [vmem:[%s4363_s11] sm:$0xff]  ;;  %v334_v14 = vld [vmem:[%s4363_s11 + $0x8] sm:$0xff]  ;;  %v336_v22 = vld [vmem:[%s4363_s11 + $0x18] sm:$0xff] }
  0x11   : > { %v335_v24 = vld [vmem:[%s4363_s11 + $0x10] sm:$0xff]  ;;  %v1516_v1 = vld [vmem:[%s5114_s4 + $0x38] sm:$0xff]  ;;  %v1626_v3 = vld [vmem:[%s5116_s6 + $0x28] sm:$0xff] }
  0x12   : > { %v1571_v2 = vld [vmem:[%s5115_s5 + $0x30] sm:$0xff]  ;;  %v1572_v5 = vld [vmem:[%s5115_s5 + $0x38] sm:$0xff] }
  0x13   : > { %386 = vperm.xlu1 %4069, %v368_v7   ;;  %381 = vperm.xlu0 %4068, %v367_v8   ;;  %v1627_v4 = vld [vmem:[%s5116_s6 + $0x30] sm:$0xff]  ;;  %v1628_v6 = vld [vmem:[%s5116_s6 + $0x38] sm:$0xff] }
  0x14   : > { %v430_v42 = vld [vmem:[%s5113_s3 + $0x38] sm:$0xff] }
  0x86   : > { %v372_v11 = vpop.permute.xlu1 %371  ;;  %v344_v12 = vpop.permute.xlu0 %343 }
  0x87   : > { %v361_v13 = vmul.f32 %v344_v12, %v333_v10 }
  0x89   : > { %v389_v15 = vadd.f32 %v372_v11, %v361_v13 }
  0x8a   : > { %v377_v16 = vpop.permute.xlu1 %376  ;;  %v349_v17 = vpop.permute.xlu0 %348 }
  0x8b   : > { %v393_v18 = vmax.f32 %v389_v15, 0.0  ;;  %v362_v19 = vmul.f32 %v349_v17, %v334_v14  ;;  %v3037_v17 = vld [vmem:[%s5113_s3 + $0x50] sm:$0xff] }
  0x8d   : > { %v390_v20 = vadd.f32 %v377_v16, %v362_v19  ;;  %406 = vrot.lane.b32.xlu0 %v393_v18, %s4264_s12  ;;  %v3036_v16 = vld [vmem:[%s5113_s3 + $0x48] sm:$0xff] }
  0x8e   : > { %v359_v21 = vpop.permute.xlu1 %358  ;;  %v354_v23 = vpop.permute.xlu0 %353 }
  0x8f   : > { %v394_v25 = vmax.f32 %v390_v20, 0.0  ;;  %v364_v26 = vmul.f32 %v359_v21, %v336_v22  ;;  %v363_v27 = vmul.f32 %v354_v23, %v335_v24  ;;  %v3038_v20 = vld [vmem:[%s5113_s3 + $0x58] sm:$0xff]  ;;  %v3039_v21 = vld [vmem:[%s5113_s3 + $0x60] sm:$0xff]  ;;  %v3040_v23 = vld [vmem:[%s5113_s3 + $0x68] sm:$0xff] }
  0x90   : > { %v3041_v24 = vld [vmem:[%s5113_s3 + $0x70] sm:$0xff] }
  0x91   : > { %408 = vrot.lane.b32.xlu1 %v394_v25, %s4264_s12 }
  0x92   : > { %v387_v28 = vpop.permute.xlu1 %386  ;;  %v382_v29 = vpop.permute.xlu0 %381 }
  0x93   : > { %v392_v30 = vadd.f32 %v387_v28, %v364_v26  ;;  %v391_v31 = vadd.f32 %v382_v29, %v363_v27  ;;  %v3042_v26 = vld [vmem:[%s5113_s3 + $0x78] sm:$0xff]  ;;  %v423_v27 = vld [vmem:[%s5113_s3] sm:$0xff] }
  0x95   : > { %v396_v32 = vmax.f32 %v392_v30, 0.0  ;;  %v395_v33 = vmax.f32 %v391_v31, 0.0  ;;  %v424_v31 = vld [vmem:[%s5113_s3 + $0x8] sm:$0xff] }
  0x97   : > { %412 = vrot.lane.b32.xlu1 %v396_v32, %s4264_s12  ;;  %410 = vrot.lane.b32.xlu0 %v395_v33, %s4264_s12  ;;  %v425_v32 = vld [vmem:[%s5113_s3 + $0x10] sm:$0xff] }
  0xff   : > { %v407_v34 = vpop.permute.xlu0 %406 }
 0x100   : > { %419 = vst.msk [vmem:[#allocation2] sm:$0xff] %vm418_vm1, %v407_v34 }
 0x103   : > { %v409_v35 = vpop.permute.xlu1 %408 }
 0x104   : > { %420 = vst.msk [vmem:[#allocation2 + $0x8] sm:$0xff] %vm418_vm1, %v409_v35 }
 0x107   : > { %v431_v38 = vld [vmem:[#allocation2] sm:$0xff] }
 0x109   : > { %v413_v36 = vpop.permute.xlu1 %412  ;;  %v411_v37 = vpop.permute.xlu0 %410 }
 0x10a   : > { %422 = vst.msk [vmem:[#allocation2 + $0x18] sm:$0xff] %vm418_vm1, %v413_v36  ;;  %421 = vst.msk [vmem:[#allocation2 + $0x10] sm:$0xff] %vm418_vm1, %v411_v37  ;;  %v426_v36 = vld [vmem:[%s5113_s3 + $0x18] sm:$0xff]  ;;  %v427_v37 = vld [vmem:[%s5113_s3 + $0x20] sm:$0xff] }
 0x10b   : > { %v432_v39 = vld [vmem:[#allocation2 + $0x8] sm:$0xff] }
 0x10c   : > { %v4070_v40 = vpack.i.bf16 %v432_v39, %v431_v38  ;;  %v4377_v41 = vpack.c.bf16 %v432_v39, %v431_v38  ;;  %v428_v39 = vld [vmem:[%s5113_s3 + $0x28] sm:$0xff] }
 0x10e   : > { %4071 = vrot.lane.b32.xlu0 %v4070_v40, %s4265_s13 }
 0x111   : > { %v433_v43 = vld [vmem:[#allocation2 + $0x10] sm:$0xff]  ;;  %v434_v44 = vld [vmem:[#allocation2 + $0x18] sm:$0xff] }
 0x112   : > { %4081 = vrot.lane.b32.xlu0 %v4070_v40, %s4266_s16  ;;  %v4075_v45 = vpack.i.bf16 %v434_v44, %v433_v43  ;;  %v4385_v46 = vpack.c.bf16 %v434_v44, %v433_v43  ;;  %v3059_v43 = vld [vmem:[%s5113_s3 + $0x80] sm:$0xff] }
 0x114   : > { %4076 = vrot.lane.b32.xlu1 %v4075_v45, %s4265_s13 }
 0x116   : > { %4091 = vrot.lane.b32.xlu0 %v4070_v40, %s4267_s17 }
 0x118   : > { %4086 = vrot.lane.b32.xlu1 %v4075_v45, %s4266_s16 }
 0x11a   : > { %4101 = vrot.lane.b32.xlu0 %v4070_v40, %s4268_s18 }
 0x11c   : > { %4096 = vrot.lane.b32.xlu1 %v4075_v45, %s4267_s17 }
 0x11e   : > { %4111 = vrot.lane.b32.xlu0 %v4070_v40, %s4269_s19 }
 0x120   : > { %4106 = vrot.lane.b32.xlu1 %v4075_v45, %s4268_s18 }
 0x122   : > { %4121 = vrot.lane.b32.xlu0 %v4070_v40, %s4270_s20  ;;  %v429_v40 = vld [vmem:[%s5113_s3 + $0x30] sm:$0xff] }
 0x124   : > { %4116 = vrot.lane.b32.xlu1 %v4075_v45, %s4269_s19 }
 0x126   : > { %1519 = vperm.xlu0 %4068, %v1509_v47   ;;  %v3060_v47 = vld [vmem:[%s5113_s3 + $0x88] sm:$0xff] }
 0x128   : > { %4126 = vrot.lane.b32.xlu1 %v4075_v45, %s4270_s20 }
 0x12a   : > { %1575 = vperm.xlu0 %4068, %v1565_v48   ;;  %v3061_v48 = vld [vmem:[%s5113_s3 + $0x90] sm:$0xff] }
 0x12c   : > { %1524 = vperm.xlu1 %4069, %v1510_v49  }
 0x12e   : > { %1529 = vperm.xlu0 %4068, %v1511_v50  }
 0x130   : > { %1580 = vperm.xlu1 %4069, %v1566_v51  }
 0x132   : > { %1631 = vperm.xlu0 %4068, %v1621_v52   ;;  %v3062_v52 = vld [vmem:[%s5113_s3 + $0x98] sm:$0xff] }
 0x134   : > { %1534 = vperm.xlu1 %4069, %v1512_v53   ;;  %v3063_v53 = vld [vmem:[%s5113_s3 + $0xa0] sm:$0xff] }
 0x136   : > { %1585 = vperm.xlu0 %4068, %v1567_v54  }
 0x138   : > { %1636 = vperm.xlu1 %4069, %v1622_v55   ;;  %v3064_v55 = vld [vmem:[%s5113_s3 + $0xa8] sm:$0xff] }
 0x13a   : > { %1539 = vperm.xlu0 %4068, %v1513_v56   ;;  %v3065_v56 = vld [vmem:[%s5113_s3 + $0xb0] sm:$0xff] }
 0x13c   : > { %1590 = vperm.xlu1 %4069, %v1568_v57  }
 0x13e   : > { %1641 = vperm.xlu0 %4068, %v1623_v58   ;;  %v3066_v58 = vld [vmem:[%s5113_s3 + $0xb8] sm:$0xff] }
 0x140   : > { %1544 = vperm.xlu1 %4069, %v1514_v59   ;;  %v3075_v59 = vld [vmem:[%s5113_s3 + $0xc0] sm:$0xff] }
 0x142   : > { %1595 = vperm.xlu0 %4068, %v1569_v60  }
 0x144   : > { %1646 = vperm.xlu1 %4069, %v1624_v61  }
 0x146   : > { %1549 = vperm.xlu0 %4068, %v1515_v62  }
 0x148   : > { %1600 = vperm.xlu1 %4069, %v1570_v63   ;;  %v3076_v63 = vld [vmem:[%s5113_s3 + $0xc8] sm:$0xff] }
 0x14a   : > { %1651 = vperm.xlu0 %4068, %v1625_v0   ;;  %v3077_v0 = vld [vmem:[%s5113_s3 + $0xd0] sm:$0xff] }
 0x14c   : > { %1554 = vperm.xlu1 %4069, %v1516_v1  }
 0x14e   : > { %1605 = vperm.xlu0 %4068, %v1571_v2  }
 0x150   : > { %1656 = vperm.xlu1 %4069, %v1626_v3  }
 0x152   : > { %1661 = vperm.xlu0 %4068, %v1627_v4   ;;  %v3078_v4 = vld [vmem:[%s5113_s3 + $0xd8] sm:$0xff] }
 0x154   : > { %1610 = vperm.xlu1 %4069, %v1572_v5   ;;  %v3079_v5 = vld [vmem:[%s5113_s3 + $0xe0] sm:$0xff] }
 0x158   : > { %1666 = vperm.xlu1 %4069, %v1628_v6  }
 0x180   : > { %v4072_v7 = vpop.permute.xlu0 %4071 }
 0x181   : > { %v4074_v8 = vunpack.i.h.bf16 %v4072_v7  ;;  %v4073_v9 = vunpack.i.l.bf16 %v4072_v7  ;;  %v3080_v7 = vld [vmem:[%s5113_s3 + $0xe8] sm:$0xff] }
 0x183   : > { %v3779_v10 = vpack.c.bf16 %v4074_v8, %v4073_v9  ;;  %v3081_v8 = vld [vmem:[%s5113_s3 + $0xf0] sm:$0xff] }
 0x184   : > { %v4082_v15 = vpop.permute.xlu0 %4081 }
 0x185   : > { %3780 = vmatprep.subr.bf16.mxu0 %v3779_v10  ;;  %v4084_v18 = vunpack.i.h.bf16 %v4082_v15  ;;  %v4083_v19 = vunpack.i.l.bf16 %v4082_v15  ;;  %v3092_v15 = vld [vmem:[%s5113_s3 + $0x108] sm:$0xff] }
 0x186   : > { %v4077_v11 = vpop.permute.xlu1 %4076  ;;  %3782 = vmatpush3.bf16.msra.mxu0 %v3779_v10  ;;  %v3082_v10 = vld [vmem:[%s5113_s3 + $0xf8] sm:$0xff] }
 0x187   : > { %v4079_v12 = vunpack.i.h.bf16 %v4077_v11  ;;  %v4078_v13 = vunpack.i.l.bf16 %v4077_v11  ;;  %v3795_v22 = vpack.c.bf16 %v4084_v18, %v4083_v19  ;;  %v3091_v11 = vld [vmem:[%s5113_s3 + $0x100] sm:$0xff] }
 0x188   : > { %v4092_v30 = vpop.permute.xlu0 %4091 }
 0x189   : > { %v3783_v14 = vpack.c.bf16 %v4079_v12, %v4078_v13  ;;  %v4094_v33 = vunpack.i.h.bf16 %v4092_v30  ;;  %v4093_v34 = vunpack.i.l.bf16 %v4092_v30  ;;  %v3108_v30 = vld [vmem:[%s5113_s3 + $0x148] sm:$0xff] }
 0x18a   : > { %v4087_v25 = vpop.permute.xlu1 %4086 }
 0x18b   : > { %3784 = vmatprep.subr.bf16.mxu0 %v3783_v14  ;;  %v4089_v28 = vunpack.i.h.bf16 %v4087_v25  ;;  %v4088_v29 = vunpack.i.l.bf16 %v4087_v25  ;;  %v3803_v38 = vpack.c.bf16 %v4094_v33, %v4093_v34  ;;  %v3110_v33 = vld [vmem:[%s5113_s3 + $0x158] sm:$0xff]  ;;  %v3111_v34 = vld [vmem:[%s5113_s3 + $0x160] sm:$0xff] }
 0x18c   : > { %3786 = vmatpush3.bf16.msra.mxu0 %v3783_v14 }
 0x18d   : > { %3788 = vmatprep.subr.bf16.mxu0 %v4377_v41  ;;  %v3799_v35 = vpack.c.bf16 %v4089_v28, %v4088_v29 }
 0x18f   : > { %3452 = vmatmul.mubr.msk.f32.vlgmr.msra.gmra.mrb[0].mxu0 %vm460_vm2, %v3036_v16  ;;  %v3093_v16 = vld [vmem:[%s5113_s3 + $0x110] sm:$0xff] }
 0x190   : > { %3790 = vmatpush3.bf16.msra.mxu0 %v4377_v41  ;;  %3454 = vmatprep.mubr.msk.f32.mxu0 %vm460_vm2, %v3037_v17  ;;  %v4097_v41 = vpop.permute.xlu1 %4096 }
 0x191   : > { %3792 = vmatprep.subr.bf16.mxu0 %v4385_v46  ;;  %v4099_v44 = vunpack.i.h.bf16 %v4097_v41  ;;  %v4098_v45 = vunpack.i.l.bf16 %v4097_v41  ;;  %v3126_v41 = vld [vmem:[%s5113_s3 + $0x198] sm:$0xff] }
 0x193   : > { %3455 = vmatmul.mubr.msk.f32.gmra.mrb[2].mxu0 %vm460_vm2, %v3038_v20  ;;  %v3807_v51 = vpack.c.bf16 %v4099_v44, %v4098_v45  ;;  %v3094_v20 = vld [vmem:[%s5113_s3 + $0x118] sm:$0xff]  ;;  %v3129_v44 = vld [vmem:[%s5113_s3 + $0x1b0] sm:$0xff] }
 0x194   : > { %3794 = vmatpush3.bf16.msra.mxu0 %v4385_v46  ;;  %3457 = vmatprep.mubr.msk.f32.mxu0 %vm460_vm2, %v3039_v21  ;;  %v4102_v46 = vpop.permute.xlu0 %4101  ;;  %v4107_v57 = vpop.permute.xlu1 %4106  ;;  %v3095_v21 = vld [vmem:[%s5113_s3 + $0x120] sm:$0xff]  ;;  %v3130_v45 = vld [vmem:[%s5113_s3 + $0x1b8] sm:$0xff] }
 0x195   : > { %3796 = vmatprep.subr.bf16.mxu0 %v3795_v22  ;;  %v4104_v49 = vunpack.i.h.bf16 %v4102_v46  ;;  %v4103_v50 = vunpack.i.l.bf16 %v4102_v46  ;;  %v4109_v60 = vunpack.i.h.bf16 %v4107_v57  ;;  %v4108_v61 = vunpack.i.l.bf16 %v4107_v57 }
 0x197   : > { %3458 = vmatmul.mubr.msk.f32.gmra.mrb[4].mxu0 %vm460_vm2, %v3040_v23  ;;  %v3811_v54 = vpack.c.bf16 %v4104_v49, %v4103_v50  ;;  %v3815_v3 = vpack.c.bf16 %v4109_v60, %v4108_v61  ;;  %v3096_v23 = vld [vmem:[%s5113_s3 + $0x128] sm:$0xff] }
 0x198   : > { %3460 = vmatprep.mubr.msk.f32.mxu0 %vm460_vm2, %v3041_v24  ;;  %v4112_v62 = vpop.permute.xlu0 %4111  ;;  %v4117_v9 = vpop.permute.xlu1 %4116  ;;  %v3097_v24 = vld [vmem:[%s5113_s3 + $0x130] sm:$0xff] }
 0x199   : > { %v4114_v1 = vunpack.i.h.bf16 %v4112_v62  ;;  %v4113_v2 = vunpack.i.l.bf16 %v4112_v62  ;;  %v4119_v12 = vunpack.i.h.bf16 %v4117_v9  ;;  %v4118_v13 = vunpack.i.l.bf16 %v4117_v9 }
 0x19b   : > { %3461 = vmatmul.mubr.msk.f32.gmra.mrb[6].mxu0 %vm460_vm2, %v3042_v26  ;;  %v3819_v6 = vpack.c.bf16 %v4114_v1, %v4113_v2  ;;  %v3823_v19 = vpack.c.bf16 %v4119_v12, %v4118_v13  ;;  %v3098_v26 = vld [vmem:[%s5113_s3 + $0x138] sm:$0xff] }
 0x19c   : > { %3471 = vmatprep.mubr.msk.f32.mxu0 %vm460_vm2, %v423_v27  ;;  %v4122_v14 = vpop.permute.xlu0 %4121  ;;  %v4127_v25 = vpop.permute.xlu1 %4126  ;;  %v3107_v27 = vld [vmem:[%s5113_s3 + $0x140] sm:$0xff] }
 0x19d   : > { %v4124_v17 = vunpack.i.h.bf16 %v4122_v14  ;;  %v4123_v18 = vunpack.i.l.bf16 %v4122_v14  ;;  %v4129_v28 = vunpack.i.h.bf16 %v4127_v25  ;;  %v4128_v29 = vunpack.i.l.bf16 %v4127_v25 }
 0x19f   : > { %3472 = vmatmul.mubr.msk.f32.vlgmr.msra.gmra.mrb[0].mxu0 %vm460_vm2, %v424_v31  ;;  %v3109_v31 = vld [vmem:[%s5113_s3 + $0x150] sm:$0xff] }
 0x1a0   : > { %3798 = vmatpush3.bf16.msra.mxu0 %v3795_v22  ;;  %3474 = vmatprep.mubr.msk.f32.mxu0 %vm460_vm2, %v425_v32  ;;  %v3827_v22 = vpack.c.bf16 %v4124_v17, %v4123_v18  ;;  %v3831_v32 = vpack.c.bf16 %v4129_v28, %v4128_v29 }
 0x1a1   : > { %3800 = vmatprep.subr.bf16.mxu0 %v3799_v35 }
 0x1a3   : > { %3475 = vmatmul.mubr.msk.f32.gmra.mrb[2].mxu0 %vm460_vm2, %v426_v36  ;;  %v3113_v36 = vld [vmem:[%s5113_s3 + $0x170] sm:$0xff] }
 0x1a4   : > { %3802 = vmatpush3.bf16.msra.mxu0 %v3799_v35  ;;  %3477 = vmatprep.mubr.msk.f32.mxu0 %vm460_vm2, %v427_v37  ;;  %v3112_v35 = vld [vmem:[%s5113_s3 + $0x168] sm:$0xff]  ;;  %v3114_v37 = vld [vmem:[%s5113_s3 + $0x178] sm:$0xff] }
 0x1a5   : > { %3804 = vmatprep.subr.bf16.mxu0 %v3803_v38 }
 0x1a7   : > { %3478 = vmatmul.mubr.msk.f32.gmra.mrb[4].mxu0 %vm460_vm2, %v428_v39  ;;  %v3124_v39 = vld [vmem:[%s5113_s3 + $0x188] sm:$0xff] }
 0x1a8   : > { %3480 = vmatprep.mubr.msk.f32.mxu0 %vm460_vm2, %v429_v40  ;;  %v3125_v40 = vld [vmem:[%s5113_s3 + $0x190] sm:$0xff] }
 0x1ab   : > { %3481 = vmatmul.mubr.msk.f32.gmra.mrb[6].mxu0 %vm460_vm2, %v430_v42  ;;  %v3127_v42 = vld [vmem:[%s5113_s3 + $0x1a0] sm:$0xff]  ;;  %v1525_v46 = vpop.permute.xlu1 %1524 }
 0x1ac   : > { %3491 = vmatprep.mubr.msk.f32.mxu0 %vm460_vm2, %v3059_v43  ;;  %v3128_v43 = vld [vmem:[%s5113_s3 + $0x1a8] sm:$0xff] }
 0x1af   : > { %3492 = vmatmul.mubr.msk.f32.vlgmr.msra.gmra.mrb[0].mxu0 %vm460_vm2, %v3060_v47  ;;  %v1520_v47 = vpop.permute.xlu0 %1519 }
 0x1b0   : > { %3806 = vmatpush3.bf16.msra.mxu0 %v3803_v38  ;;  %3494 = vmatprep.mubr.msk.f32.mxu0 %vm460_vm2, %v3061_v48  ;;  %v3123_v38 = vld [vmem:[%s5113_s3 + $0x180] sm:$0xff]  ;;  %v1581_v48 = vpop.permute.xlu1 %1580 }
 0x1b1   : > { %3808 = vmatprep.subr.bf16.mxu0 %v3807_v51 }
 0x1b3   : > { %3495 = vmatmul.mubr.msk.f32.gmra.mrb[2].mxu0 %vm460_vm2, %v3062_v52  ;;  %v1576_v49 = vpop.permute.xlu0 %1575 }
 0x1b4   : > { %3810 = vmatpush3.bf16.msra.mxu0 %v3807_v51  ;;  %3497 = vmatprep.mubr.msk.f32.mxu0 %vm460_vm2, %v3063_v53  ;;  %v1535_v50 = vpop.permute.xlu1 %1534 }
 0x1b5   : > { %3812 = vmatprep.subr.bf16.mxu0 %v3811_v54 }
 0x1b7   : > { %3498 = vmatmul.mubr.msk.f32.gmra.mrb[4].mxu0 %vm460_vm2, %v3064_v55  ;;  %v1530_v51 = vpop.permute.xlu0 %1529 }
 0x1b8   : > { %3500 = vmatprep.mubr.msk.f32.mxu0 %vm460_vm2, %v3065_v56  ;;  %v1637_v52 = vpop.permute.xlu1 %1636 }
 0x1bb   : > { %3501 = vmatmul.mubr.msk.f32.gmra.mrb[6].mxu0 %vm460_vm2, %v3066_v58  ;;  %v1632_v53 = vpop.permute.xlu0 %1631 }
 0x1bc   : > { %3511 = vmatprep.mubr.msk.f32.mxu0 %vm460_vm2, %v3075_v59 }
 0x1bf   : > { %3512 = vmatmul.mubr.msk.f32.vlgmr.msra.gmra.mrb[0].mxu0 %vm460_vm2, %v3076_v63  ;;  %v1586_v55 = vpop.permute.xlu0 %1585 }
 0x1c0   : > { %3814 = vmatpush3.bf16.msra.mxu0 %v3811_v54  ;;  %3514 = vmatprep.mubr.msk.f32.mxu0 %vm460_vm2, %v3077_v0  ;;  %v1591_v54 = vpop.permute.xlu1 %1590 }
 0x1c1   : > { %3816 = vmatprep.subr.bf16.mxu0 %v3815_v3 }
 0x1c3   : > { %3515 = vmatmul.mubr.msk.f32.gmra.mrb[2].mxu0 %vm460_vm2, %v3078_v4  ;;  %v1540_v57 = vpop.permute.xlu0 %1539 }
 0x1c4   : > { %3818 = vmatpush3.bf16.msra.mxu0 %v3815_v3  ;;  %3517 = vmatprep.mubr.msk.f32.mxu0 %vm460_vm2, %v3079_v5  ;;  %v1545_v56 = vpop.permute.xlu1 %1544 }
 0x1c5   : > { %3820 = vmatprep.subr.bf16.mxu0 %v3819_v6 }
 0x1c7   : > { %3518 = vmatmul.mubr.msk.f32.gmra.mrb[4].mxu0 %vm460_vm2, %v3080_v7  ;;  %v1642_v59 = vpop.permute.xlu0 %1641 }
 0x1c8   : > { %3520 = vmatprep.mubr.msk.f32.mxu0 %vm460_vm2, %v3081_v8  ;;  %v1647_v58 = vpop.permute.xlu1 %1646 }
 0x1cb   : > { %3521 = vmatmul.mubr.msk.f32.gmra.mrb[6].mxu0 %vm460_vm2, %v3082_v10  ;;  %v1596_v61 = vpop.permute.xlu0 %1595 }
 0x1cc   : > { %3531 = vmatprep.mubr.msk.f32.mxu0 %vm460_vm2, %v3091_v11  ;;  %v1601_v60 = vpop.permute.xlu1 %1600 }
 0x1cf   : > { %3532 = vmatmul.mubr.msk.f32.vlgmr.msra.gmra.mrb[0].mxu0 %vm460_vm2, %v3092_v15  ;;  %v1550_v63 = vpop.permute.xlu0 %1549 }
 0x1d0   : > { %3822 = vmatpush3.bf16.msra.mxu0 %v3819_v6  ;;  %3534 = vmatprep.mubr.msk.f32.mxu0 %vm460_vm2, %v3093_v16  ;;  %v1555_v62 = vpop.permute.xlu1 %1554 }
 0x1d1   : > { %3824 = vmatprep.subr.bf16.mxu0 %v3823_v19 }
 0x1d3   : > { %3535 = vmatmul.mubr.msk.f32.gmra.mrb[2].mxu0 %vm460_vm2, %v3094_v20  ;;  %v1652_v8 = vpop.permute.xlu0 %1651 }
 0x1d4   : > { %3826 = vmatpush3.bf16.msra.mxu0 %v3823_v19  ;;  %3537 = vmatprep.mubr.msk.f32.mxu0 %vm460_vm2, %v3095_v21  ;;  %v1657_v5 = vpop.permute.xlu1 %1656 }
 0x1d5   : > { %3828 = vmatprep.subr.bf16.mxu0 %v3827_v22 }
 0x1d7   : > { %3538 = vmatmul.mubr.msk.f32.gmra.mrb[4].mxu0 %vm460_vm2, %v3096_v23  ;;  %v1606_v25 = vpop.permute.xlu0 %1605 }
 0x1d8   : > { %3540 = vmatprep.mubr.msk.f32.mxu0 %vm460_vm2, %v3097_v24 }
 0x1db   : > { %3541 = vmatmul.mubr.msk.f32.gmra.mrb[6].mxu0 %vm460_vm2, %v3098_v26 }
 0x1dc   : > { %3551 = vmatprep.mubr.msk.f32.mxu0 %vm460_vm2, %v3107_v27 }
 0x1df   : > { %3552 = vmatmul.mubr.msk.f32.vlgmr.msra.gmra.mrb[0].mxu0 %vm460_vm2, %v3108_v30 }
 0x1e0   : > { %3830 = vmatpush3.bf16.msra.mxu0 %v3827_v22  ;;  %3554 = vmatprep.mubr.msk.f32.mxu0 %vm460_vm2, %v3109_v31  ;;  %v1611_v22 = vpop.permute.xlu1 %1610 }
 0x1e1   : > { %3832 = vmatprep.subr.bf16.mxu0 %v3831_v32 }
 0x1e3   : > { %3555 = vmatmul.mubr.msk.f32.gmra.mrb[2].mxu0 %vm460_vm2, %v3110_v33 }
 0x1e4   : > { %3834 = vmatpush3.bf16.msra.mxu0 %v3831_v32  ;;  %3557 = vmatprep.mubr.msk.f32.mxu0 %vm460_vm2, %v3111_v34 }
 0x1e7   : > { %3558 = vmatmul.mubr.msk.f32.gmra.mrb[4].mxu0 %vm460_vm2, %v3112_v35 }
 0x1e8   : > { %3560 = vmatprep.mubr.msk.f32.mxu0 %vm460_vm2, %v3113_v36 }
 0x1eb   : > { %3561 = vmatmul.mubr.msk.f32.gmra.mrb[6].mxu0 %vm460_vm2, %v3114_v37 }
 0x1ec   : > { %3571 = vmatprep.mubr.msk.f32.mxu0 %vm460_vm2, %v3123_v38  ;;  %v1667_v38 = vpop.permute.xlu1 %1666 }
 0x1ef   : > { %3572 = vmatmul.mubr.msk.f32.vlgmr.msra.gmra.mrb[0].mxu0 %vm460_vm2, %v3124_v39 }
 0x1f0   : > { %3574 = vmatprep.mubr.msk.f32.mxu0 %vm460_vm2, %v3125_v40 }
 0x1f3   : > { %3575 = vmatmul.mubr.msk.f32.gmra.mrb[2].mxu0 %vm460_vm2, %v3126_v41  ;;  %v1662_v41 = vpop.permute.xlu0 %1661 }
 0x1f4   : > { %3577 = vmatprep.mubr.msk.f32.mxu0 %vm460_vm2, %v3127_v42 }
 0x1f7   : > { %3578 = vmatmul.mubr.msk.f32.gmra.mrb[4].mxu0 %vm460_vm2, %v3128_v43 }
 0x1f8   : > { %3580 = vmatprep.mubr.msk.f32.mxu0 %vm460_vm2, %v3129_v44 }
 0x1fb   : > { %3581 = vmatmul.mubr.msk.f32.gmra.mrb[6].mxu0 %vm460_vm2, %v3130_v45 }
 0x2c2   : > { %v3573_v0 = vpop.f32.mrb[0].mxu0 }
 0x2c3   : > { %v1558_v1 = vadd.f32 %v3573_v0, %v1525_v46  ;;  %v1462_v2 = vpop.f32.mrb[1].mxu0  ;;  %v3139_v0 = vld [vmem:[%s5117_s7 + $0x40] sm:$0xff] }
 0x2c4   : > { %v1557_v3 = vadd.f32 %v1520_v47, %v1462_v2  ;;  %3599 = vmatprep.mubr.msk.f32.mxu1 %vm1790_vm3, %v3139_v0  ;;  %v1737_v0 = vld [vmem:[%s5117_s7 + $0x20] sm:$0xff] }
 0x2c5   : > { %v1614_v4 = vmul.f32 %v1581_v48, %v1558_v1 }
 0x2c6   : > { %v1613_v6 = vmul.f32 %v1576_v49, %v1557_v3  ;;  %v3576_v7 = vpop.f32.mrb[2].mxu0 }
 0x2c7   : > { %v1560_v9 = vadd.f32 %v3576_v7, %v1535_v50  ;;  %v1472_v10 = vpop.f32.mrb[3].mxu0  ;;  %v1670_v11 = vadd.f32 %v1637_v52, %v1614_v4  ;;  %v2901_v7 = vld [vmem:[%s5118_s8 + $0x10] sm:$0xff] }
 0x2c8   : > { %v1559_v12 = vadd.f32 %v1530_v51, %v1472_v10  ;;  %v1669_v13 = vadd.f32 %v1632_v53, %v1613_v6  ;;  %v2899_v10 = vld [vmem:[%s5118_s8] sm:$0xff] }
 0x2c9   : > { %v1616_v14 = vmul.f32 %v1591_v54, %v1560_v9  ;;  %v1678_v15 = vmax.f32 %v1670_v11, 0.0  ;;  %v2902_v9 = vld [vmem:[%s5118_s8 + $0x18] sm:$0xff]  ;;  %v2904_v11 = vld [vmem:[%s5118_s8 + $0x28] sm:$0xff] }
 0x2ca   : > { %v1615_v16 = vmul.f32 %v1586_v55, %v1559_v12  ;;  %v3579_v17 = vpop.f32.mrb[4].mxu0  ;;  %v1677_v18 = vmax.f32 %v1669_v13, 0.0  ;;  %v2905_v12 = vld [vmem:[%s5118_s8 + $0x30] sm:$0xff]  ;;  %v2900_v13 = vld [vmem:[%s5118_s8 + $0x8] sm:$0xff] }
 0x2cb   : > { %v1562_v19 = vadd.f32 %v3579_v17, %v1545_v56  ;;  %1703 = vrot.lane.b32.xlu1 %v1678_v15, %s4264_s12  ;;  %v1482_v20 = vpop.f32.mrb[5].mxu0  ;;  %v1672_v21 = vadd.f32 %v1647_v58, %v1616_v14  ;;  %v2906_v14 = vld [vmem:[%s5118_s8 + $0x38] sm:$0xff]  ;;  %v3227_v15 = vld [vmem:[%s5117_s7 + $0x180] sm:$0xff] }
 0x2cc   : > { %v1561_v23 = vadd.f32 %v1540_v57, %v1482_v20  ;;  %1701 = vrot.lane.b32.xlu0 %v1677_v18, %s4264_s12  ;;  %v1671_v24 = vadd.f32 %v1642_v59, %v1615_v16  ;;  %3767 = vmatprep.mubr.msk.f32.mxu0 %vm1790_vm3, %v3227_v15  ;;  %v1740_v15 = vld [vmem:[%s5117_s7 + $0x38] sm:$0xff] }
 0x2cd   : > { %v1618_v26 = vmul.f32 %v1601_v60, %v1562_v19  ;;  %v1680_v27 = vmax.f32 %v1672_v21, 0.0 }
 0x2ce   : > { %v1617_v28 = vmul.f32 %v1596_v61, %v1561_v23  ;;  %v3582_v29 = vpop.f32.mrb[6].mxu0  ;;  %v1679_v30 = vmax.f32 %v1671_v24, 0.0 }
 0x2cf   : > { %v1564_v31 = vadd.f32 %v3582_v29, %v1555_v62  ;;  %1707 = vrot.lane.b32.xlu1 %v1680_v27, %s4264_s12  ;;  %v1492_v32 = vpop.f32.mrb[7].mxu0  ;;  %v1674_v33 = vadd.f32 %v1657_v5, %v1618_v26 }
 0x2d0   : > { %v1563_v34 = vadd.f32 %v1550_v63, %v1492_v32  ;;  %1705 = vrot.lane.b32.xlu0 %v1679_v30, %s4264_s12  ;;  %v1673_v35 = vadd.f32 %v1652_v8, %v1617_v28  ;;  %v2903_v8 = vld [vmem:[%s5118_s8 + $0x20] sm:$0xff] }
 0x2d1   : > { %v1620_v36 = vmul.f32 %v1611_v22, %v1564_v31  ;;  %v1682_v37 = vmax.f32 %v1674_v33, 0.0 }
 0x2d2   : > { %v1619_v39 = vmul.f32 %v1606_v25, %v1563_v34  ;;  %v1681_v40 = vmax.f32 %v1673_v35, 0.0  ;;  %v3140_v35 = vld [vmem:[%s5117_s7 + $0x48] sm:$0xff] }
 0x2d3   : > { %1711 = vrot.lane.b32.xlu1 %v1682_v37, %s4264_s12  ;;  %v1676_v42 = vadd.f32 %v1667_v38, %v1620_v36  ;;  %v3141_v36 = vld [vmem:[%s5117_s7 + $0x50] sm:$0xff] }
 0x2d4   : > { %1709 = vrot.lane.b32.xlu0 %v1681_v40, %s4264_s12  ;;  %v1675_v43 = vadd.f32 %v1662_v41, %v1619_v39  ;;  %v3142_v39 = vld [vmem:[%s5117_s7 + $0x58] sm:$0xff]  ;;  %v3143_v40 = vld [vmem:[%s5117_s7 + $0x60] sm:$0xff] }
 0x2d5   : > { %v1684_v44 = vmax.f32 %v1676_v42, 0.0 }
 0x2d6   : > { %v1683_v45 = vmax.f32 %v1675_v43, 0.0  ;;  %v3144_v43 = vld [vmem:[%s5117_s7 + $0x68] sm:$0xff] }
 0x2d7   : > { %1715 = vrot.lane.b32.xlu1 %v1684_v44, %s4264_s12  ;;  %v3145_v44 = vld [vmem:[%s5117_s7 + $0x70] sm:$0xff] }
 0x2d8   : > { %1713 = vrot.lane.b32.xlu0 %v1683_v45, %s4264_s12 }
 0x33d   : > { %v1704_v46 = vpop.permute.xlu1 %1703 }
 0x33e   : > { %1726 = vst.msk [vmem:[#allocation3 + $0x8] sm:$0xff] %vm418_vm1, %v1704_v46  ;;  %v1702_v47 = vpop.permute.xlu0 %1701 }
 0x33f   : > { %1725 = vst.msk [vmem:[#allocation3] sm:$0xff] %vm418_vm1, %v1702_v47 }
 0x341   : > { %v1708_v48 = vpop.permute.xlu1 %1707 }
 0x342   : > { %1728 = vst.msk [vmem:[#allocation3 + $0x18] sm:$0xff] %vm418_vm1, %v1708_v48  ;;  %v1706_v49 = vpop.permute.xlu0 %1705 }
 0x343   : > { %1727 = vst.msk [vmem:[#allocation3 + $0x10] sm:$0xff] %vm418_vm1, %v1706_v49  ;;  %v3146_v49 = vld [vmem:[%s5117_s7 + $0x78] sm:$0xff] }
 0x345   : > { %v1712_v50 = vpop.permute.xlu1 %1711  ;;  %v1742_v51 = vld [vmem:[#allocation3 + $0x8] sm:$0xff] }
 0x346   : > { %1730 = vst.msk [vmem:[#allocation3 + $0x28] sm:$0xff] %vm418_vm1, %v1712_v50  ;;  %v1710_v52 = vpop.permute.xlu0 %1709  ;;  %v1741_v53 = vld [vmem:[#allocation3] sm:$0xff] }
 0x347   : > { %1729 = vst.msk [vmem:[#allocation3 + $0x20] sm:$0xff] %vm418_vm1, %v1710_v52  ;;  %v4130_v54 = vpack.i.bf16 %v1742_v51, %v1741_v53  ;;  %v4707_v55 = vpack.c.bf16 %v1742_v51, %v1741_v53  ;;  %v1733_v50 = vld [vmem:[%s5117_s7] sm:$0xff] }
 0x349   : > { %v1716_v56 = vpop.permute.xlu1 %1715  ;;  %4131 = vrot.lane.b32.xlu0 %v4130_v54, %s4265_s13  ;;  %v1744_v57 = vld [vmem:[#allocation3 + $0x18] sm:$0xff] }
 0x34a   : > { %1732 = vst.msk [vmem:[#allocation3 + $0x38] sm:$0xff] %vm418_vm1, %v1716_v56  ;;  %v1714_v58 = vpop.permute.xlu0 %1713  ;;  %v1743_v59 = vld [vmem:[#allocation3 + $0x10] sm:$0xff]  ;;  %v1734_v56 = vld [vmem:[%s5117_s7 + $0x8] sm:$0xff] }
 0x34b   : > { %1731 = vst.msk [vmem:[#allocation3 + $0x30] sm:$0xff] %vm418_vm1, %v1714_v58  ;;  %v4135_v60 = vpack.i.bf16 %v1744_v57, %v1743_v59  ;;  %v4712_v61 = vpack.c.bf16 %v1744_v57, %v1743_v59  ;;  %v1735_v57 = vld [vmem:[%s5117_s7 + $0x10] sm:$0xff] }
 0x34d   : > { %4136 = vrot.lane.b32.xlu1 %v4135_v60, %s4265_s13  ;;  %v1746_v62 = vld [vmem:[#allocation3 + $0x28] sm:$0xff] }
 0x34e   : > { %v1745_v63 = vld [vmem:[#allocation3 + $0x20] sm:$0xff] }
 0x34f   : > { %v4140_v1 = vpack.i.bf16 %v1746_v62, %v1745_v63  ;;  %v4719_v2 = vpack.c.bf16 %v1746_v62, %v1745_v63  ;;  %v1736_v63 = vld [vmem:[%s5117_s7 + $0x18] sm:$0xff] }
 0x351   : > { %4141 = vrot.lane.b32.xlu0 %v4140_v1, %s4265_s13  ;;  %v1748_v3 = vld [vmem:[#allocation3 + $0x38] sm:$0xff] }
 0x352   : > { %v1747_v4 = vld [vmem:[#allocation3 + $0x30] sm:$0xff] }
 0x353   : > { %v4145_v5 = vpack.i.bf16 %v1748_v3, %v1747_v4  ;;  %v4722_v6 = vpack.c.bf16 %v1748_v3, %v1747_v4 }
 0x355   : > { %4151 = vrot.lane.b32.xlu0 %v4130_v54, %s4266_s16  ;;  %4146 = vrot.lane.b32.xlu1 %v4145_v5, %s4265_s13  ;;  %s3246_s13 = sshll.u32 %s5121_s10, 6 }
 0x359   : > { %4161 = vrot.lane.b32.xlu0 %v4140_v1, %s4266_s16  ;;  %4156 = vrot.lane.b32.xlu1 %v4135_v60, %s4266_s16 }
 0x35d   : > { %4171 = vrot.lane.b32.xlu0 %v4130_v54, %s4267_s17  ;;  %4166 = vrot.lane.b32.xlu1 %v4145_v5, %s4266_s16 }
 0x361   : > { %4181 = vrot.lane.b32.xlu0 %v4140_v1, %s4267_s17  ;;  %4176 = vrot.lane.b32.xlu1 %v4135_v60, %s4267_s17 }
 0x365   : > { %4191 = vrot.lane.b32.xlu0 %v4130_v54, %s4268_s18  ;;  %4186 = vrot.lane.b32.xlu1 %v4145_v5, %s4267_s17 }
 0x369   : > { %4201 = vrot.lane.b32.xlu0 %v4140_v1, %s4268_s18  ;;  %4196 = vrot.lane.b32.xlu1 %v4135_v60, %s4268_s18 }
 0x36d   : > { %4211 = vrot.lane.b32.xlu0 %v4130_v54, %s4269_s19  ;;  %4206 = vrot.lane.b32.xlu1 %v4145_v5, %s4268_s18  ;;  %s5077_s18 = scalar_lea.vmem %s5119_s9, %s3246_s13 }
 0x371   : > { %4221 = vrot.lane.b32.xlu0 %v4140_v1, %s4269_s19  ;;  %4216 = vrot.lane.b32.xlu1 %v4135_v60, %s4269_s19 }
 0x375   : > { %4231 = vrot.lane.b32.xlu0 %v4130_v54, %s4270_s20  ;;  %4226 = vrot.lane.b32.xlu1 %v4145_v5, %s4269_s19 }
 0x379   : > { %4241 = vrot.lane.b32.xlu0 %v4140_v1, %s4270_s20  ;;  %4236 = vrot.lane.b32.xlu1 %v4135_v60, %s4270_s20 }
 0x37d   : > { %2919 = vperm.xlu0 %4068, %v2901_v7   ;;  %4246 = vrot.lane.b32.xlu1 %v4145_v5, %s4270_s20  ;;  %v1739_v7 = vld [vmem:[%s5117_s7 + $0x30] sm:$0xff] }
 0x381   : > { %2929 = vperm.xlu0 %4068, %v2903_v8   ;;  %2924 = vperm.xlu1 %4069, %v2902_v9  }
 0x385   : > { %2909 = vperm.xlu0 %4068, %v2899_v10   ;;  %2934 = vperm.xlu1 %4069, %v2904_v11  }
 0x389   : > { %2939 = vperm.xlu0 %4068, %v2905_v12   ;;  %2914 = vperm.xlu1 %4069, %v2900_v13  }
 0x38d   : > { %2944 = vperm.xlu1 %4069, %v2906_v14  }
 0x3bb   : > { %v4132_v16 = vpop.permute.xlu0 %4131 }
 0x3bc   : > { %v4134_v17 = vunpack.i.h.bf16 %v4132_v16  ;;  %v4133_v18 = vunpack.i.l.bf16 %v4132_v16 }
 0x3be   : > { %v3835_v19 = vpack.c.bf16 %v4134_v17, %v4133_v18 }
 0x3bf   : > { %v4137_v20 = vpop.permute.xlu1 %4136 }
 0x3c0   : > { %v4139_v21 = vunpack.i.h.bf16 %v4137_v20  ;;  %v4138_v22 = vunpack.i.l.bf16 %v4137_v20  ;;  %3836 = vmatprep.subr.bf16.mxu1 %v3835_v19 }
 0x3c1   : > { %3838 = vmatpush3.bf16.msra.mxu1 %v3835_v19 }
 0x3c2   : > { %v3839_v23 = vpack.c.bf16 %v4139_v21, %v4138_v22  ;;  %v3163_v22 = vld [vmem:[%s5117_s7 + $0x80] sm:$0xff] }
 0x3c3   : > { %v4142_v24 = vpop.permute.xlu0 %4141 }
 0x3c4   : > { %v4144_v25 = vunpack.i.h.bf16 %v4142_v24  ;;  %v4143_v26 = vunpack.i.l.bf16 %v4142_v24  ;;  %3840 = vmatprep.subr.bf16.mxu1 %v3839_v23 }
 0x3c5   : > { %3842 = vmatpush3.bf16.msra.mxu1 %v3839_v23 }
 0x3c6   : > { %v3843_v27 = vpack.c.bf16 %v4144_v25, %v4143_v26 }
 0x3c7   : > { %v4147_v28 = vpop.permute.xlu1 %4146  ;;  %v4152_v29 = vpop.permute.xlu0 %4151 }
 0x3c8   : > { %v4149_v30 = vunpack.i.h.bf16 %v4147_v28  ;;  %v4148_v31 = vunpack.i.l.bf16 %v4147_v28  ;;  %3844 = vmatprep.subr.bf16.mxu1 %v3843_v27  ;;  %v4154_v47 = vunpack.i.h.bf16 %v4152_v29  ;;  %v4153_v48 = vunpack.i.l.bf16 %v4152_v29 }
 0x3c9   : > { %3846 = vmatpush3.bf16.msra.mxu1 %v3843_v27  ;;  %v3164_v27 = vld [vmem:[%s5117_s7 + $0x88] sm:$0xff] }
 0x3ca   : > { %v3847_v32 = vpack.c.bf16 %v4149_v30, %v4148_v31  ;;  %v3867_v53 = vpack.c.bf16 %v4154_v47, %v4153_v48 }
 0x3cb   : > { %v4157_v33 = vpop.permute.xlu1 %4156  ;;  %v4162_v34 = vpop.permute.xlu0 %4161 }
 0x3cc   : > { %3848 = vmatprep.subr.bf16.mxu1 %v3847_v32  ;;  %v4159_v54 = vunpack.i.h.bf16 %v4157_v33  ;;  %v4163_v62 = vunpack.i.l.bf16 %v4162_v34 }
 0x3cd   : > { %3850 = vmatpush3.bf16.msra.mxu1 %v3847_v32 }
 0x3ce   : > { %3852 = vmatprep.subr.bf16.mxu1 %v4707_v55 }
 0x3cf   : > { %v4780_v37 = vpop.permute.xlu1 %4166  ;;  %v4782_v38 = vpop.permute.xlu0 %4171 }
 0x3d0   : > { %3600 = vmatmul.mubr.msk.f32.vlgmr.msra.gmra.mrb[0].mxu1 %vm1790_vm3, %v3140_v35  ;;  %v4169_v4 = vunpack.i.h.bf16 %v4780_v37  ;;  %v4168_v5 = vunpack.i.l.bf16 %v4780_v37  ;;  %v4174_v8 = vunpack.i.h.bf16 %v4782_v38  ;;  %v4173_v9 = vunpack.i.l.bf16 %v4782_v38  ;;  %v3166_v37 = vld [vmem:[%s5117_s7 + $0x98] sm:$0xff] }
 0x3d1   : > { %3854 = vmatpush3.bf16.msra.mxu1 %v4707_v55  ;;  %3602 = vmatprep.mubr.msk.f32.mxu1 %vm1790_vm3, %v3141_v36  ;;  %v4158_v55 = vunpack.i.l.bf16 %v4157_v33  ;;  %v3165_v36 = vld [vmem:[%s5117_s7 + $0x90] sm:$0xff] }
 0x3d2   : > { %3856 = vmatprep.subr.bf16.mxu1 %v4712_v61  ;;  %v3879_v12 = vpack.c.bf16 %v4169_v4, %v4168_v5  ;;  %v3883_v17 = vpack.c.bf16 %v4174_v8, %v4173_v9  ;;  %v3185_v5 = vld [vmem:[%s5117_s7 + $0xf0] sm:$0xff]  ;;  %v3195_v9 = vld [vmem:[%s5117_s7 + $0x100] sm:$0xff] }
 0x3d3   : > { %v4794_v41 = vpop.permute.xlu1 %4176  ;;  %v4796_v42 = vpop.permute.xlu0 %4181  ;;  %v3871_v60 = vpack.c.bf16 %v4159_v54, %v4158_v55 }
 0x3d4   : > { %3603 = vmatmul.mubr.msk.f32.gmra.mrb[2].mxu1 %vm1790_vm3, %v3142_v39  ;;  %v4179_v18 = vunpack.i.h.bf16 %v4794_v41  ;;  %v4178_v19 = vunpack.i.l.bf16 %v4794_v41  ;;  %v4184_v29 = vunpack.i.h.bf16 %v4796_v42  ;;  %v4183_v30 = vunpack.i.l.bf16 %v4796_v42  ;;  %v3167_v42 = vld [vmem:[%s5117_s7 + $0xa0] sm:$0xff] }
 0x3d5   : > { %3858 = vmatpush3.bf16.msra.mxu1 %v4712_v61  ;;  %3605 = vmatprep.mubr.msk.f32.mxu1 %vm1790_vm3, %v3143_v40  ;;  %v4164_v61 = vunpack.i.h.bf16 %v4162_v34 }
 0x3d6   : > { %3860 = vmatprep.subr.bf16.mxu1 %v4719_v2  ;;  %v3887_v32 = vpack.c.bf16 %v4179_v18, %v4178_v19  ;;  %v3891_v38 = vpack.c.bf16 %v4184_v29, %v4183_v30  ;;  %v3199_v19 = vld [vmem:[%s5117_s7 + $0x120] sm:$0xff]  ;;  %v3214_v29 = vld [vmem:[%s5117_s7 + $0x158] sm:$0xff] }
 0x3d7   : > { %v4808_v45 = vpop.permute.xlu1 %4186  ;;  %v4810_v46 = vpop.permute.xlu0 %4191  ;;  %v3875_v3 = vpack.c.bf16 %v4164_v61, %v4163_v62  ;;  %v3182_v62 = vld [vmem:[%s5117_s7 + $0xd8] sm:$0xff]  ;;  %v3215_v30 = vld [vmem:[%s5117_s7 + $0x160] sm:$0xff] }
 0x3d8   : > { %3606 = vmatmul.mubr.msk.f32.gmra.mrb[4].mxu1 %vm1790_vm3, %v3144_v43  ;;  %v4189_v39 = vunpack.i.h.bf16 %v4808_v45  ;;  %v4188_v40 = vunpack.i.l.bf16 %v4808_v45  ;;  %v3168_v43 = vld [vmem:[%s5117_s7 + $0xa8] sm:$0xff]  ;;  %v4194_v47 = vunpack.i.h.bf16 %v4810_v46  ;;  %v4193_v48 = vunpack.i.l.bf16 %v4810_v46  ;;  %v3179_v46 = vld [vmem:[%s5117_s7 + $0xc0] sm:$0xff] }
 0x3d9   : > { %3862 = vmatpush3.bf16.msra.mxu1 %v4719_v2  ;;  %3608 = vmatprep.mubr.msk.f32.mxu1 %vm1790_vm3, %v3145_v44  ;;  %v3169_v44 = vld [vmem:[%s5117_s7 + $0xb0] sm:$0xff] }
 0x3da   : > { %3864 = vmatprep.subr.bf16.mxu1 %v4722_v6  ;;  %v3895_v45 = vpack.c.bf16 %v4189_v39, %v4188_v40 }
 0x3db   : > { %v4822_v51 = vpop.permute.xlu1 %4196  ;;  %v4824_v52 = vpop.permute.xlu0 %4201 }
 0x3dc   : > { %3609 = vmatmul.mubr.msk.f32.gmra.mrb[6].mxu1 %vm1790_vm3, %v3146_v49  ;;  %v3170_v49 = vld [vmem:[%s5117_s7 + $0xb8] sm:$0xff]  ;;  %v4199_v54 = vunpack.i.h.bf16 %v4822_v51  ;;  %v4198_v55 = vunpack.i.l.bf16 %v4822_v51  ;;  %v4204_v61 = vunpack.i.h.bf16 %v4824_v52  ;;  %v4203_v51 = vunpack.i.l.bf16 %v4824_v52  ;;  %v3184_v52 = vld [vmem:[%s5117_s7 + $0xe8] sm:$0xff] }
 0x3dd   : > { %3866 = vmatpush3.bf16.msra.mxu1 %v4722_v6  ;;  %3627 = vmatprep.mubr.msk.f32.mxu1 %vm1790_vm3, %v1733_v50  ;;  %v1738_v6 = vld [vmem:[%s5117_s7 + $0x28] sm:$0xff] }
 0x3de   : > { %3868 = vmatprep.subr.bf16.mxu1 %v3867_v53  ;;  %v3228_v50 = vld [vmem:[%s5117_s7 + $0x188] sm:$0xff] }
 0x3df   : > { %v4835_v58 = vpop.permute.xlu1 %4206  ;;  %v4837_v59 = vpop.permute.xlu0 %4211 }
 0x3e0   : > { %3628 = vmatmul.mubr.msk.f32.vlgmr.msra.gmra.mrb[0].mxu1 %vm1790_vm3, %v1734_v56  ;;  %v3180_v56 = vld [vmem:[%s5117_s7 + $0xc8] sm:$0xff]  ;;  %v4208_v4 = vunpack.i.l.bf16 %v4835_v58  ;;  %v4213_v8 = vunpack.i.l.bf16 %v4837_v59 }
 0x3e1   : > { %3870 = vmatpush3.bf16.msra.mxu1 %v3867_v53  ;;  %3630 = vmatprep.mubr.msk.f32.mxu1 %vm1790_vm3, %v1735_v57  ;;  %v3899_v53 = vpack.c.bf16 %v4194_v47, %v4193_v48  ;;  %v3181_v57 = vld [vmem:[%s5117_s7 + $0xd0] sm:$0xff] }
 0x3e2   : > { %3872 = vmatprep.subr.bf16.mxu1 %v3871_v60 }
 0x3e3   : > { %v4847_v1 = vpop.permute.xlu1 %4216  ;;  %v4849_v2 = vpop.permute.xlu0 %4221 }
 0x3e4   : > { %3631 = vmatmul.mubr.msk.f32.gmra.mrb[2].mxu1 %vm1790_vm3, %v1736_v63  ;;  %v3183_v63 = vld [vmem:[%s5117_s7 + $0xe0] sm:$0xff]  ;;  %v4223_v18 = vunpack.i.l.bf16 %v4849_v2 }
 0x3e5   : > { %3874 = vmatpush3.bf16.msra.mxu1 %v3871_v60  ;;  %3633 = vmatprep.mubr.msk.f32.mxu1 %vm1790_vm3, %v1737_v0  ;;  %v3903_v60 = vpack.c.bf16 %v4199_v54, %v4198_v55  ;;  %v3907_v0 = vpack.c.bf16 %v4204_v61, %v4203_v51  ;;  %v4251_v51 = vld [vmem:[%s4363_s11] sm:$0xff] }
 0x3e6   : > { %3876 = vmatprep.subr.bf16.mxu1 %v3875_v3 }
 0x3e7   : > { %v4863_v10 = vpop.permute.xlu1 %4226  ;;  %v4232_v11 = vpop.permute.xlu0 %4231 }
 0x3e8   : > { %v4234_v13 = vunpack.i.h.bf16 %v4232_v11  ;;  %v4233_v14 = vunpack.i.l.bf16 %v4232_v11  ;;  %3634 = vmatmul.mubr.msk.f32.gmra.mrb[4].mxu1 %vm1790_vm3, %v1738_v6 }
 0x3e9   : > { %3878 = vmatpush3.bf16.msra.mxu1 %v3875_v3  ;;  %3636 = vmatprep.mubr.msk.f32.mxu1 %vm1790_vm3, %v1739_v7  ;;  %v4209_v3 = vunpack.i.h.bf16 %v4835_v58  ;;  %v4214_v7 = vunpack.i.h.bf16 %v4837_v59  ;;  %v3186_v58 = vld [vmem:[%s5117_s7 + $0xf8] sm:$0xff]  ;;  %v3196_v59 = vld [vmem:[%s5117_s7 + $0x108] sm:$0xff] }
 0x3ea   : > { %v4870_v16 = vpack.c.bf16 %v4234_v13, %v4233_v14  ;;  %3880 = vmatprep.subr.bf16.mxu1 %v3879_v12  ;;  %v4218_v13 = vunpack.i.l.bf16 %v4847_v1  ;;  %v3197_v14 = vld [vmem:[%s5117_s7 + $0x110] sm:$0xff] }
 0x3eb   : > { %v4237_v20 = vpop.permute.xlu1 %4236  ;;  %v4242_v21 = vpop.permute.xlu0 %4241  ;;  %v3911_v6 = vpack.c.bf16 %v4209_v3, %v4208_v4  ;;  %v3915_v11 = vpack.c.bf16 %v4214_v7, %v4213_v8  ;;  %v4253_v7 = vld [vmem:[%s4363_s11 + $0x10] sm:$0xff] }
 0x3ec   : > { %v4239_v23 = vunpack.i.h.bf16 %v4237_v20  ;;  %v4238_v24 = vunpack.i.l.bf16 %v4237_v20  ;;  %v4244_v25 = vunpack.i.h.bf16 %v4242_v21  ;;  %v4243_v26 = vunpack.i.l.bf16 %v4242_v21  ;;  %3637 = vmatmul.mubr.msk.f32.gmra.mrb[6].mxu1 %vm1790_vm3, %v1740_v15  ;;  %3932 = vmatprep.subr.bf16.mxu0 %v4870_v16 }
 0x3ed   : > { %3882 = vmatpush3.bf16.msra.mxu1 %v3879_v12  ;;  %3934 = vmatpush3.bf16.msra.mxu0 %v4870_v16  ;;  %v4219_v12 = vunpack.i.h.bf16 %v4847_v1  ;;  %v3198_v1 = vld [vmem:[%s5117_s7 + $0x118] sm:$0xff]  ;;  %v4229_v21 = vunpack.i.h.bf16 %v4863_v10 }
 0x3ee   : > { %v4883_v28 = vpack.c.bf16 %v4239_v23, %v4238_v24  ;;  %3884 = vmatprep.subr.bf16.mxu1 %v3883_v17  ;;  %3655 = vmatprep.mubr.msk.f32.mxu1 %vm1790_vm3, %v3163_v22  ;;  %v4888_v33 = vpack.c.bf16 %v4244_v25, %v4243_v26  ;;  %v4228_v22 = vunpack.i.l.bf16 %v4863_v10  ;;  %v3201_v23 = vld [vmem:[%s5117_s7 + $0x130] sm:$0xff]  ;;  %v3202_v10 = vld [vmem:[%s5117_s7 + $0x138] sm:$0xff]  ;;  %v3211_v25 = vld [vmem:[%s5117_s7 + $0x140] sm:$0xff] }
 0x3ef   : > { %v4247_v31 = vpop.permute.xlu1 %4246  ;;  %v3919_v15 = vpack.c.bf16 %v4219_v12, %v4218_v13  ;;  %v3212_v26 = vld [vmem:[%s5117_s7 + $0x148] sm:$0xff] }
 0x3f0   : > { %v4249_v34 = vunpack.i.h.bf16 %v4247_v31  ;;  %v4248_v35 = vunpack.i.l.bf16 %v4247_v31  ;;  %3656 = vmatmul.mubr.msk.f32.vlgmr.msra.gmra.mrb[0].mxu1 %vm1790_vm3, %v3164_v27  ;;  %3936 = vmatprep.subr.bf16.mxu0 %v4883_v28  ;;  %v3927_v24 = vpack.c.bf16 %v4229_v21, %v4228_v22  ;;  %v3213_v27 = vld [vmem:[%s5117_s7 + $0x150] sm:$0xff] }
 0x3f1   : > { %3886 = vmatpush3.bf16.msra.mxu1 %v3883_v17  ;;  %3938 = vmatpush3.bf16.msra.mxu0 %v4883_v28  ;;  %v4224_v17 = vunpack.i.h.bf16 %v4849_v2  ;;  %v3200_v2 = vld [vmem:[%s5117_s7 + $0x128] sm:$0xff]  ;;  %v3217_v31 = vld [vmem:[%s5117_s7 + $0x170] sm:$0xff] }
 0x3f2   : > { %3888 = vmatprep.subr.bf16.mxu1 %v3887_v32  ;;  %3940 = vmatprep.subr.bf16.mxu0 %v4888_v33  ;;  %v4903_v41 = vpack.c.bf16 %v4249_v34, %v4248_v35  ;;  %v3231_v34 = vld [vmem:[%s5117_s7 + $0x1a0] sm:$0xff]  ;;  %v3232_v35 = vld [vmem:[%s5117_s7 + $0x1a8] sm:$0xff] }
 0x3f3   : > { %3658 = vmatprep.mubr.msk.f32.mxu1 %vm1790_vm3, %v3165_v36  ;;  %v3923_v20 = vpack.c.bf16 %v4224_v17, %v4223_v18  ;;  %v3233_v36 = vld [vmem:[%s5117_s7 + $0x1b0] sm:$0xff] }
 0x3f4   : > { %3659 = vmatmul.mubr.msk.f32.gmra.mrb[2].mxu1 %vm1790_vm3, %v3166_v37  ;;  %v3234_v37 = vld [vmem:[%s5117_s7 + $0x1b8] sm:$0xff] }
 0x3f5   : > { %3890 = vmatpush3.bf16.msra.mxu1 %v3887_v32  ;;  %3942 = vmatpush3.bf16.msra.mxu0 %v4888_v33  ;;  %v3229_v32 = vld [vmem:[%s5117_s7 + $0x190] sm:$0xff] }
 0x3f6   : > { %3892 = vmatprep.subr.bf16.mxu1 %v3891_v38  ;;  %3944 = vmatprep.subr.bf16.mxu0 %v4903_v41 }
 0x3f7   : > { %3661 = vmatprep.mubr.msk.f32.mxu1 %vm1790_vm3, %v3167_v42 }
 0x3f8   : > { %3662 = vmatmul.mubr.msk.f32.gmra.mrb[4].mxu1 %vm1790_vm3, %v3168_v43 }
 0x3f9   : > { %3894 = vmatpush3.bf16.msra.mxu1 %v3891_v38  ;;  %3946 = vmatpush3.bf16.msra.mxu0 %v4903_v41 }
 0x3fa   : > { %3896 = vmatprep.subr.bf16.mxu1 %v3895_v45  ;;  %3664 = vmatprep.mubr.msk.f32.mxu1 %vm1790_vm3, %v3169_v44 }
 0x3fc   : > { %3665 = vmatmul.mubr.msk.f32.gmra.mrb[6].mxu1 %vm1790_vm3, %v3170_v49  ;;  %3768 = vmatmul.mubr.msk.f32.vlgmr.msra.gmra.mrb[8].mxu0 %vm1790_vm3, %v3228_v50 }
 0x3fd   : > { %3898 = vmatpush3.bf16.msra.mxu1 %v3895_v45  ;;  %3683 = vmatprep.mubr.msk.f32.mxu1 %vm1790_vm3, %v3179_v46 }
 0x3fe   : > { %3900 = vmatprep.subr.bf16.mxu1 %v3899_v53 }
 0x400   : > { %3684 = vmatmul.mubr.msk.f32.vlgmr.msra.gmra.mrb[0].mxu1 %vm1790_vm3, %v3180_v56  ;;  %v2925_v40 = vpop.permute.xlu1 %2924 }
 0x401   : > { %3902 = vmatpush3.bf16.msra.mxu1 %v3899_v53  ;;  %3686 = vmatprep.mubr.msk.f32.mxu1 %vm1790_vm3, %v3181_v57 }
 0x402   : > { %3904 = vmatprep.subr.bf16.mxu1 %v3903_v60 }
 0x404   : > { %3687 = vmatmul.mubr.msk.f32.gmra.mrb[2].mxu1 %vm1790_vm3, %v3182_v62  ;;  %v2935_v42 = vpop.permute.xlu1 %2934 }
 0x405   : > { %3906 = vmatpush3.bf16.msra.mxu1 %v3903_v60  ;;  %3689 = vmatprep.mubr.msk.f32.mxu1 %vm1790_vm3, %v3183_v63  ;;  %v4250_v60 = vld [vmem:[%s4363_s11 + $0x8] sm:$0xff] }
 0x406   : > { %3908 = vmatprep.subr.bf16.mxu1 %v3907_v0 }
 0x408   : > { %3690 = vmatmul.mubr.msk.f32.gmra.mrb[4].mxu1 %vm1790_vm3, %v3184_v52  ;;  %v2915_v48 = vpop.permute.xlu1 %2914  ;;  %v4252_v52 = vld [vmem:[%s4363_s11 + $0x18] sm:$0xff] }
 0x409   : > { %3910 = vmatpush3.bf16.msra.mxu1 %v3907_v0  ;;  %3692 = vmatprep.mubr.msk.f32.mxu1 %vm1790_vm3, %v3185_v5 }
 0x40a   : > { %3912 = vmatprep.subr.bf16.mxu1 %v3911_v6 }
 0x40c   : > { %3693 = vmatmul.mubr.msk.f32.gmra.mrb[6].mxu1 %vm1790_vm3, %v3186_v58 }
 0x40d   : > { %3914 = vmatpush3.bf16.msra.mxu1 %v3911_v6  ;;  %3711 = vmatprep.mubr.msk.f32.mxu1 %vm1790_vm3, %v3195_v9  ;;  %v2945_v6 = vpop.permute.xlu1 %2944 }
 0x40e   : > { %3916 = vmatprep.subr.bf16.mxu1 %v3915_v11 }
 0x410   : > { %3712 = vmatmul.mubr.msk.f32.vlgmr.msra.gmra.mrb[0].mxu1 %vm1790_vm3, %v3196_v59 }
 0x411   : > { %3918 = vmatpush3.bf16.msra.mxu1 %v3915_v11  ;;  %3714 = vmatprep.mubr.msk.f32.mxu1 %vm1790_vm3, %v3197_v14 }
 0x412   : > { %3920 = vmatprep.subr.bf16.mxu1 %v3919_v15 }
 0x414   : > { %3715 = vmatmul.mubr.msk.f32.gmra.mrb[2].mxu1 %vm1790_vm3, %v3198_v1 }
 0x415   : > { %3922 = vmatpush3.bf16.msra.mxu1 %v3919_v15  ;;  %3717 = vmatprep.mubr.msk.f32.mxu1 %vm1790_vm3, %v3199_v19 }
 0x416   : > { %3924 = vmatprep.subr.bf16.mxu1 %v3923_v20 }
 0x418   : > { %3718 = vmatmul.mubr.msk.f32.gmra.mrb[4].mxu1 %vm1790_vm3, %v3200_v2 }
 0x419   : > { %3926 = vmatpush3.bf16.msra.mxu1 %v3923_v20  ;;  %3720 = vmatprep.mubr.msk.f32.mxu1 %vm1790_vm3, %v3201_v23 }
 0x41a   : > { %3928 = vmatprep.subr.bf16.mxu1 %v3927_v24 }
 0x41c   : > { %3721 = vmatmul.mubr.msk.f32.gmra.mrb[6].mxu1 %vm1790_vm3, %v3202_v10 }
 0x41d   : > { %3930 = vmatpush3.bf16.msra.mxu1 %v3927_v24  ;;  %3739 = vmatprep.mubr.msk.f32.mxu1 %vm1790_vm3, %v3211_v25 }
 0x41e   : > { %3947 = vmatprep.subr.bf16.mxu1 %v4870_v16 }
 0x420   : > { %3740 = vmatmul.mubr.msk.f32.vlgmr.msra.gmra.mrb[0].mxu1 %vm1790_vm3, %v3212_v26 }
 0x421   : > { %3951 = vmatpush3.bf16.msra.mxu1 %v4870_v16  ;;  %3742 = vmatprep.mubr.msk.f32.mxu1 %vm1790_vm3, %v3213_v27  ;;  %v3216_v16 = vld [vmem:[%s5117_s7 + $0x168] sm:$0xff] }
 0x422   : > { %3948 = vmatprep.subr.bf16.mxu1 %v4883_v28 }
 0x424   : > { %3743 = vmatmul.mubr.msk.f32.gmra.mrb[2].mxu1 %vm1790_vm3, %v3214_v29 }
 0x425   : > { %3952 = vmatpush3.bf16.msra.mxu1 %v4883_v28  ;;  %3745 = vmatprep.mubr.msk.f32.mxu1 %vm1790_vm3, %v3215_v30  ;;  %v3218_v28 = vld [vmem:[%s5117_s7 + $0x178] sm:$0xff] }
 0x426   : > { %3949 = vmatprep.subr.bf16.mxu1 %v4888_v33 }
 0x428   : > { %3746 = vmatmul.mubr.msk.f32.gmra.mrb[4].mxu1 %vm1790_vm3, %v3216_v16 }
 0x429   : > { %3953 = vmatpush3.bf16.msra.mxu1 %v4888_v33  ;;  %3748 = vmatprep.mubr.msk.f32.mxu1 %vm1790_vm3, %v3217_v31  ;;  %v3230_v33 = vld [vmem:[%s5117_s7 + $0x198] sm:$0xff] }
 0x42a   : > { %3950 = vmatprep.subr.bf16.mxu1 %v4903_v41 }
 0x42c   : > { %3749 = vmatmul.mubr.msk.f32.gmra.mrb[6].mxu1 %vm1790_vm3, %v3218_v28 }
 0x42d   : > { %3954 = vmatpush3.bf16.msra.mxu1 %v4903_v41  ;;  %3770 = vmatprep.mubr.msk.f32.mxu1 %vm1790_vm3, %v3229_v32  ;;  %v2920_v41 = vpop.permute.xlu0 %2919 }
 0x430   : > { %3771 = vmatmul.mubr.msk.f32.vlgmr.msra.gmra.mrb[2].mxu1 %vm1790_vm3, %v3230_v33 }
 0x431   : > { %3773 = vmatprep.mubr.msk.f32.mxu1 %vm1790_vm3, %v3231_v34  ;;  %v2930_v43 = vpop.permute.xlu0 %2929 }
 0x434   : > { %3774 = vmatmul.mubr.msk.f32.gmra.mrb[4].mxu1 %vm1790_vm3, %v3232_v35 }
 0x435   : > { %3776 = vmatprep.mubr.msk.f32.mxu1 %vm1790_vm3, %v3233_v36  ;;  %v2910_v50 = vpop.permute.xlu0 %2909 }
 0x438   : > { %3777 = vmatmul.mubr.msk.f32.gmra.mrb[6].mxu1 %vm1790_vm3, %v3234_v37 }
 0x439   : > { %v2940_v9 = vpop.permute.xlu0 %2939 }
 0x4cf   : > { %v3769_v38 = vpop.f32.mrb[8].mxu0 }
 0x4d0   : > { %v2852_v39 = vpop.f32.mrb[9].mxu0 }
 0x4f3   : > { %v3741_v44 = vpop.f32.mrb[0].mxu1 }
 0x4f4   : > { %v3955_v45 = vadd.f32 %v3769_v38, %v3741_v44  ;;  %v2682_v47 = vpop.f32.mrb[1].mxu1 }
 0x4f5   : > { %v3956_v49 = vadd.f32 %v2852_v39, %v2682_v47 }
 0x4f6   : > { %v2948_v46 = vadd.f32 %v3955_v45, %v2915_v48 }
 0x4f7   : > { %v2947_v53 = vadd.f32 %v3956_v49, %v2910_v50 }
 0x4f8   : > { %2956 = vst.msk [vmem:[%s5077_s18 + $0x8] sm:$0xff] %vm1790_vm3, %v2948_v46 }
 0x4f9   : > { %2955 = vst.msk [vmem:[%s5077_s18] sm:$0xff] %vm1790_vm3, %v2947_v53 }
 0x503   : > { %v3772_v54 = vpop.f32.mrb[2].mxu1 }
 0x504   : > { %v2950_v55 = vadd.f32 %v3772_v54, %v2925_v40  ;;  %v2862_v56 = vpop.f32.mrb[3].mxu1 }
 0x505   : > { %v2949_v57 = vadd.f32 %v2920_v41, %v2862_v56 }
 0x506   : > { %2958 = vst.msk [vmem:[%s5077_s18 + $0x18] sm:$0xff] %vm1790_vm3, %v2950_v55  ;;  %v2964_v61 = vadd.f32 %v4250_v60, %v2950_v55 }
 0x507   : > { %2957 = vst.msk [vmem:[%s5077_s18 + $0x10] sm:$0xff] %vm1790_vm3, %v2949_v57  ;;  %v2963_v62 = vadd.f32 %v4251_v51, %v2949_v57  ;;  %v3775_v63 = vpop.f32.mrb[4].mxu1 }
 0x508   : > { %2968 = vst.msk [vmem:[%s5077_s18 + $0x18] sm:$0xff] %vm1790_vm3, %v2964_v61  ;;  %v2952_v0 = vadd.f32 %v3775_v63, %v2935_v42  ;;  %v2872_v3 = vpop.f32.mrb[5].mxu1 }
 0x509   : > { %2967 = vst.msk [vmem:[%s5077_s18 + $0x10] sm:$0xff] %vm1790_vm3, %v2963_v62  ;;  %v2951_v4 = vadd.f32 %v2930_v43, %v2872_v3 }
 0x50a   : > { %2960 = vst.msk [vmem:[%s5077_s18 + $0x28] sm:$0xff] %vm1790_vm3, %v2952_v0  ;;  %v2966_v5 = vadd.f32 %v4252_v52, %v2952_v0 }
 0x50b   : > { %2959 = vst.msk [vmem:[%s5077_s18 + $0x20] sm:$0xff] %vm1790_vm3, %v2951_v4  ;;  %v2965_v8 = vadd.f32 %v4253_v7, %v2951_v4  ;;  %v3778_v58 = vpop.f32.mrb[6].mxu1 }
 0x50c   : > { %2970 = vst.msk [vmem:[%s5077_s18 + $0x28] sm:$0xff] %vm1790_vm3, %v2966_v5  ;;  %v2954_v11 = vadd.f32 %v3778_v58, %v2945_v6  ;;  %v2882_v12 = vpop.f32.mrb[7].mxu1 }
 0x50d   : > { %2969 = vst.msk [vmem:[%s5077_s18 + $0x20] sm:$0xff] %vm1790_vm3, %v2965_v8  ;;  %v2953_v13 = vadd.f32 %v2940_v9, %v2882_v12 }
 0x50e   : > { %2962 = vst.msk [vmem:[%s5077_s18 + $0x38] sm:$0xff] %vm1790_vm3, %v2954_v11 }
 0x50f   : > { %2961 = vst.msk [vmem:[%s5077_s18 + $0x30] sm:$0xff] %vm1790_vm3, %v2953_v13 }
 0x510 PF: > { %s19_s30 = sadd.s32 1, %s4260_s30  }
 0x511   : > { %p16_p4 = scmp.ge.s32.totalorder %s19_s30, 6  }
 0x513   :  { %18 = sbr.rel (!%p16_p4) target bundleno = 1 (0x1), region = 98 }

</bundles_post_ra>
